<compile_context>
chip_gen: v7x
topology: tpu7x:2x2x1
jax: 0.10.0
libtpu: 0.0.40
codegen_flags: <defaults>
</compile_context>

<pallas_src>
import functools

import jax
import jax.numpy as jnp
from jax.experimental import pallas as pl
from jax.experimental.pallas import tpu as pltpu


def _ru(x, m):
    return ((x + m - 1) // m) * m


def _pick_tile(padded_dim, candidates):
    for c in candidates:
        if padded_dim % c == 0:
            return c
    return candidates[-1]


# ---------------------------------------------------------------------------
# Tiled matmul kernel: bf16 operands, f32 accumulator, fused bias (+ act)
# ---------------------------------------------------------------------------
def _matmul_kernel(a_ref, b_ref, bias_ref, o_ref, acc_ref, *, act):
    k = pl.program_id(2)

    @pl.when(k == 0)
    def _():
        acc_ref[...] = jnp.zeros_like(acc_ref)

    acc_ref[...] += jnp.dot(a_ref[...], b_ref[...],
                            preferred_element_type=jnp.float32)

    @pl.when(k == pl.num_programs(2) - 1)
    def _():
        r = acc_ref[...] + bias_ref[...]
        if act == "relu":
            r = jnp.maximum(r, 0.0)
        o_ref[...] = r.astype(o_ref.dtype)


def pallas_matmul(a, b, bias=None, act=None):
    """(M, K) @ (K, N) + bias -> (M, N) f32.  bf16 operands, f32 accumulation."""
    M, K = a.shape
    K2, N = b.shape
    assert K == K2
    Mp = _ru(M, 8)
    Kp = _ru(K, 128)
    Np = _ru(N, 128)          # lane-dense output columns
    tm = _pick_tile(Mp, (512, 256, 128, 64, 32, 16, 8))
    tk = _pick_tile(Kp, (512, 256, 128))
    tn = _pick_tile(Np, (256, 128))

    a_p = jnp.pad(a.astype(jnp.bfloat16), ((0, Mp - M), (0, Kp - K)))
    b_p = jnp.pad(b.astype(jnp.bfloat16), ((0, Kp - K), (0, Np - N)))
    if bias is None:
        bias_p = jnp.zeros((1, Np), jnp.float32)
    else:
        bias_p = jnp.pad(bias.astype(jnp.float32).reshape(1, N),
                         ((0, 0), (0, Np - N)))

    out = pl.pallas_call(
        functools.partial(_matmul_kernel, act=act),
        out_shape=jax.ShapeDtypeStruct((Mp, Np), jnp.float32),
        grid_spec=pltpu.PrefetchScalarGridSpec(
            num_scalar_prefetch=0,
            grid=(Mp // tm, Np // tn, Kp // tk),
            in_specs=[
                pl.BlockSpec((tm, tk), lambda i, j, k: (i, k)),
                pl.BlockSpec((tk, tn), lambda i, j, k: (k, j)),
                pl.BlockSpec((1, tn), lambda i, j, k: (0, j)),
            ],
            out_specs=pl.BlockSpec((tm, tn), lambda i, j, k: (i, j)),
            scratch_shapes=[pltpu.VMEM((tm, tn), jnp.float32)]),
        compiler_params=pltpu.CompilerParams(
            dimension_semantics=("parallel", "parallel", "arbitrary")),
    )(a_p, b_p, bias_p)
    return out[:M, :N]


# ---------------------------------------------------------------------------
# BatchNorm (training-mode batch stats, gamma=1, beta=0) + fused ReLU
# Operates on a (rows, C) slab; rows = N*H*W for BatchNorm2d, N for 1d.
# ---------------------------------------------------------------------------
def _bn_stats_kernel(x_ref, sum_ref, sq_ref):
    @pl.when(pl.program_id(0) == 0)
    def _():
        sum_ref[...] = jnp.zeros_like(sum_ref)
        sq_ref[...] = jnp.zeros_like(sq_ref)

    x = x_ref[...]
    sum_ref[...] += jnp.sum(x, axis=0, keepdims=True)
    sq_ref[...] += jnp.sum(x * x, axis=0, keepdims=True)


def _bn_apply_kernel(x_ref, scale_ref, shift_ref, o_ref, *, act):
    y = x_ref[...] * scale_ref[...] + shift_ref[...]
    if act == "relu":
        y = jnp.maximum(y, 0.0)
    o_ref[...] = y


def pallas_batchnorm_act(x, act=None, eps=1e-5):
    """Training-mode BatchNorm over the row axis of (rows, C), affine=identity.
    Optionally fuses a trailing ReLU (the ReLU that follows BN in DTN)."""
    # TODO(synk): running_mean / running_var buffer updates are not modelled.
    M, C = x.shape
    Mp = _ru(M, 8)
    Cp = _ru(C, 128)
    tm = _pick_tile(Mp, (512, 256, 128, 64, 32, 16, 8))
    xp = jnp.pad(x.astype(jnp.float32), ((0, Mp - M), (0, Cp - C)))

    ssum, ssq = pl.pallas_call(
        _bn_stats_kernel,
        out_shape=(jax.ShapeDtypeStruct((1, Cp), jnp.float32),
                   jax.ShapeDtypeStruct((1, Cp), jnp.float32)),
        grid_spec=pltpu.PrefetchScalarGridSpec(
            num_scalar_prefetch=0,
            grid=(Mp // tm,),
            in_specs=[pl.BlockSpec((tm, Cp), lambda i: (i, 0))],
            out_specs=[pl.BlockSpec((1, Cp), lambda i: (0, 0)),
                       pl.BlockSpec((1, Cp), lambda i: (0, 0))]),
        compiler_params=pltpu.CompilerParams(
            dimension_semantics=("arbitrary",)),
    )(xp)

    mean = ssum / M
    var = jnp.maximum(ssq / M - mean * mean, 0.0)   # biased batch variance
    scale = jax.lax.rsqrt(var + eps)                # gamma = 1
    shift = -mean * scale                           # beta  = 0

    y = pl.pallas_call(
        functools.partial(_bn_apply_kernel, act=act),
        out_shape=jax.ShapeDtypeStruct((Mp, Cp), jnp.float32),
        grid_spec=pltpu.PrefetchScalarGridSpec(
            num_scalar_prefetch=0,
            grid=(Mp // tm,),
            in_specs=[pl.BlockSpec((tm, Cp), lambda i: (i, 0)),
                      pl.BlockSpec((1, Cp), lambda i: (0, 0)),
                      pl.BlockSpec((1, Cp), lambda i: (0, 0))],
            out_specs=pl.BlockSpec((tm, Cp), lambda i: (i, 0))),
        compiler_params=pltpu.CompilerParams(
            dimension_semantics=("parallel",)),
    )(xp, scale, shift)
    return y[:M, :C]


# ---------------------------------------------------------------------------
# Conv2d(k=5, s=2, p=2) via im2col (NHWC) + tiled Pallas matmul
# ---------------------------------------------------------------------------
def _im2col_k5s2p2(x_nhwc):
    N, H, W, C = x_nhwc.shape
    Ho = (H + 4 - 5) // 2 + 1
    Wo = (W + 4 - 5) // 2 + 1
    xp = jnp.pad(x_nhwc, ((0, 0), (2, 2), (2, 2), (0, 0)))
    ih = 2 * jnp.arange(Ho)[:, None] + jnp.arange(5)[None, :]    # (Ho, 5)
    iw = 2 * jnp.arange(Wo)[:, None] + jnp.arange(5)[None, :]    # (Wo, 5)
    p = xp[:, ih[:, :, None, None], iw[None, None, :, :], :]     # (N,Ho,5,Wo,5,C)
    p = p.transpose(0, 1, 3, 5, 2, 4)                            # (N,Ho,Wo,C,5,5)
    return p.reshape(N * Ho * Wo, C * 25), (N, Ho, Wo)


def conv_bn_relu(x_nhwc, w, b):
    """Conv2d(k=5,s=2,p=2,bias) -> BatchNorm2d(batch stats) -> ReLU, NHWC."""
    # TODO(synk): Dropout2d (between BN and ReLU) is stochastic in train mode;
    # modelled as identity (inference behaviour).
    Cout = w.shape[0]
    a, (N, Ho, Wo) = _im2col_k5s2p2(x_nhwc)
    wm = w.reshape(Cout, -1).T                       # (Cin*25, Cout), torch order
    y = pallas_matmul(a, wm, bias=b)                 # (N*Ho*Wo, Cout)
    y = pallas_batchnorm_act(y, act="relu")          # BN + fused ReLU
    return y.reshape(N, Ho, Wo, Cout)


# ---------------------------------------------------------------------------
# DTN forward
# ---------------------------------------------------------------------------
def init_dtn_params(key, n_classes):
    ks = jax.random.split(key, 8)

    def nrm(k, shape, s=0.05):
        return s * jax.random.normal(k, shape, jnp.float32)

    return {
        "c1_w": nrm(ks[0], (64, 3, 5, 5)),    "c1_b": nrm(ks[1], (64,)),
        "c2_w": nrm(ks[2], (128, 64, 5, 5)),  "c2_b": nrm(ks[3], (128,)),
        "c3_w": nrm(ks[4], (256, 128, 5, 5)), "c3_b": nrm(ks[5], (256,)),
        "fc1_w": nrm(ks[6], (512, 256 * 4 * 4)),
        "fc1_b": jnp.zeros((512,), jnp.float32),
        "fc2_w": nrm(ks[7], (n_classes, 512)),
        "fc2_b": jnp.zeros((n_classes,), jnp.float32),
    }


def dtn_forward(params, x):
    """x: (N, 3, 32, 32) NCHW (32x32 so the flatten matches 256*4*4)."""
    N = x.shape[0]
    h = jnp.transpose(x, (0, 2, 3, 1))                         # NHWC
    h = conv_bn_relu(h, params["c1_w"], params["c1_b"])        # (N,16,16,64)
    h = conv_bn_relu(h, params["c2_w"], params["c2_b"])        # (N, 8, 8,128)
    h = conv_bn_relu(h, params["c3_w"], params["c3_b"])        # (N, 4, 4,256)
    # torch's x.view(N, -1) flattens NCHW -> (N, C*H*W)
    feat = jnp.transpose(h, (0, 3, 1, 2)).reshape(N, -1)       # (N, 4096)
    h = pallas_matmul(feat, params["fc1_w"].T, bias=params["fc1_b"])  # Linear
    h = pallas_batchnorm_act(h, act="relu")                    # BN1d + classifier ReLU
    # TODO(synk): classifier Dropout is stochastic in train mode; identity here.
    logits = pallas_matmul(h, params["fc2_w"].T, bias=params["fc2_b"])
    return logits


# ---------------------------------------------------------------------------
if __name__ == "__main__":
    key = jax.random.PRNGKey(0)
    kp, kx = jax.random.split(key)

    N_CLASSES = 10
    B, H, W = 2, 32, 32          # DTN's fc layer implies 32x32 input -> 256*4*4
    params = init_dtn_params(kp, N_CLASSES)
    x = jax.random.normal(kx, (B, 3, H, W), jnp.float32)

    fwd = jax.jit(functools.partial(dtn_forward, params))
    out = jax.block_until_ready(fwd(x))

    assert out.shape == (B, N_CLASSES), out.shape
    assert bool(jnp.all(jnp.isfinite(out)))
    print("KERNEL_OK")
</pallas_src>

<mosaic_0001>
module attributes {stable_mosaic.version = 11 : i64} {
  func.func @_matmul_kernel(%arg0: i32, %arg1: i32, %arg2: i32, %arg3: memref<512x128xbf16, #tpu.memory_space<vmem>>, %arg4: memref<128x128xbf16, #tpu.memory_space<vmem>>, %arg5: memref<1x128xf32, #tpu.memory_space<vmem>>, %arg6: memref<512x128xf32, #tpu.memory_space<vmem>>, %arg7: memref<512x128xf32, #tpu.memory_space<vmem>>) attributes {dimension_semantics = [#tpu.dimension_semantics<parallel>, #tpu.dimension_semantics<parallel>, #tpu.dimension_semantics<arbitrary>], iteration_bounds = array<i64: 1, 1, 1>, scalar_prefetch = 0 : i64, scratch_operands = 1 : i64, tpu.core_type = #tpu.core_type<tc>, window_params = [{transform_indices = @transform_0, window_bounds = array<i64: 512, 128>}, {transform_indices = @transform_1, window_bounds = array<i64: 128, 128>}, {transform_indices = @transform_2, window_bounds = array<i64: 1, 128>}, {transform_indices = @transform_3, window_bounds = array<i64: 512, 128>}]} {
    %c0_i32 = arith.constant 0 : i32
    %0 = arith.cmpi eq, %arg2, %c0_i32 : i32
    %1 = arith.extui %0 : i1 to i32
    %c0_i32_0 = arith.constant 0 : i32
    %2 = arith.cmpi ne, %1, %c0_i32_0 : i32
    scf.if %2 {
      %cst_10 = arith.constant 0.000000e+00 : f32
      %12 = vector.broadcast %cst_10 : f32 to vector<512x128xf32>
      %c0_11 = arith.constant 0 : index
      %c0_12 = arith.constant 0 : index
      %13 = vector.load %arg7[%c0_11, %c0_12] : memref<512x128xf32, #tpu.memory_space<vmem>>, vector<512x128xf32>
      tpu.vector_store %arg7[%c0_11, %c0_12], %12 {strides = array<i32>} : memref<512x128xf32, #tpu.memory_space<vmem>>, vector<512x128xf32>,
    } else {
    }
    %c0 = arith.constant 0 : index
    %c0_1 = arith.constant 0 : index
    %3 = vector.load %arg7[%c0, %c0_1] : memref<512x128xf32, #tpu.memory_space<vmem>>, vector<512x128xf32>
    %c0_2 = arith.constant 0 : index
    %c0_3 = arith.constant 0 : index
    %4 = vector.load %arg3[%c0_2, %c0_3] : memref<512x128xbf16, #tpu.memory_space<vmem>>, vector<512x128xbf16>
    %c0_4 = arith.constant 0 : index
    %c0_5 = arith.constant 0 : index
    %5 = vector.load %arg4[%c0_4, %c0_5] : memref<128x128xbf16, #tpu.memory_space<vmem>>, vector<128x128xbf16>
    %cst = arith.constant dense<0.000000e+00> : vector<512x128xf32>
    %6 = tpu.matmul %4, %5, %cst {dimension_numbers = #tpu.dot_dimension_numbers<[1], [0], [0], [1], [0, 0, 1, 1], [], []>} : vector<512x128xbf16>, vector<128x128xbf16>, vector<512x128xf32> -> vector<512x128xf32>
    %7 = arith.addf %3, %6 : vector<512x128xf32>
    %c0_6 = arith.constant 0 : index
    %c0_7 = arith.constant 0 : index
    %8 = vector.load %arg7[%c0_6, %c0_7] : memref<512x128xf32, #tpu.memory_space<vmem>>, vector<512x128xf32>
    tpu.vector_store %arg7[%c0_6, %c0_7], %7 {strides = array<i32>} : memref<512x128xf32, #tpu.memory_space<vmem>>, vector<512x128xf32>,
    %c0_i32_8 = arith.constant 0 : i32
    %9 = arith.cmpi eq, %arg2, %c0_i32_8 : i32
    %10 = arith.extui %9 : i1 to i32
    %c0_i32_9 = arith.constant 0 : i32
    %11 = arith.cmpi ne, %10, %c0_i32_9 : i32
    scf.if %11 {
      %c0_10 = arith.constant 0 : index
      %c0_11 = arith.constant 0 : index
      %12 = vector.load %arg7[%c0_10, %c0_11] : memref<512x128xf32, #tpu.memory_space<vmem>>, vector<512x128xf32>
      %c0_12 = arith.constant 0 : index
      %c0_13 = arith.constant 0 : index
      %13 = vector.load %arg5[%c0_12, %c0_13] : memref<1x128xf32, #tpu.memory_space<vmem>>, vector<1x128xf32>
      %14 = vector.broadcast %13 : vector<1x128xf32> to vector<512x128xf32>
      %15 = arith.addf %12, %14 : vector<512x128xf32>
      %c0_14 = arith.constant 0 : index
      %c0_15 = arith.constant 0 : index
      %16 = vector.load %arg6[%c0_14, %c0_15] : memref<512x128xf32, #tpu.memory_space<vmem>>, vector<512x128xf32>
      tpu.vector_store %arg6[%c0_14, %c0_15], %15 {strides = array<i32>} : memref<512x128xf32, #tpu.memory_space<vmem>>, vector<512x128xf32>,
    } else {
    }
    return
  }
  func.func @transform_0(%arg0: i32, %arg1: i32, %arg2: i32) -> (i32, i32) {
    %c0_i32 = arith.constant 0 : i32
    return %arg0, %arg2 : i32, i32
  }
  func.func @transform_1(%arg0: i32, %arg1: i32, %arg2: i32) -> (i32, i32) {
    %c0_i32 = arith.constant 0 : i32
    return %arg2, %arg1 : i32, i32
  }
  func.func @transform_2(%arg0: i32, %arg1: i32, %arg2: i32) -> (i32, i32) {
    %c0_i32 = arith.constant 0 : i32
    %c0_i32_0 = arith.constant 0 : i32
    return %c0_i32, %arg1 : i32, i32
  }
  func.func @transform_3(%arg0: i32, %arg1: i32, %arg2: i32) -> (i32, i32) {
    %c0_i32 = arith.constant 0 : i32
    return %arg0, %arg1 : i32, i32
  }
}

module attributes {stable_mosaic.version = 11 : i64} {
  func.func @_bn_stats_kernel(%arg0: i32, %arg1: memref<512x128xf32, #tpu.memory_space<vmem>>, %arg2: memref<1x128xf32, #tpu.memory_space<vmem>>, %arg3: memref<1x128xf32, #tpu.memory_space<vmem>>) attributes {dimension_semantics = [#tpu.dimension_semantics<arbitrary>], iteration_bounds = array<i64: 1>, scalar_prefetch = 0 : i64, scratch_operands = 0 : i64, tpu.core_type = #tpu.core_type<tc>, window_params = [{transform_indices = @transform_0, window_bounds = array<i64: 512, 128>}, {pipeline_mode = #tpu.pipeline_mode<synchronous>, transform_indices = @transform_1, window_bounds = array<i64: 1, 128>}, {pipeline_mode = #tpu.pipeline_mode<synchronous>, transform_indices = @transform_2, window_bounds = array<i64: 1, 128>}]} {
    %c0_i32 = arith.constant 0 : i32
    %0 = arith.cmpi eq, %arg0, %c0_i32 : i32
    %1 = arith.extui %0 : i1 to i32
    %c0_i32_0 = arith.constant 0 : i32
    %2 = arith.cmpi ne, %1, %c0_i32_0 : i32
    scf.if %2 {
      %cst_11 = arith.constant 0.000000e+00 : f32
      %15 = vector.broadcast %cst_11 : f32 to vector<1x128xf32>
      %c0_12 = arith.constant 0 : index
      %c0_13 = arith.constant 0 : index
      %16 = vector.load %arg2[%c0_12, %c0_13] : memref<1x128xf32, #tpu.memory_space<vmem>>, vector<1x128xf32>
      tpu.vector_store %arg2[%c0_12, %c0_13], %15 {strides = array<i32>} : memref<1x128xf32, #tpu.memory_space<vmem>>, vector<1x128xf32>,
      %cst_14 = arith.constant 0.000000e+00 : f32
      %17 = vector.broadcast %cst_14 : f32 to vector<1x128xf32>
      %c0_15 = arith.constant 0 : index
      %c0_16 = arith.constant 0 : index
      %18 = vector.load %arg3[%c0_15, %c0_16] : memref<1x128xf32, #tpu.memory_space<vmem>>, vector<1x128xf32>
      tpu.vector_store %arg3[%c0_15, %c0_16], %17 {strides = array<i32>} : memref<1x128xf32, #tpu.memory_space<vmem>>, vector<1x128xf32>,
    } else {
    }
    %c0 = arith.constant 0 : index
    %c0_1 = arith.constant 0 : index
    %3 = vector.load %arg1[%c0, %c0_1] : memref<512x128xf32, #tpu.memory_space<vmem>>, vector<512x128xf32>
    %c0_2 = arith.constant 0 : index
    %c0_3 = arith.constant 0 : index
    %4 = vector.load %arg2[%c0_2, %c0_3] : memref<1x128xf32, #tpu.memory_space<vmem>>, vector<1x128xf32>
    %cst = arith.constant dense<0.000000e+00> : vector<128xf32>
    %5 = vector.multi_reduction <add>, %3, %cst [0] : vector<512x128xf32> to vector<128xf32>
    %6 = vector.shape_cast %5 : vector<128xf32> to vector<1x128xf32>
    %7 = arith.addf %4, %6 : vector<1x128xf32>
    %c0_4 = arith.constant 0 : index
    %c0_5 = arith.constant 0 : index
    %8 = vector.load %arg2[%c0_4, %c0_5] : memref<1x128xf32, #tpu.memory_space<vmem>>, vector<1x128xf32>
    tpu.vector_store %arg2[%c0_4, %c0_5], %7 {strides = array<i32>} : memref<1x128xf32, #tpu.memory_space<vmem>>, vector<1x128xf32>,
    %c0_6 = arith.constant 0 : index
    %c0_7 = arith.constant 0 : index
    %9 = vector.load %arg3[%c0_6, %c0_7] : memref<1x128xf32, #tpu.memory_space<vmem>>, vector<1x128xf32>
    %10 = arith.mulf %3, %3 : vector<512x128xf32>
    %cst_8 = arith.constant dense<0.000000e+00> : vector<128xf32>
    %11 = vector.multi_reduction <add>, %10, %cst_8 [0] : vector<512x128xf32> to vector<128xf32>
    %12 = vector.shape_cast %11 : vector<128xf32> to vector<1x128xf32>
    %13 = arith.addf %9, %12 : vector<1x128xf32>
    %c0_9 = arith.constant 0 : index
    %c0_10 = arith.constant 0 : index
    %14 = vector.load %arg3[%c0_9, %c0_10] : memref<1x128xf32, #tpu.memory_space<vmem>>, vector<1x128xf32>
    tpu.vector_store %arg3[%c0_9, %c0_10], %13 {strides = array<i32>} : memref<1x128xf32, #tpu.memory_space<vmem>>, vector<1x128xf32>,
    return
  }
  func.func @transform_0(%arg0: i32) -> (i32, i32) {
    %c0_i32 = arith.constant 0 : i32
    %c0_i32_0 = arith.constant 0 : i32
    return %arg0, %c0_i32 : i32, i32
  }
  func.func @transform_1(%arg0: i32) -> (i32, i32) {
    %c0_i32 = arith.constant 0 : i32
    %c0_i32_0 = arith.constant 0 : i32
    %c0_i32_1 = arith.constant 0 : i32
    return %c0_i32, %c0_i32_0 : i32, i32
  }
  func.func @transform_2(%arg0: i32) -> (i32, i32) {
    %c0_i32 = arith.constant 0 : i32
    %c0_i32_0 = arith.constant 0 : i32
    %c0_i32_1 = arith.constant 0 : i32
    return %c0_i32, %c0_i32_0 : i32, i32
  }
}

module attributes {stable_mosaic.version = 11 : i64} {
  func.func @_bn_apply_kernel(%arg0: i32, %arg1: memref<512x128xf32, #tpu.memory_space<vmem>>, %arg2: memref<1x128xf32, #tpu.memory_space<vmem>>, %arg3: memref<1x128xf32, #tpu.memory_space<vmem>>, %arg4: memref<512x128xf32, #tpu.memory_space<vmem>>) attributes {dimension_semantics = [#tpu.dimension_semantics<parallel>], iteration_bounds = array<i64: 1>, scalar_prefetch = 0 : i64, scratch_operands = 0 : i64, tpu.core_type = #tpu.core_type<tc>, window_params = [{transform_indices = @transform_0, window_bounds = array<i64: 512, 128>}, {pipeline_mode = #tpu.pipeline_mode<synchronous>, transform_indices = @transform_1, window_bounds = array<i64: 1, 128>}, {pipeline_mode = #tpu.pipeline_mode<synchronous>, transform_indices = @transform_2, window_bounds = array<i64: 1, 128>}, {transform_indices = @transform_3, window_bounds = array<i64: 512, 128>}]} {
    %c0 = arith.constant 0 : index
    %c0_0 = arith.constant 0 : index
    %0 = vector.load %arg1[%c0, %c0_0] : memref<512x128xf32, #tpu.memory_space<vmem>>, vector<512x128xf32>
    %c0_1 = arith.constant 0 : index
    %c0_2 = arith.constant 0 : index
    %1 = vector.load %arg2[%c0_1, %c0_2] : memref<1x128xf32, #tpu.memory_space<vmem>>, vector<1x128xf32>
    %2 = vector.broadcast %1 : vector<1x128xf32> to vector<512x128xf32>
    %3 = arith.mulf %0, %2 : vector<512x128xf32>
    %c0_3 = arith.constant 0 : index
    %c0_4 = arith.constant 0 : index
    %4 = vector.load %arg3[%c0_3, %c0_4] : memref<1x128xf32, #tpu.memory_space<vmem>>, vector<1x128xf32>
    %5 = vector.broadcast %4 : vector<1x128xf32> to vector<512x128xf32>
    %6 = arith.addf %3, %5 : vector<512x128xf32>
    %cst = arith.constant 0.000000e+00 : f32
    %7 = vector.broadcast %cst : f32 to vector<512x128xf32>
    %8 = arith.maximumf %6, %7 : vector<512x128xf32>
    %c0_5 = arith.constant 0 : index
    %c0_6 = arith.constant 0 : index
    %9 = vector.load %arg4[%c0_5, %c0_6] : memref<512x128xf32, #tpu.memory_space<vmem>>, vector<512x128xf32>
    tpu.vector_store %arg4[%c0_5, %c0_6], %8 {strides = array<i32>} : memref<512x128xf32, #tpu.memory_space<vmem>>, vector<512x128xf32>,
    return
  }
  func.func @transform_0(%arg0: i32) -> (i32, i32) {
    %c0_i32 = arith.constant 0 : i32
    %c0_i32_0 = arith.constant 0 : i32
    return %arg0, %c0_i32 : i32, i32
  }
  func.func @transform_1(%arg0: i32) -> (i32, i32) {
    %c0_i32 = arith.constant 0 : i32
    %c0_i32_0 = arith.constant 0 : i32
    %c0_i32_1 = arith.constant 0 : i32
    return %c0_i32, %c0_i32_0 : i32, i32
  }
  func.func @transform_2(%arg0: i32) -> (i32, i32) {
    %c0_i32 = arith.constant 0 : i32
    %c0_i32_0 = arith.constant 0 : i32
    %c0_i32_1 = arith.constant 0 : i32
    return %c0_i32, %c0_i32_0 : i32, i32
  }
  func.func @transform_3(%arg0: i32) -> (i32, i32) {
    %c0_i32 = arith.constant 0 : i32
    %c0_i32_0 = arith.constant 0 : i32
    return %arg0, %c0_i32 : i32, i32
  }
}

module attributes {stable_mosaic.version = 11 : i64} {
  func.func @_matmul_kernel(%arg0: i32, %arg1: i32, %arg2: i32, %arg3: memref<128x128xbf16, #tpu.memory_space<vmem>>, %arg4: memref<128x128xbf16, #tpu.memory_space<vmem>>, %arg5: memref<1x128xf32, #tpu.memory_space<vmem>>, %arg6: memref<128x128xf32, #tpu.memory_space<vmem>>, %arg7: memref<128x128xf32, #tpu.memory_space<vmem>>) attributes {dimension_semantics = [#tpu.dimension_semantics<parallel>, #tpu.dimension_semantics<parallel>, #tpu.dimension_semantics<arbitrary>], iteration_bounds = array<i64: 1, 1, 13>, scalar_prefetch = 0 : i64, scratch_operands = 1 : i64, tpu.core_type = #tpu.core_type<tc>, window_params = [{transform_indices = @transform_0, window_bounds = array<i64: 128, 128>}, {transform_indices = @transform_1, window_bounds = array<i64: 128, 128>}, {transform_indices = @transform_2, window_bounds = array<i64: 1, 128>}, {transform_indices = @transform_3, window_bounds = array<i64: 128, 128>}]} {
    %c0_i32 = arith.constant 0 : i32
    %0 = arith.cmpi eq, %arg2, %c0_i32 : i32
    %1 = arith.extui %0 : i1 to i32
    %c0_i32_0 = arith.constant 0 : i32
    %2 = arith.cmpi ne, %1, %c0_i32_0 : i32
    scf.if %2 {
      %cst_9 = arith.constant 0.000000e+00 : f32
      %12 = vector.broadcast %cst_9 : f32 to vector<128x128xf32>
      %c0_10 = arith.constant 0 : index
      %c0_11 = arith.constant 0 : index
      %13 = vector.load %arg7[%c0_10, %c0_11] : memref<128x128xf32, #tpu.memory_space<vmem>>, vector<128x128xf32>
      tpu.vector_store %arg7[%c0_10, %c0_11], %12 {strides = array<i32>} : memref<128x128xf32, #tpu.memory_space<vmem>>, vector<128x128xf32>,
    } else {
    }
    %c0 = arith.constant 0 : index
    %c0_1 = arith.constant 0 : index
    %3 = vector.load %arg7[%c0, %c0_1] : memref<128x128xf32, #tpu.memory_space<vmem>>, vector<128x128xf32>
    %c0_2 = arith.constant 0 : index
    %c0_3 = arith.constant 0 : index
    %4 = vector.load %arg3[%c0_2, %c0_3] : memref<128x128xbf16, #tpu.memory_space<vmem>>, vector<128x128xbf16>
    %c0_4 = arith.constant 0 : index
    %c0_5 = arith.constant 0 : index
    %5 = vector.load %arg4[%c0_4, %c0_5] : memref<128x128xbf16, #tpu.memory_space<vmem>>, vector<128x128xbf16>
    %cst = arith.constant dense<0.000000e+00> : vector<128x128xf32>
    %6 = tpu.matmul %4, %5, %cst {dimension_numbers = #tpu.dot_dimension_numbers<[1], [0], [0], [1], [0, 0, 1, 1], [], []>} : vector<128x128xbf16>, vector<128x128xbf16>, vector<128x128xf32> -> vector<128x128xf32>
    %7 = arith.addf %3, %6 : vector<128x128xf32>
    %c0_6 = arith.constant 0 : index
    %c0_7 = arith.constant 0 : index
    %8 = vector.load %arg7[%c0_6, %c0_7] : memref<128x128xf32, #tpu.memory_space<vmem>>, vector<128x128xf32>
    tpu.vector_store %arg7[%c0_6, %c0_7], %7 {strides = array<i32>} : memref<128x128xf32, #tpu.memory_space<vmem>>, vector<128x128xf32>,
    %c12_i32 = arith.constant 12 : i32
    %9 = arith.cmpi eq, %arg2, %c12_i32 : i32
    %10 = arith.extui %9 : i1 to i32
    %c0_i32_8 = arith.constant 0 : i32
    %11 = arith.cmpi ne, %10, %c0_i32_8 : i32
    scf.if %11 {
      %c0_9 = arith.constant 0 : index
      %c0_10 = arith.constant 0 : index
      %12 = vector.load %arg7[%c0_9, %c0_10] : memref<128x128xf32, #tpu.memory_space<vmem>>, vector<128x128xf32>
      %c0_11 = arith.constant 0 : index
      %c0_12 = arith.constant 0 : index
      %13 = vector.load %arg5[%c0_11, %c0_12] : memref<1x128xf32, #tpu.memory_space<vmem>>, vector<1x128xf32>
      %14 = vector.broadcast %13 : vector<1x128xf32> to vector<128x128xf32>
      %15 = arith.addf %12, %14 : vector<128x128xf32>
      %c0_13 = arith.constant 0 : index
      %c0_14 = arith.constant 0 : index
      %16 = vector.load %arg6[%c0_13, %c0_14] : memref<128x128xf32, #tpu.memory_space<vmem>>, vector<128x128xf32>
      tpu.vector_store %arg6[%c0_13, %c0_14], %15 {strides = array<i32>} : memref<128x128xf32, #tpu.memory_space<vmem>>, vector<128x128xf32>,
    } else {
    }
    return
  }
  func.func @transform_0(%arg0: i32, %arg1: i32, %arg2: i32) -> (i32, i32) {
    %c0_i32 = arith.constant 0 : i32
    return %arg0, %arg2 : i32, i32
  }
  func.func @transform_1(%arg0: i32, %arg1: i32, %arg2: i32) -> (i32, i32) {
    %c0_i32 = arith.constant 0 : i32
    return %arg2, %arg1 : i32, i32
  }
  func.func @transform_2(%arg0: i32, %arg1: i32, %arg2: i32) -> (i32, i32) {
    %c0_i32 = arith.constant 0 : i32
    %c0_i32_0 = arith.constant 0 : i32
    return %c0_i32, %arg1 : i32, i32
  }
  func.func @transform_3(%arg0: i32, %arg1: i32, %arg2: i32) -> (i32, i32) {
    %c0_i32 = arith.constant 0 : i32
    return %arg0, %arg1 : i32, i32
  }
}

module attributes {stable_mosaic.version = 11 : i64} {
  func.func @_bn_stats_kernel(%arg0: i32, %arg1: memref<128x128xf32, #tpu.memory_space<vmem>>, %arg2: memref<1x128xf32, #tpu.memory_space<vmem>>, %arg3: memref<1x128xf32, #tpu.memory_space<vmem>>) attributes {dimension_semantics = [#tpu.dimension_semantics<arbitrary>], iteration_bounds = array<i64: 1>, scalar_prefetch = 0 : i64, scratch_operands = 0 : i64, tpu.core_type = #tpu.core_type<tc>, window_params = [{transform_indices = @transform_0, window_bounds = array<i64: 128, 128>}, {pipeline_mode = #tpu.pipeline_mode<synchronous>, transform_indices = @transform_1, window_bounds = array<i64: 1, 128>}, {pipeline_mode = #tpu.pipeline_mode<synchronous>, transform_indices = @transform_2, window_bounds = array<i64: 1, 128>}]} {
    %c0_i32 = arith.constant 0 : i32
    %0 = arith.cmpi eq, %arg0, %c0_i32 : i32
    %1 = arith.extui %0 : i1 to i32
    %c0_i32_0 = arith.constant 0 : i32
    %2 = arith.cmpi ne, %1, %c0_i32_0 : i32
    scf.if %2 {
      %cst_11 = arith.constant 0.000000e+00 : f32
      %15 = vector.broadcast %cst_11 : f32 to vector<1x128xf32>
      %c0_12 = arith.constant 0 : index
      %c0_13 = arith.constant 0 : index
      %16 = vector.load %arg2[%c0_12, %c0_13] : memref<1x128xf32, #tpu.memory_space<vmem>>, vector<1x128xf32>
      tpu.vector_store %arg2[%c0_12, %c0_13], %15 {strides = array<i32>} : memref<1x128xf32, #tpu.memory_space<vmem>>, vector<1x128xf32>,
      %cst_14 = arith.constant 0.000000e+00 : f32
      %17 = vector.broadcast %cst_14 : f32 to vector<1x128xf32>
      %c0_15 = arith.constant 0 : index
      %c0_16 = arith.constant 0 : index
      %18 = vector.load %arg3[%c0_15, %c0_16] : memref<1x128xf32, #tpu.memory_space<vmem>>, vector<1x128xf32>
      tpu.vector_store %arg3[%c0_15, %c0_16], %17 {strides = array<i32>} : memref<1x128xf32, #tpu.memory_space<vmem>>, vector<1x128xf32>,
    } else {
    }
    %c0 = arith.constant 0 : index
    %c0_1 = arith.constant 0 : index
    %3 = vector.load %arg1[%c0, %c0_1] : memref<128x128xf32, #tpu.memory_space<vmem>>, vector<128x128xf32>
    %c0_2 = arith.constant 0 : index
    %c0_3 = arith.constant 0 : index
    %4 = vector.load %arg2[%c0_2, %c0_3] : memref<1x128xf32, #tpu.memory_space<vmem>>, vector<1x128xf32>
    %cst = arith.constant dense<0.000000e+00> : vector<128xf32>
    %5 = vector.multi_reduction <add>, %3, %cst [0] : vector<128x128xf32> to vector<128xf32>
    %6 = vector.shape_cast %5 : vector<128xf32> to vector<1x128xf32>
    %7 = arith.addf %4, %6 : vector<1x128xf32>
    %c0_4 = arith.constant 0 : index
    %c0_5 = arith.constant 0 : index
    %8 = vector.load %arg2[%c0_4, %c0_5] : memref<1x128xf32, #tpu.memory_space<vmem>>, vector<1x128xf32>
    tpu.vector_store %arg2[%c0_4, %c0_5], %7 {strides = array<i32>} : memref<1x128xf32, #tpu.memory_space<vmem>>, vector<1x128xf32>,
    %c0_6 = arith.constant 0 : index
    %c0_7 = arith.constant 0 : index
    %9 = vector.load %arg3[%c0_6, %c0_7] : memref<1x128xf32, #tpu.memory_space<vmem>>, vector<1x128xf32>
    %10 = arith.mulf %3, %3 : vector<128x128xf32>
    %cst_8 = arith.constant dense<0.000000e+00> : vector<128xf32>
    %11 = vector.multi_reduction <add>, %10, %cst_8 [0] : vector<128x128xf32> to vector<128xf32>
    %12 = vector.shape_cast %11 : vector<128xf32> to vector<1x128xf32>
    %13 = arith.addf %9, %12 : vector<1x128xf32>
    %c0_9 = arith.constant 0 : index
    %c0_10 = arith.constant 0 : index
    %14 = vector.load %arg3[%c0_9, %c0_10] : memref<1x128xf32, #tpu.memory_space<vmem>>, vector<1x128xf32>
    tpu.vector_store %arg3[%c0_9, %c0_10], %13 {strides = array<i32>} : memref<1x128xf32, #tpu.memory_space<vmem>>, vector<1x128xf32>,
    return
  }
  func.func @transform_0(%arg0: i32) -> (i32, i32) {
    %c0_i32 = arith.constant 0 : i32
    %c0_i32_0 = arith.constant 0 : i32
    return %arg0, %c0_i32 : i32, i32
  }
  func.func @transform_1(%arg0: i32) -> (i32, i32) {
    %c0_i32 = arith.constant 0 : i32
    %c0_i32_0 = arith.constant 0 : i32
    %c0_i32_1 = arith.constant 0 : i32
    return %c0_i32, %c0_i32_0 : i32, i32
  }
  func.func @transform_2(%arg0: i32) -> (i32, i32) {
    %c0_i32 = arith.constant 0 : i32
    %c0_i32_0 = arith.constant 0 : i32
    %c0_i32_1 = arith.constant 0 : i32
    return %c0_i32, %c0_i32_0 : i32, i32
  }
}

module attributes {stable_mosaic.version = 11 : i64} {
  func.func @_bn_apply_kernel(%arg0: i32, %arg1: memref<128x128xf32, #tpu.memory_space<vmem>>, %arg2: memref<1x128xf32, #tpu.memory_space<vmem>>, %arg3: memref<1x128xf32, #tpu.memory_space<vmem>>, %arg4: memref<128x128xf32, #tpu.memory_space<vmem>>) attributes {dimension_semantics = [#tpu.dimension_semantics<parallel>], iteration_bounds = array<i64: 1>, scalar_prefetch = 0 : i64, scratch_operands = 0 : i64, tpu.core_type = #tpu.core_type<tc>, window_params = [{transform_indices = @transform_0, window_bounds = array<i64: 128, 128>}, {pipeline_mode = #tpu.pipeline_mode<synchronous>, transform_indices = @transform_1, window_bounds = array<i64: 1, 128>}, {pipeline_mode = #tpu.pipeline_mode<synchronous>, transform_indices = @transform_2, window_bounds = array<i64: 1, 128>}, {transform_indices = @transform_3, window_bounds = array<i64: 128, 128>}]} {
    %c0 = arith.constant 0 : index
    %c0_0 = arith.constant 0 : index
    %0 = vector.load %arg1[%c0, %c0_0] : memref<128x128xf32, #tpu.memory_space<vmem>>, vector<128x128xf32>
    %c0_1 = arith.constant 0 : index
    %c0_2 = arith.constant 0 : index
    %1 = vector.load %arg2[%c0_1, %c0_2] : memref<1x128xf32, #tpu.memory_space<vmem>>, vector<1x128xf32>
    %2 = vector.broadcast %1 : vector<1x128xf32> to vector<128x128xf32>
    %3 = arith.mulf %0, %2 : vector<128x128xf32>
    %c0_3 = arith.constant 0 : index
    %c0_4 = arith.constant 0 : index
    %4 = vector.load %arg3[%c0_3, %c0_4] : memref<1x128xf32, #tpu.memory_space<vmem>>, vector<1x128xf32>
    %5 = vector.broadcast %4 : vector<1x128xf32> to vector<128x128xf32>
    %6 = arith.addf %3, %5 : vector<128x128xf32>
    %cst = arith.constant 0.000000e+00 : f32
    %7 = vector.broadcast %cst : f32 to vector<128x128xf32>
    %8 = arith.maximumf %6, %7 : vector<128x128xf32>
    %c0_5 = arith.constant 0 : index
    %c0_6 = arith.constant 0 : index
    %9 = vector.load %arg4[%c0_5, %c0_6] : memref<128x128xf32, #tpu.memory_space<vmem>>, vector<128x128xf32>
    tpu.vector_store %arg4[%c0_5, %c0_6], %8 {strides = array<i32>} : memref<128x128xf32, #tpu.memory_space<vmem>>, vector<128x128xf32>,
    return
  }
  func.func @transform_0(%arg0: i32) -> (i32, i32) {
    %c0_i32 = arith.constant 0 : i32
    %c0_i32_0 = arith.constant 0 : i32
    return %arg0, %c0_i32 : i32, i32
  }
  func.func @transform_1(%arg0: i32) -> (i32, i32) {
    %c0_i32 = arith.constant 0 : i32
    %c0_i32_0 = arith.constant 0 : i32
    %c0_i32_1 = arith.constant 0 : i32
    return %c0_i32, %c0_i32_0 : i32, i32
  }
  func.func @transform_2(%arg0: i32) -> (i32, i32) {
    %c0_i32 = arith.constant 0 : i32
    %c0_i32_0 = arith.constant 0 : i32
    %c0_i32_1 = arith.constant 0 : i32
    return %c0_i32, %c0_i32_0 : i32, i32
  }
  func.func @transform_3(%arg0: i32) -> (i32, i32) {
    %c0_i32 = arith.constant 0 : i32
    %c0_i32_0 = arith.constant 0 : i32
    return %arg0, %c0_i32 : i32, i32
  }
}

module attributes {stable_mosaic.version = 11 : i64} {
  func.func @_matmul_kernel(%arg0: i32, %arg1: i32, %arg2: i32, %arg3: memref<32x128xbf16, #tpu.memory_space<vmem>>, %arg4: memref<128x256xbf16, #tpu.memory_space<vmem>>, %arg5: memref<1x256xf32, #tpu.memory_space<vmem>>, %arg6: memref<32x256xf32, #tpu.memory_space<vmem>>, %arg7: memref<32x256xf32, #tpu.memory_space<vmem>>) attributes {dimension_semantics = [#tpu.dimension_semantics<parallel>, #tpu.dimension_semantics<parallel>, #tpu.dimension_semantics<arbitrary>], iteration_bounds = array<i64: 1, 1, 25>, scalar_prefetch = 0 : i64, scratch_operands = 1 : i64, tpu.core_type = #tpu.core_type<tc>, window_params = [{transform_indices = @transform_0, window_bounds = array<i64: 32, 128>}, {transform_indices = @transform_1, window_bounds = array<i64: 128, 256>}, {transform_indices = @transform_2, window_bounds = array<i64: 1, 256>}, {transform_indices = @transform_3, window_bounds = array<i64: 32, 256>}]} {
    %c0_i32 = arith.constant 0 : i32
    %0 = arith.cmpi eq, %arg2, %c0_i32 : i32
    %1 = arith.extui %0 : i1 to i32
    %c0_i32_0 = arith.constant 0 : i32
    %2 = arith.cmpi ne, %1, %c0_i32_0 : i32
    scf.if %2 {
      %cst_9 = arith.constant 0.000000e+00 : f32
      %12 = vector.broadcast %cst_9 : f32 to vector<32x256xf32>
      %c0_10 = arith.constant 0 : index
      %c0_11 = arith.constant 0 : index
      %13 = vector.load %arg7[%c0_10, %c0_11] : memref<32x256xf32, #tpu.memory_space<vmem>>, vector<32x256xf32>
      tpu.vector_store %arg7[%c0_10, %c0_11], %12 {strides = array<i32>} : memref<32x256xf32, #tpu.memory_space<vmem>>, vector<32x256xf32>,
    } else {
    }
    %c0 = arith.constant 0 : index
    %c0_1 = arith.constant 0 : index
    %3 = vector.load %arg7[%c0, %c0_1] : memref<32x256xf32, #tpu.memory_space<vmem>>, vector<32x256xf32>
    %c0_2 = arith.constant 0 : index
    %c0_3 = arith.constant 0 : index
    %4 = vector.load %arg3[%c0_2, %c0_3] : memref<32x128xbf16, #tpu.memory_space<vmem>>, vector<32x128xbf16>
    %c0_4 = arith.constant 0 : index
    %c0_5 = arith.constant 0 : index
    %5 = vector.load %arg4[%c0_4, %c0_5] : memref<128x256xbf16, #tpu.memory_space<vmem>>, vector<128x256xbf16>
    %cst = arith.constant dense<0.000000e+00> : vector<32x256xf32>
    %6 = tpu.matmul %4, %5, %cst {dimension_numbers = #tpu.dot_dimension_numbers<[1], [0], [0], [1], [0, 0, 1, 1], [], []>} : vector<32x128xbf16>, vector<128x256xbf16>, vector<32x256xf32> -> vector<32x256xf32>
    %7 = arith.addf %3, %6 : vector<32x256xf32>
    %c0_6 = arith.constant 0 : index
    %c0_7 = arith.constant 0 : index
    %8 = vector.load %arg7[%c0_6, %c0_7] : memref<32x256xf32, #tpu.memory_space<vmem>>, vector<32x256xf32>
    tpu.vector_store %arg7[%c0_6, %c0_7], %7 {strides = array<i32>} : memref<32x256xf32, #tpu.memory_space<vmem>>, vector<32x256xf32>,
    %c24_i32 = arith.constant 24 : i32
    %9 = arith.cmpi eq, %arg2, %c24_i32 : i32
    %10 = arith.extui %9 : i1 to i32
    %c0_i32_8 = arith.constant 0 : i32
    %11 = arith.cmpi ne, %10, %c0_i32_8 : i32
    scf.if %11 {
      %c0_9 = arith.constant 0 : index
      %c0_10 = arith.constant 0 : index
      %12 = vector.load %arg7[%c0_9, %c0_10] : memref<32x256xf32, #tpu.memory_space<vmem>>, vector<32x256xf32>
      %c0_11 = arith.constant 0 : index
      %c0_12 = arith.constant 0 : index
      %13 = vector.load %arg5[%c0_11, %c0_12] : memref<1x256xf32, #tpu.memory_space<vmem>>, vector<1x256xf32>
      %14 = vector.broadcast %13 : vector<1x256xf32> to vector<32x256xf32>
      %15 = arith.addf %12, %14 : vector<32x256xf32>
      %c0_13 = arith.constant 0 : index
      %c0_14 = arith.constant 0 : index
      %16 = vector.load %arg6[%c0_13, %c0_14] : memref<32x256xf32, #tpu.memory_space<vmem>>, vector<32x256xf32>
      tpu.vector_store %arg6[%c0_13, %c0_14], %15 {strides = array<i32>} : memref<32x256xf32, #tpu.memory_space<vmem>>, vector<32x256xf32>,
    } else {
    }
    return
  }
  func.func @transform_0(%arg0: i32, %arg1: i32, %arg2: i32) -> (i32, i32) {
    %c0_i32 = arith.constant 0 : i32
    return %arg0, %arg2 : i32, i32
  }
  func.func @transform_1(%arg0: i32, %arg1: i32, %arg2: i32) -> (i32, i32) {
    %c0_i32 = arith.constant 0 : i32
    return %arg2, %arg1 : i32, i32
  }
  func.func @transform_2(%arg0: i32, %arg1: i32, %arg2: i32) -> (i32, i32) {
    %c0_i32 = arith.constant 0 : i32
    %c0_i32_0 = arith.constant 0 : i32
    return %c0_i32, %arg1 : i32, i32
  }
  func.func @transform_3(%arg0: i32, %arg1: i32, %arg2: i32) -> (i32, i32) {
    %c0_i32 = arith.constant 0 : i32
    return %arg0, %arg1 : i32, i32
  }
}

module attributes {stable_mosaic.version = 11 : i64} {
  func.func @_bn_apply_kernel(%arg0: i32, %arg1: memref<32x256xf32, #tpu.memory_space<vmem>>, %arg2: memref<1x256xf32, #tpu.memory_space<vmem>>, %arg3: memref<1x256xf32, #tpu.memory_space<vmem>>, %arg4: memref<32x256xf32, #tpu.memory_space<vmem>>) attributes {dimension_semantics = [#tpu.dimension_semantics<parallel>], iteration_bounds = array<i64: 1>, scalar_prefetch = 0 : i64, scratch_operands = 0 : i64, tpu.core_type = #tpu.core_type<tc>, window_params = [{transform_indices = @transform_0, window_bounds = array<i64: 32, 256>}, {pipeline_mode = #tpu.pipeline_mode<synchronous>, transform_indices = @transform_1, window_bounds = array<i64: 1, 256>}, {pipeline_mode = #tpu.pipeline_mode<synchronous>, transform_indices = @transform_2, window_bounds = array<i64: 1, 256>}, {transform_indices = @transform_3, window_bounds = array<i64: 32, 256>}]} {
    %c0 = arith.constant 0 : index
    %c0_0 = arith.constant 0 : index
    %0 = vector.load %arg1[%c0, %c0_0] : memref<32x256xf32, #tpu.memory_space<vmem>>, vector<32x256xf32>
    %c0_1 = arith.constant 0 : index
    %c0_2 = arith.constant 0 : index
    %1 = vector.load %arg2[%c0_1, %c0_2] : memref<1x256xf32, #tpu.memory_space<vmem>>, vector<1x256xf32>
    %2 = vector.broadcast %1 : vector<1x256xf32> to vector<32x256xf32>
    %3 = arith.mulf %0, %2 : vector<32x256xf32>
    %c0_3 = arith.constant 0 : index
    %c0_4 = arith.constant 0 : index
    %4 = vector.load %arg3[%c0_3, %c0_4] : memref<1x256xf32, #tpu.memory_space<vmem>>, vector<1x256xf32>
    %5 = vector.broadcast %4 : vector<1x256xf32> to vector<32x256xf32>
    %6 = arith.addf %3, %5 : vector<32x256xf32>
    %cst = arith.constant 0.000000e+00 : f32
    %7 = vector.broadcast %cst : f32 to vector<32x256xf32>
    %8 = arith.maximumf %6, %7 : vector<32x256xf32>
    %c0_5 = arith.constant 0 : index
    %c0_6 = arith.constant 0 : index
    %9 = vector.load %arg4[%c0_5, %c0_6] : memref<32x256xf32, #tpu.memory_space<vmem>>, vector<32x256xf32>
    tpu.vector_store %arg4[%c0_5, %c0_6], %8 {strides = array<i32>} : memref<32x256xf32, #tpu.memory_space<vmem>>, vector<32x256xf32>,
    return
  }
  func.func @transform_0(%arg0: i32) -> (i32, i32) {
    %c0_i32 = arith.constant 0 : i32
    %c0_i32_0 = arith.constant 0 : i32
    return %arg0, %c0_i32 : i32, i32
  }
  func.func @transform_1(%arg0: i32) -> (i32, i32) {
    %c0_i32 = arith.constant 0 : i32
    %c0_i32_0 = arith.constant 0 : i32
    %c0_i32_1 = arith.constant 0 : i32
    return %c0_i32, %c0_i32_0 : i32, i32
  }
  func.func @transform_2(%arg0: i32) -> (i32, i32) {
    %c0_i32 = arith.constant 0 : i32
    %c0_i32_0 = arith.constant 0 : i32
    %c0_i32_1 = arith.constant 0 : i32
    return %c0_i32, %c0_i32_0 : i32, i32
  }
  func.func @transform_3(%arg0: i32) -> (i32, i32) {
    %c0_i32 = arith.constant 0 : i32
    %c0_i32_0 = arith.constant 0 : i32
    return %arg0, %c0_i32 : i32, i32
  }
}

module attributes {stable_mosaic.version = 11 : i64} {
  func.func @_bn_stats_kernel(%arg0: i32, %arg1: memref<32x256xf32, #tpu.memory_space<vmem>>, %arg2: memref<1x256xf32, #tpu.memory_space<vmem>>, %arg3: memref<1x256xf32, #tpu.memory_space<vmem>>) attributes {dimension_semantics = [#tpu.dimension_semantics<arbitrary>], iteration_bounds = array<i64: 1>, scalar_prefetch = 0 : i64, scratch_operands = 0 : i64, tpu.core_type = #tpu.core_type<tc>, window_params = [{transform_indices = @transform_0, window_bounds = array<i64: 32, 256>}, {pipeline_mode = #tpu.pipeline_mode<synchronous>, transform_indices = @transform_1, window_bounds = array<i64: 1, 256>}, {pipeline_mode = #tpu.pipeline_mode<synchronous>, transform_indices = @transform_2, window_bounds = array<i64: 1, 256>}]} {
    %c0_i32 = arith.constant 0 : i32
    %0 = arith.cmpi eq, %arg0, %c0_i32 : i32
    %1 = arith.extui %0 : i1 to i32
    %c0_i32_0 = arith.constant 0 : i32
    %2 = arith.cmpi ne, %1, %c0_i32_0 : i32
    scf.if %2 {
      %cst_11 = arith.constant 0.000000e+00 : f32
      %15 = vector.broadcast %cst_11 : f32 to vector<1x256xf32>
      %c0_12 = arith.constant 0 : index
      %c0_13 = arith.constant 0 : index
      %16 = vector.load %arg2[%c0_12, %c0_13] : memref<1x256xf32, #tpu.memory_space<vmem>>, vector<1x256xf32>
      tpu.vector_store %arg2[%c0_12, %c0_13], %15 {strides = array<i32>} : memref<1x256xf32, #tpu.memory_space<vmem>>, vector<1x256xf32>,
      %cst_14 = arith.constant 0.000000e+00 : f32
      %17 = vector.broadcast %cst_14 : f32 to vector<1x256xf32>
      %c0_15 = arith.constant 0 : index
      %c0_16 = arith.constant 0 : index
      %18 = vector.load %arg3[%c0_15, %c0_16] : memref<1x256xf32, #tpu.memory_space<vmem>>, vector<1x256xf32>
      tpu.vector_store %arg3[%c0_15, %c0_16], %17 {strides = array<i32>} : memref<1x256xf32, #tpu.memory_space<vmem>>, vector<1x256xf32>,
    } else {
    }
    %c0 = arith.constant 0 : index
    %c0_1 = arith.constant 0 : index
    %3 = vector.load %arg1[%c0, %c0_1] : memref<32x256xf32, #tpu.memory_space<vmem>>, vector<32x256xf32>
    %c0_2 = arith.constant 0 : index
    %c0_3 = arith.constant 0 : index
    %4 = vector.load %arg2[%c0_2, %c0_3] : memref<1x256xf32, #tpu.memory_space<vmem>>, vector<1x256xf32>
    %cst = arith.constant dense<0.000000e+00> : vector<256xf32>
    %5 = vector.multi_reduction <add>, %3, %cst [0] : vector<32x256xf32> to vector<256xf32>
    %6 = vector.shape_cast %5 : vector<256xf32> to vector<1x256xf32>
    %7 = arith.addf %4, %6 : vector<1x256xf32>
    %c0_4 = arith.constant 0 : index
    %c0_5 = arith.constant 0 : index
    %8 = vector.load %arg2[%c0_4, %c0_5] : memref<1x256xf32, #tpu.memory_space<vmem>>, vector<1x256xf32>
    tpu.vector_store %arg2[%c0_4, %c0_5], %7 {strides = array<i32>} : memref<1x256xf32, #tpu.memory_space<vmem>>, vector<1x256xf32>,
    %c0_6 = arith.constant 0 : index
    %c0_7 = arith.constant 0 : index
    %9 = vector.load %arg3[%c0_6, %c0_7] : memref<1x256xf32, #tpu.memory_space<vmem>>, vector<1x256xf32>
    %10 = arith.mulf %3, %3 : vector<32x256xf32>
    %cst_8 = arith.constant dense<0.000000e+00> : vector<256xf32>
    %11 = vector.multi_reduction <add>, %10, %cst_8 [0] : vector<32x256xf32> to vector<256xf32>
    %12 = vector.shape_cast %11 : vector<256xf32> to vector<1x256xf32>
    %13 = arith.addf %9, %12 : vector<1x256xf32>
    %c0_9 = arith.constant 0 : index
    %c0_10 = arith.constant 0 : index
    %14 = vector.load %arg3[%c0_9, %c0_10] : memref<1x256xf32, #tpu.memory_space<vmem>>, vector<1x256xf32>
    tpu.vector_store %arg3[%c0_9, %c0_10], %13 {strides = array<i32>} : memref<1x256xf32, #tpu.memory_space<vmem>>, vector<1x256xf32>,
    return
  }
  func.func @transform_0(%arg0: i32) -> (i32, i32) {
    %c0_i32 = arith.constant 0 : i32
    %c0_i32_0 = arith.constant 0 : i32
    return %arg0, %c0_i32 : i32, i32
  }
  func.func @transform_1(%arg0: i32) -> (i32, i32) {
    %c0_i32 = arith.constant 0 : i32
    %c0_i32_0 = arith.constant 0 : i32
    %c0_i32_1 = arith.constant 0 : i32
    return %c0_i32, %c0_i32_0 : i32, i32
  }
  func.func @transform_2(%arg0: i32) -> (i32, i32) {
    %c0_i32 = arith.constant 0 : i32
    %c0_i32_0 = arith.constant 0 : i32
    %c0_i32_1 = arith.constant 0 : i32
    return %c0_i32, %c0_i32_0 : i32, i32
  }
}

module attributes {stable_mosaic.version = 11 : i64} {
  func.func @_matmul_kernel(%arg0: i32, %arg1: i32, %arg2: i32, %arg3: memref<8x512xbf16, #tpu.memory_space<vmem>>, %arg4: memref<512x256xbf16, #tpu.memory_space<vmem>>, %arg5: memref<1x256xf32, #tpu.memory_space<vmem>>, %arg6: memref<8x256xf32, #tpu.memory_space<vmem>>, %arg7: memref<8x256xf32, #tpu.memory_space<vmem>>) attributes {dimension_semantics = [#tpu.dimension_semantics<parallel>, #tpu.dimension_semantics<parallel>, #tpu.dimension_semantics<arbitrary>], iteration_bounds = array<i64: 1, 2, 8>, scalar_prefetch = 0 : i64, scratch_operands = 1 : i64, tpu.core_type = #tpu.core_type<tc>, window_params = [{transform_indices = @transform_0, window_bounds = array<i64: 8, 512>}, {transform_indices = @transform_1, window_bounds = array<i64: 512, 256>}, {transform_indices = @transform_2, window_bounds = array<i64: 1, 256>}, {transform_indices = @transform_3, window_bounds = array<i64: 8, 256>}]} {
    %c0_i32 = arith.constant 0 : i32
    %0 = arith.cmpi eq, %arg2, %c0_i32 : i32
    %1 = arith.extui %0 : i1 to i32
    %c0_i32_0 = arith.constant 0 : i32
    %2 = arith.cmpi ne, %1, %c0_i32_0 : i32
    scf.if %2 {
      %cst_9 = arith.constant 0.000000e+00 : f32
      %12 = vector.broadcast %cst_9 : f32 to vector<8x256xf32>
      %c0_10 = arith.constant 0 : index
      %c0_11 = arith.constant 0 : index
      %13 = vector.load %arg7[%c0_10, %c0_11] : memref<8x256xf32, #tpu.memory_space<vmem>>, vector<8x256xf32>
      tpu.vector_store %arg7[%c0_10, %c0_11], %12 {strides = array<i32>} : memref<8x256xf32, #tpu.memory_space<vmem>>, vector<8x256xf32>,
    } else {
    }
    %c0 = arith.constant 0 : index
    %c0_1 = arith.constant 0 : index
    %3 = vector.load %arg7[%c0, %c0_1] : memref<8x256xf32, #tpu.memory_space<vmem>>, vector<8x256xf32>
    %c0_2 = arith.constant 0 : index
    %c0_3 = arith.constant 0 : index
    %4 = vector.load %arg3[%c0_2, %c0_3] : memref<8x512xbf16, #tpu.memory_space<vmem>>, vector<8x512xbf16>
    %c0_4 = arith.constant 0 : index
    %c0_5 = arith.constant 0 : index
    %5 = vector.load %arg4[%c0_4, %c0_5] : memref<512x256xbf16, #tpu.memory_space<vmem>>, vector<512x256xbf16>
    %cst = arith.constant dense<0.000000e+00> : vector<8x256xf32>
    %6 = tpu.matmul %4, %5, %cst {dimension_numbers = #tpu.dot_dimension_numbers<[1], [0], [0], [1], [0, 0, 1, 1], [], []>} : vector<8x512xbf16>, vector<512x256xbf16>, vector<8x256xf32> -> vector<8x256xf32>
    %7 = arith.addf %3, %6 : vector<8x256xf32>
    %c0_6 = arith.constant 0 : index
    %c0_7 = arith.constant 0 : index
    %8 = vector.load %arg7[%c0_6, %c0_7] : memref<8x256xf32, #tpu.memory_space<vmem>>, vector<8x256xf32>
    tpu.vector_store %arg7[%c0_6, %c0_7], %7 {strides = array<i32>} : memref<8x256xf32, #tpu.memory_space<vmem>>, vector<8x256xf32>,
    %c7_i32 = arith.constant 7 : i32
    %9 = arith.cmpi eq, %arg2, %c7_i32 : i32
    %10 = arith.extui %9 : i1 to i32
    %c0_i32_8 = arith.constant 0 : i32
    %11 = arith.cmpi ne, %10, %c0_i32_8 : i32
    scf.if %11 {
      %c0_9 = arith.constant 0 : index
      %c0_10 = arith.constant 0 : index
      %12 = vector.load %arg7[%c0_9, %c0_10] : memref<8x256xf32, #tpu.memory_space<vmem>>, vector<8x256xf32>
      %c0_11 = arith.constant 0 : index
      %c0_12 = arith.constant 0 : index
      %13 = vector.load %arg5[%c0_11, %c0_12] : memref<1x256xf32, #tpu.memory_space<vmem>>, vector<1x256xf32>
      %14 = vector.broadcast %13 : vector<1x256xf32> to vector<8x256xf32>
      %15 = arith.addf %12, %14 : vector<8x256xf32>
      %c0_13 = arith.constant 0 : index
      %c0_14 = arith.constant 0 : index
      %16 = vector.load %arg6[%c0_13, %c0_14] : memref<8x256xf32, #tpu.memory_space<vmem>>, vector<8x256xf32>
      tpu.vector_store %arg6[%c0_13, %c0_14], %15 {strides = array<i32>} : memref<8x256xf32, #tpu.memory_space<vmem>>, vector<8x256xf32>,
    } else {
    }
    return
  }
  func.func @transform_0(%arg0: i32, %arg1: i32, %arg2: i32) -> (i32, i32) {
    %c0_i32 = arith.constant 0 : i32
    return %arg0, %arg2 : i32, i32
  }
  func.func @transform_1(%arg0: i32, %arg1: i32, %arg2: i32) -> (i32, i32) {
    %c0_i32 = arith.constant 0 : i32
    return %arg2, %arg1 : i32, i32
  }
  func.func @transform_2(%arg0: i32, %arg1: i32, %arg2: i32) -> (i32, i32) {
    %c0_i32 = arith.constant 0 : i32
    %c0_i32_0 = arith.constant 0 : i32
    return %c0_i32, %arg1 : i32, i32
  }
  func.func @transform_3(%arg0: i32, %arg1: i32, %arg2: i32) -> (i32, i32) {
    %c0_i32 = arith.constant 0 : i32
    return %arg0, %arg1 : i32, i32
  }
}

module attributes {stable_mosaic.version = 11 : i64} {
  func.func @_bn_stats_kernel(%arg0: i32, %arg1: memref<8x512xf32, #tpu.memory_space<vmem>>, %arg2: memref<1x512xf32, #tpu.memory_space<vmem>>, %arg3: memref<1x512xf32, #tpu.memory_space<vmem>>) attributes {dimension_semantics = [#tpu.dimension_semantics<arbitrary>], iteration_bounds = array<i64: 1>, scalar_prefetch = 0 : i64, scratch_operands = 0 : i64, tpu.core_type = #tpu.core_type<tc>, window_params = [{transform_indices = @transform_0, window_bounds = array<i64: 8, 512>}, {pipeline_mode = #tpu.pipeline_mode<synchronous>, transform_indices = @transform_1, window_bounds = array<i64: 1, 512>}, {pipeline_mode = #tpu.pipeline_mode<synchronous>, transform_indices = @transform_2, window_bounds = array<i64: 1, 512>}]} {
    %c0_i32 = arith.constant 0 : i32
    %0 = arith.cmpi eq, %arg0, %c0_i32 : i32
    %1 = arith.extui %0 : i1 to i32
    %c0_i32_0 = arith.constant 0 : i32
    %2 = arith.cmpi ne, %1, %c0_i32_0 : i32
    scf.if %2 {
      %cst_11 = arith.constant 0.000000e+00 : f32
      %15 = vector.broadcast %cst_11 : f32 to vector<1x512xf32>
      %c0_12 = arith.constant 0 : index
      %c0_13 = arith.constant 0 : index
      %16 = vector.load %arg2[%c0_12, %c0_13] : memref<1x512xf32, #tpu.memory_space<vmem>>, vector<1x512xf32>
      tpu.vector_store %arg2[%c0_12, %c0_13], %15 {strides = array<i32>} : memref<1x512xf32, #tpu.memory_space<vmem>>, vector<1x512xf32>,
      %cst_14 = arith.constant 0.000000e+00 : f32
      %17 = vector.broadcast %cst_14 : f32 to vector<1x512xf32>
      %c0_15 = arith.constant 0 : index
      %c0_16 = arith.constant 0 : index
      %18 = vector.load %arg3[%c0_15, %c0_16] : memref<1x512xf32, #tpu.memory_space<vmem>>, vector<1x512xf32>
      tpu.vector_store %arg3[%c0_15, %c0_16], %17 {strides = array<i32>} : memref<1x512xf32, #tpu.memory_space<vmem>>, vector<1x512xf32>,
    } else {
    }
    %c0 = arith.constant 0 : index
    %c0_1 = arith.constant 0 : index
    %3 = vector.load %arg1[%c0, %c0_1] : memref<8x512xf32, #tpu.memory_space<vmem>>, vector<8x512xf32>
    %c0_2 = arith.constant 0 : index
    %c0_3 = arith.constant 0 : index
    %4 = vector.load %arg2[%c0_2, %c0_3] : memref<1x512xf32, #tpu.memory_space<vmem>>, vector<1x512xf32>
    %cst = arith.constant dense<0.000000e+00> : vector<512xf32>
    %5 = vector.multi_reduction <add>, %3, %cst [0] : vector<8x512xf32> to vector<512xf32>
    %6 = vector.shape_cast %5 : vector<512xf32> to vector<1x512xf32>
    %7 = arith.addf %4, %6 : vector<1x512xf32>
    %c0_4 = arith.constant 0 : index
    %c0_5 = arith.constant 0 : index
    %8 = vector.load %arg2[%c0_4, %c0_5] : memref<1x512xf32, #tpu.memory_space<vmem>>, vector<1x512xf32>
    tpu.vector_store %arg2[%c0_4, %c0_5], %7 {strides = array<i32>} : memref<1x512xf32, #tpu.memory_space<vmem>>, vector<1x512xf32>,
    %c0_6 = arith.constant 0 : index
    %c0_7 = arith.constant 0 : index
    %9 = vector.load %arg3[%c0_6, %c0_7] : memref<1x512xf32, #tpu.memory_space<vmem>>, vector<1x512xf32>
    %10 = arith.mulf %3, %3 : vector<8x512xf32>
    %cst_8 = arith.constant dense<0.000000e+00> : vector<512xf32>
    %11 = vector.multi_reduction <add>, %10, %cst_8 [0] : vector<8x512xf32> to vector<512xf32>
    %12 = vector.shape_cast %11 : vector<512xf32> to vector<1x512xf32>
    %13 = arith.addf %9, %12 : vector<1x512xf32>
    %c0_9 = arith.constant 0 : index
    %c0_10 = arith.constant 0 : index
    %14 = vector.load %arg3[%c0_9, %c0_10] : memref<1x512xf32, #tpu.memory_space<vmem>>, vector<1x512xf32>
    tpu.vector_store %arg3[%c0_9, %c0_10], %13 {strides = array<i32>} : memref<1x512xf32, #tpu.memory_space<vmem>>, vector<1x512xf32>,
    return
  }
  func.func @transform_0(%arg0: i32) -> (i32, i32) {
    %c0_i32 = arith.constant 0 : i32
    %c0_i32_0 = arith.constant 0 : i32
    return %arg0, %c0_i32 : i32, i32
  }
  func.func @transform_1(%arg0: i32) -> (i32, i32) {
    %c0_i32 = arith.constant 0 : i32
    %c0_i32_0 = arith.constant 0 : i32
    %c0_i32_1 = arith.constant 0 : i32
    return %c0_i32, %c0_i32_0 : i32, i32
  }
  func.func @transform_2(%arg0: i32) -> (i32, i32) {
    %c0_i32 = arith.constant 0 : i32
    %c0_i32_0 = arith.constant 0 : i32
    %c0_i32_1 = arith.constant 0 : i32
    return %c0_i32, %c0_i32_0 : i32, i32
  }
}

module attributes {stable_mosaic.version = 11 : i64} {
  func.func @_bn_apply_kernel(%arg0: i32, %arg1: memref<8x512xf32, #tpu.memory_space<vmem>>, %arg2: memref<1x512xf32, #tpu.memory_space<vmem>>, %arg3: memref<1x512xf32, #tpu.memory_space<vmem>>, %arg4: memref<8x512xf32, #tpu.memory_space<vmem>>) attributes {dimension_semantics = [#tpu.dimension_semantics<parallel>], iteration_bounds = array<i64: 1>, scalar_prefetch = 0 : i64, scratch_operands = 0 : i64, tpu.core_type = #tpu.core_type<tc>, window_params = [{transform_indices = @transform_0, window_bounds = array<i64: 8, 512>}, {pipeline_mode = #tpu.pipeline_mode<synchronous>, transform_indices = @transform_1, window_bounds = array<i64: 1, 512>}, {pipeline_mode = #tpu.pipeline_mode<synchronous>, transform_indices = @transform_2, window_bounds = array<i64: 1, 512>}, {transform_indices = @transform_3, window_bounds = array<i64: 8, 512>}]} {
    %c0 = arith.constant 0 : index
    %c0_0 = arith.constant 0 : index
    %0 = vector.load %arg1[%c0, %c0_0] : memref<8x512xf32, #tpu.memory_space<vmem>>, vector<8x512xf32>
    %c0_1 = arith.constant 0 : index
    %c0_2 = arith.constant 0 : index
    %1 = vector.load %arg2[%c0_1, %c0_2] : memref<1x512xf32, #tpu.memory_space<vmem>>, vector<1x512xf32>
    %2 = vector.broadcast %1 : vector<1x512xf32> to vector<8x512xf32>
    %3 = arith.mulf %0, %2 : vector<8x512xf32>
    %c0_3 = arith.constant 0 : index
    %c0_4 = arith.constant 0 : index
    %4 = vector.load %arg3[%c0_3, %c0_4] : memref<1x512xf32, #tpu.memory_space<vmem>>, vector<1x512xf32>
    %5 = vector.broadcast %4 : vector<1x512xf32> to vector<8x512xf32>
    %6 = arith.addf %3, %5 : vector<8x512xf32>
    %cst = arith.constant 0.000000e+00 : f32
    %7 = vector.broadcast %cst : f32 to vector<8x512xf32>
    %8 = arith.maximumf %6, %7 : vector<8x512xf32>
    %c0_5 = arith.constant 0 : index
    %c0_6 = arith.constant 0 : index
    %9 = vector.load %arg4[%c0_5, %c0_6] : memref<8x512xf32, #tpu.memory_space<vmem>>, vector<8x512xf32>
    tpu.vector_store %arg4[%c0_5, %c0_6], %8 {strides = array<i32>} : memref<8x512xf32, #tpu.memory_space<vmem>>, vector<8x512xf32>,
    return
  }
  func.func @transform_0(%arg0: i32) -> (i32, i32) {
    %c0_i32 = arith.constant 0 : i32
    %c0_i32_0 = arith.constant 0 : i32
    return %arg0, %c0_i32 : i32, i32
  }
  func.func @transform_1(%arg0: i32) -> (i32, i32) {
    %c0_i32 = arith.constant 0 : i32
    %c0_i32_0 = arith.constant 0 : i32
    %c0_i32_1 = arith.constant 0 : i32
    return %c0_i32, %c0_i32_0 : i32, i32
  }
  func.func @transform_2(%arg0: i32) -> (i32, i32) {
    %c0_i32 = arith.constant 0 : i32
    %c0_i32_0 = arith.constant 0 : i32
    %c0_i32_1 = arith.constant 0 : i32
    return %c0_i32, %c0_i32_0 : i32, i32
  }
  func.func @transform_3(%arg0: i32) -> (i32, i32) {
    %c0_i32 = arith.constant 0 : i32
    %c0_i32_0 = arith.constant 0 : i32
    return %arg0, %c0_i32 : i32, i32
  }
}

module attributes {stable_mosaic.version = 11 : i64} {
  func.func @_matmul_kernel(%arg0: i32, %arg1: i32, %arg2: i32, %arg3: memref<8x512xbf16, #tpu.memory_space<vmem>>, %arg4: memref<512x128xbf16, #tpu.memory_space<vmem>>, %arg5: memref<1x128xf32, #tpu.memory_space<vmem>>, %arg6: memref<8x128xf32, #tpu.memory_space<vmem>>, %arg7: memref<8x128xf32, #tpu.memory_space<vmem>>) attributes {dimension_semantics = [#tpu.dimension_semantics<parallel>, #tpu.dimension_semantics<parallel>, #tpu.dimension_semantics<arbitrary>], iteration_bounds = array<i64: 1, 1, 1>, scalar_prefetch = 0 : i64, scratch_operands = 1 : i64, tpu.core_type = #tpu.core_type<tc>, window_params = [{transform_indices = @transform_0, window_bounds = array<i64: 8, 512>}, {transform_indices = @transform_1, window_bounds = array<i64: 512, 128>}, {transform_indices = @transform_2, window_bounds = array<i64: 1, 128>}, {transform_indices = @transform_3, window_bounds = array<i64: 8, 128>}]} {
    %c0_i32 = arith.constant 0 : i32
    %0 = arith.cmpi eq, %arg2, %c0_i32 : i32
    %1 = arith.extui %0 : i1 to i32
    %c0_i32_0 = arith.constant 0 : i32
    %2 = arith.cmpi ne, %1, %c0_i32_0 : i32
    scf.if %2 {
      %cst_10 = arith.constant 0.000000e+00 : f32
      %12 = vector.broadcast %cst_10 : f32 to vector<8x128xf32>
      %c0_11 = arith.constant 0 : index
      %c0_12 = arith.constant 0 : index
      %13 = vector.load %arg7[%c0_11, %c0_12] : memref<8x128xf32, #tpu.memory_space<vmem>>, vector<8x128xf32>
      tpu.vector_store %arg7[%c0_11, %c0_12], %12 {strides = array<i32>} : memref<8x128xf32, #tpu.memory_space<vmem>>, vector<8x128xf32>,
    } else {
    }
    %c0 = arith.constant 0 : index
    %c0_1 = arith.constant 0 : index
    %3 = vector.load %arg7[%c0, %c0_1] : memref<8x128xf32, #tpu.memory_space<vmem>>, vector<8x128xf32>
    %c0_2 = arith.constant 0 : index
    %c0_3 = arith.constant 0 : index
    %4 = vector.load %arg3[%c0_2, %c0_3] : memref<8x512xbf16, #tpu.memory_space<vmem>>, vector<8x512xbf16>
    %c0_4 = arith.constant 0 : index
    %c0_5 = arith.constant 0 : index
    %5 = vector.load %arg4[%c0_4, %c0_5] : memref<512x128xbf16, #tpu.memory_space<vmem>>, vector<512x128xbf16>
    %cst = arith.constant dense<0.000000e+00> : vector<8x128xf32>
    %6 = tpu.matmul %4, %5, %cst {dimension_numbers = #tpu.dot_dimension_numbers<[1], [0], [0], [1], [0, 0, 1, 1], [], []>} : vector<8x512xbf16>, vector<512x128xbf16>, vector<8x128xf32> -> vector<8x128xf32>
    %7 = arith.addf %3, %6 : vector<8x128xf32>
    %c0_6 = arith.constant 0 : index
    %c0_7 = arith.constant 0 : index
    %8 = vector.load %arg7[%c0_6, %c0_7] : memref<8x128xf32, #tpu.memory_space<vmem>>, vector<8x128xf32>
    tpu.vector_store %arg7[%c0_6, %c0_7], %7 {strides = array<i32>} : memref<8x128xf32, #tpu.memory_space<vmem>>, vector<8x128xf32>,
    %c0_i32_8 = arith.constant 0 : i32
    %9 = arith.cmpi eq, %arg2, %c0_i32_8 : i32
    %10 = arith.extui %9 : i1 to i32
    %c0_i32_9 = arith.constant 0 : i32
    %11 = arith.cmpi ne, %10, %c0_i32_9 : i32
    scf.if %11 {
      %c0_10 = arith.constant 0 : index
      %c0_11 = arith.constant 0 : index
      %12 = vector.load %arg7[%c0_10, %c0_11] : memref<8x128xf32, #tpu.memory_space<vmem>>, vector<8x128xf32>
      %c0_12 = arith.constant 0 : index
      %c0_13 = arith.constant 0 : index
      %13 = vector.load %arg5[%c0_12, %c0_13] : memref<1x128xf32, #tpu.memory_space<vmem>>, vector<1x128xf32>
      %14 = vector.broadcast %13 : vector<1x128xf32> to vector<8x128xf32>
      %15 = arith.addf %12, %14 : vector<8x128xf32>
      %c0_14 = arith.constant 0 : index
      %c0_15 = arith.constant 0 : index
      %16 = vector.load %arg6[%c0_14, %c0_15] : memref<8x128xf32, #tpu.memory_space<vmem>>, vector<8x128xf32>
      tpu.vector_store %arg6[%c0_14, %c0_15], %15 {strides = array<i32>} : memref<8x128xf32, #tpu.memory_space<vmem>>, vector<8x128xf32>,
    } else {
    }
    return
  }
  func.func @transform_0(%arg0: i32, %arg1: i32, %arg2: i32) -> (i32, i32) {
    %c0_i32 = arith.constant 0 : i32
    return %arg0, %arg2 : i32, i32
  }
  func.func @transform_1(%arg0: i32, %arg1: i32, %arg2: i32) -> (i32, i32) {
    %c0_i32 = arith.constant 0 : i32
    return %arg2, %arg1 : i32, i32
  }
  func.func @transform_2(%arg0: i32, %arg1: i32, %arg2: i32) -> (i32, i32) {
    %c0_i32 = arith.constant 0 : i32
    %c0_i32_0 = arith.constant 0 : i32
    return %c0_i32, %arg1 : i32, i32
  }
  func.func @transform_3(%arg0: i32, %arg1: i32, %arg2: i32) -> (i32, i32) {
    %c0_i32 = arith.constant 0 : i32
    return %arg0, %arg1 : i32, i32
  }
}

</mosaic_0001>

<bundles_post_ra>
// kernel: dtn_forward.14
= control target key start
LH: loop header
LB: loop body
LE: loop exit
PB: predicated region body
PF: predicated region fallthrough
CT: control target
= control target key end

     0   :  { %v297_v0 = vmov 0.0   ;;  %s523_s0 = inlined_call_operand.vmem [shape: f32[512,128], index: 0, kind: input, shape index: {}]   ;;  %s524_s1 = inlined_call_operand.vmem [shape: f32[1,128], index: 1, kind: output, shape index: {0}]   ;;  %s525_s2 = inlined_call_operand.vmem [shape: f32[1,128], index: 2, kind: output, shape index: {1}]  }
   0x1   :  { %14 = vst [vmem:[%s524_s1] sm:$0x1] %v297_v0  ;;  %15 = vst [vmem:[%s525_s2] sm:$0x1] %v297_v0  ;;  %v16_v1 = vld [vmem:[%s523_s0] sm:$0xff]  ;;  %v17_v2 = vld [vmem:[%s523_s0 + $0x8] sm:$0xff] }
   0x2   :  { %v18_v3 = vld [vmem:[%s523_s0 + $0x10] sm:$0xff]  ;;  %v19_v4 = vld [vmem:[%s523_s0 + $0x18] sm:$0xff]  ;;  %v81_v5 = vadd.f32 %v17_v2, %v16_v1  ;;  %v153_v6 = vmul.f32 %v16_v1, %v16_v1  ;;  %v154_v7 = vmul.f32 %v17_v2, %v17_v2  ;;  %v20_v9 = vld [vmem:[%s523_s0 + $0x20] sm:$0xff] }
   0x3   :  { %v155_v8 = vmul.f32 %v18_v3, %v18_v3  ;;  %v156_v11 = vmul.f32 %v19_v4, %v19_v4  ;;  %v21_v13 = vld [vmem:[%s523_s0 + $0x28] sm:$0xff]  ;;  %v157_v15 = vmul.f32 %v20_v9, %v20_v9  ;;  %v22_v17 = vld [vmem:[%s523_s0 + $0x30] sm:$0xff]  ;;  %v23_v21 = vld [vmem:[%s523_s0 + $0x38] sm:$0xff] }
   0x4   :  { %v82_v10 = vadd.f32 %v81_v5, %v18_v3  ;;  %v217_v12 = vadd.f32 %v154_v7, %v153_v6  ;;  %v158_v19 = vmul.f32 %v21_v13, %v21_v13  ;;  %v159_v23 = vmul.f32 %v22_v17, %v22_v17  ;;  %v24_v25 = vld [vmem:[%s523_s0 + $0x40] sm:$0xff]  ;;  %v25_v29 = vld [vmem:[%s523_s0 + $0x48] sm:$0xff]  ;;  %v26_v33 = vld [vmem:[%s523_s0 + $0x50] sm:$0xff] }
   0x5   :  { %v160_v27 = vmul.f32 %v23_v21, %v23_v21  ;;  %v161_v31 = vmul.f32 %v24_v25, %v24_v25  ;;  %v162_v35 = vmul.f32 %v25_v29, %v25_v29  ;;  %v27_v37 = vld [vmem:[%s523_s0 + $0x58] sm:$0xff]  ;;  %v163_v39 = vmul.f32 %v26_v33, %v26_v33  ;;  %v28_v41 = vld [vmem:[%s523_s0 + $0x60] sm:$0xff]  ;;  %v29_v45 = vld [vmem:[%s523_s0 + $0x68] sm:$0xff] }
   0x6   :  { %v83_v14 = vadd.f32 %v82_v10, %v19_v4  ;;  %v218_v16 = vadd.f32 %v217_v12, %v155_v8  ;;  %v164_v43 = vmul.f32 %v27_v37, %v27_v37  ;;  %v165_v47 = vmul.f32 %v28_v41, %v28_v41  ;;  %v30_v49 = vld [vmem:[%s523_s0 + $0x70] sm:$0xff]  ;;  %v31_v53 = vld [vmem:[%s523_s0 + $0x78] sm:$0xff]  ;;  %v32_v57 = vld [vmem:[%s523_s0 + $0x80] sm:$0xff] }
   0x7   :  { %v166_v51 = vmul.f32 %v29_v45, %v29_v45  ;;  %v167_v55 = vmul.f32 %v30_v49, %v30_v49  ;;  %v168_v59 = vmul.f32 %v31_v53, %v31_v53  ;;  %v33_v61 = vld [vmem:[%s523_s0 + $0x88] sm:$0xff]  ;;  %v169_v63 = vmul.f32 %v32_v57, %v32_v57  ;;  %v34_v1 = vld [vmem:[%s523_s0 + $0x90] sm:$0xff]  ;;  %v35_v5 = vld [vmem:[%s523_s0 + $0x98] sm:$0xff] }
   0x8   :  { %v84_v18 = vadd.f32 %v83_v14, %v20_v9  ;;  %v219_v20 = vadd.f32 %v218_v16, %v156_v11  ;;  %v170_v3 = vmul.f32 %v33_v61, %v33_v61  ;;  %v171_v7 = vmul.f32 %v34_v1, %v34_v1  ;;  %v36_v9 = vld [vmem:[%s523_s0 + $0xa0] sm:$0xff] }
   0x9   :  { %v172_v11 = vmul.f32 %v35_v5, %v35_v5 }
   0xa   :  { %v85_v22 = vadd.f32 %v84_v18, %v21_v13  ;;  %v220_v24 = vadd.f32 %v219_v20, %v157_v15  ;;  %v37_v13 = vld [vmem:[%s523_s0 + $0xa8] sm:$0xff]  ;;  %v173_v15 = vmul.f32 %v36_v9, %v36_v9 }
   0xc   :  { %v86_v26 = vadd.f32 %v85_v22, %v22_v17  ;;  %v221_v28 = vadd.f32 %v220_v24, %v158_v19  ;;  %v38_v17 = vld [vmem:[%s523_s0 + $0xb0] sm:$0xff]  ;;  %v174_v19 = vmul.f32 %v37_v13, %v37_v13 }
   0xe   :  { %v87_v30 = vadd.f32 %v86_v26, %v23_v21  ;;  %v222_v32 = vadd.f32 %v221_v28, %v159_v23  ;;  %v39_v21 = vld [vmem:[%s523_s0 + $0xb8] sm:$0xff]  ;;  %v175_v23 = vmul.f32 %v38_v17, %v38_v17 }
  0x10   :  { %v88_v34 = vadd.f32 %v87_v30, %v24_v25  ;;  %v223_v36 = vadd.f32 %v222_v32, %v160_v27  ;;  %v40_v25 = vld [vmem:[%s523_s0 + $0xc0] sm:$0xff]  ;;  %v176_v27 = vmul.f32 %v39_v21, %v39_v21 }
  0x12   :  { %v89_v38 = vadd.f32 %v88_v34, %v25_v29  ;;  %v224_v40 = vadd.f32 %v223_v36, %v161_v31  ;;  %v41_v29 = vld [vmem:[%s523_s0 + $0xc8] sm:$0xff]  ;;  %v177_v31 = vmul.f32 %v40_v25, %v40_v25 }
  0x14   :  { %v90_v42 = vadd.f32 %v89_v38, %v26_v33  ;;  %v225_v44 = vadd.f32 %v224_v40, %v162_v35  ;;  %v42_v33 = vld [vmem:[%s523_s0 + $0xd0] sm:$0xff]  ;;  %v178_v35 = vmul.f32 %v41_v29, %v41_v29 }
  0x16   :  { %v91_v46 = vadd.f32 %v90_v42, %v27_v37  ;;  %v226_v48 = vadd.f32 %v225_v44, %v163_v39  ;;  %v43_v37 = vld [vmem:[%s523_s0 + $0xd8] sm:$0xff]  ;;  %v179_v39 = vmul.f32 %v42_v33, %v42_v33 }
  0x18   :  { %v92_v50 = vadd.f32 %v91_v46, %v28_v41  ;;  %v227_v52 = vadd.f32 %v226_v48, %v164_v43  ;;  %v44_v41 = vld [vmem:[%s523_s0 + $0xe0] sm:$0xff]  ;;  %v180_v43 = vmul.f32 %v43_v37, %v43_v37 }
  0x1a   :  { %v93_v54 = vadd.f32 %v92_v50, %v29_v45  ;;  %v228_v56 = vadd.f32 %v227_v52, %v165_v47  ;;  %v45_v45 = vld [vmem:[%s523_s0 + $0xe8] sm:$0xff]  ;;  %v181_v47 = vmul.f32 %v44_v41, %v44_v41 }
  0x1c   :  { %v94_v58 = vadd.f32 %v93_v54, %v30_v49  ;;  %v229_v60 = vadd.f32 %v228_v56, %v166_v51  ;;  %v46_v49 = vld [vmem:[%s523_s0 + $0xf0] sm:$0xff]  ;;  %v182_v51 = vmul.f32 %v45_v45, %v45_v45 }
  0x1e   :  { %v95_v62 = vadd.f32 %v94_v58, %v31_v53  ;;  %v230_v0 = vadd.f32 %v229_v60, %v167_v55  ;;  %v47_v53 = vld [vmem:[%s523_s0 + $0xf8] sm:$0xff]  ;;  %v183_v55 = vmul.f32 %v46_v49, %v46_v49 }
  0x20   :  { %v96_v2 = vadd.f32 %v95_v62, %v32_v57  ;;  %v231_v4 = vadd.f32 %v230_v0, %v168_v59  ;;  %v48_v57 = vld [vmem:[%s523_s0 + $0x100] sm:$0xff]  ;;  %v184_v59 = vmul.f32 %v47_v53, %v47_v53 }
  0x22   :  { %v97_v6 = vadd.f32 %v96_v2, %v33_v61  ;;  %v232_v8 = vadd.f32 %v231_v4, %v169_v63  ;;  %v49_v61 = vld [vmem:[%s523_s0 + $0x108] sm:$0xff]  ;;  %v185_v63 = vmul.f32 %v48_v57, %v48_v57 }
  0x24   :  { %v98_v10 = vadd.f32 %v97_v6, %v34_v1  ;;  %v233_v12 = vadd.f32 %v232_v8, %v170_v3  ;;  %v50_v1 = vld [vmem:[%s523_s0 + $0x110] sm:$0xff]  ;;  %v186_v3 = vmul.f32 %v49_v61, %v49_v61 }
  0x26   :  { %v99_v14 = vadd.f32 %v98_v10, %v35_v5  ;;  %v234_v16 = vadd.f32 %v233_v12, %v171_v7  ;;  %v51_v5 = vld [vmem:[%s523_s0 + $0x118] sm:$0xff]  ;;  %v187_v7 = vmul.f32 %v50_v1, %v50_v1 }
  0x28   :  { %v100_v18 = vadd.f32 %v99_v14, %v36_v9  ;;  %v235_v20 = vadd.f32 %v234_v16, %v172_v11  ;;  %v52_v9 = vld [vmem:[%s523_s0 + $0x120] sm:$0xff]  ;;  %v188_v11 = vmul.f32 %v51_v5, %v51_v5 }
  0x2a   :  { %v101_v22 = vadd.f32 %v100_v18, %v37_v13  ;;  %v236_v24 = vadd.f32 %v235_v20, %v173_v15  ;;  %v53_v13 = vld [vmem:[%s523_s0 + $0x128] sm:$0xff]  ;;  %v189_v15 = vmul.f32 %v52_v9, %v52_v9 }
  0x2c   :  { %v102_v26 = vadd.f32 %v101_v22, %v38_v17  ;;  %v237_v28 = vadd.f32 %v236_v24, %v174_v19  ;;  %v54_v17 = vld [vmem:[%s523_s0 + $0x130] sm:$0xff]  ;;  %v190_v19 = vmul.f32 %v53_v13, %v53_v13 }
  0x2e   :  { %v103_v30 = vadd.f32 %v102_v26, %v39_v21  ;;  %v238_v32 = vadd.f32 %v237_v28, %v175_v23  ;;  %v55_v21 = vld [vmem:[%s523_s0 + $0x138] sm:$0xff]  ;;  %v191_v23 = vmul.f32 %v54_v17, %v54_v17 }
  0x30   :  { %v104_v34 = vadd.f32 %v103_v30, %v40_v25  ;;  %v239_v36 = vadd.f32 %v238_v32, %v176_v27  ;;  %v56_v25 = vld [vmem:[%s523_s0 + $0x140] sm:$0xff]  ;;  %v192_v27 = vmul.f32 %v55_v21, %v55_v21 }
  0x32   :  { %v105_v38 = vadd.f32 %v104_v34, %v41_v29  ;;  %v240_v40 = vadd.f32 %v239_v36, %v177_v31  ;;  %v57_v29 = vld [vmem:[%s523_s0 + $0x148] sm:$0xff]  ;;  %v193_v31 = vmul.f32 %v56_v25, %v56_v25 }
  0x34   :  { %v106_v42 = vadd.f32 %v105_v38, %v42_v33  ;;  %v241_v44 = vadd.f32 %v240_v40, %v178_v35  ;;  %v58_v33 = vld [vmem:[%s523_s0 + $0x150] sm:$0xff]  ;;  %v194_v35 = vmul.f32 %v57_v29, %v57_v29 }
  0x36   :  { %v107_v46 = vadd.f32 %v106_v42, %v43_v37  ;;  %v242_v48 = vadd.f32 %v241_v44, %v179_v39  ;;  %v59_v37 = vld [vmem:[%s523_s0 + $0x158] sm:$0xff]  ;;  %v195_v39 = vmul.f32 %v58_v33, %v58_v33 }
  0x38   :  { %v108_v50 = vadd.f32 %v107_v46, %v44_v41  ;;  %v243_v52 = vadd.f32 %v242_v48, %v180_v43  ;;  %v60_v41 = vld [vmem:[%s523_s0 + $0x160] sm:$0xff]  ;;  %v196_v43 = vmul.f32 %v59_v37, %v59_v37 }
  0x3a   :  { %v109_v54 = vadd.f32 %v108_v50, %v45_v45  ;;  %v244_v56 = vadd.f32 %v243_v52, %v181_v47  ;;  %v61_v45 = vld [vmem:[%s523_s0 + $0x168] sm:$0xff]  ;;  %v197_v47 = vmul.f32 %v60_v41, %v60_v41 }
  0x3c   :  { %v110_v58 = vadd.f32 %v109_v54, %v46_v49  ;;  %v245_v60 = vadd.f32 %v244_v56, %v182_v51  ;;  %v62_v49 = vld [vmem:[%s523_s0 + $0x170] sm:$0xff]  ;;  %v198_v51 = vmul.f32 %v61_v45, %v61_v45 }
  0x3e   :  { %v111_v62 = vadd.f32 %v110_v58, %v47_v53  ;;  %v246_v0 = vadd.f32 %v245_v60, %v183_v55  ;;  %v63_v53 = vld [vmem:[%s523_s0 + $0x178] sm:$0xff]  ;;  %v199_v55 = vmul.f32 %v62_v49, %v62_v49 }
  0x40   :  { %v112_v2 = vadd.f32 %v111_v62, %v48_v57  ;;  %v247_v4 = vadd.f32 %v246_v0, %v184_v59  ;;  %v64_v57 = vld [vmem:[%s523_s0 + $0x180] sm:$0xff]  ;;  %v200_v59 = vmul.f32 %v63_v53, %v63_v53 }
  0x42   :  { %v113_v6 = vadd.f32 %v112_v2, %v49_v61  ;;  %v248_v8 = vadd.f32 %v247_v4, %v185_v63  ;;  %v65_v61 = vld [vmem:[%s523_s0 + $0x188] sm:$0xff]  ;;  %v201_v63 = vmul.f32 %v64_v57, %v64_v57 }
  0x44   :  { %v114_v10 = vadd.f32 %v113_v6, %v50_v1  ;;  %v249_v12 = vadd.f32 %v248_v8, %v186_v3  ;;  %v66_v1 = vld [vmem:[%s523_s0 + $0x190] sm:$0xff]  ;;  %v202_v3 = vmul.f32 %v65_v61, %v65_v61 }
  0x46   :  { %v115_v14 = vadd.f32 %v114_v10, %v51_v5  ;;  %v250_v16 = vadd.f32 %v249_v12, %v187_v7  ;;  %v67_v5 = vld [vmem:[%s523_s0 + $0x198] sm:$0xff]  ;;  %v203_v7 = vmul.f32 %v66_v1, %v66_v1 }
  0x48   :  { %v116_v18 = vadd.f32 %v115_v14, %v52_v9  ;;  %v251_v20 = vadd.f32 %v250_v16, %v188_v11  ;;  %v68_v9 = vld [vmem:[%s523_s0 + $0x1a0] sm:$0xff]  ;;  %v204_v11 = vmul.f32 %v67_v5, %v67_v5 }
  0x4a   :  { %v117_v22 = vadd.f32 %v116_v18, %v53_v13  ;;  %v252_v24 = vadd.f32 %v251_v20, %v189_v15  ;;  %v69_v13 = vld [vmem:[%s523_s0 + $0x1a8] sm:$0xff]  ;;  %v205_v15 = vmul.f32 %v68_v9, %v68_v9 }
  0x4c   :  { %v118_v26 = vadd.f32 %v117_v22, %v54_v17  ;;  %v253_v28 = vadd.f32 %v252_v24, %v190_v19  ;;  %v70_v17 = vld [vmem:[%s523_s0 + $0x1b0] sm:$0xff]  ;;  %v206_v19 = vmul.f32 %v69_v13, %v69_v13 }
  0x4e   :  { %v119_v30 = vadd.f32 %v118_v26, %v55_v21  ;;  %v254_v32 = vadd.f32 %v253_v28, %v191_v23  ;;  %v71_v21 = vld [vmem:[%s523_s0 + $0x1b8] sm:$0xff]  ;;  %v207_v23 = vmul.f32 %v70_v17, %v70_v17 }
  0x50   :  { %v120_v34 = vadd.f32 %v119_v30, %v56_v25  ;;  %v255_v36 = vadd.f32 %v254_v32, %v192_v27  ;;  %v72_v25 = vld [vmem:[%s523_s0 + $0x1c0] sm:$0xff]  ;;  %v208_v27 = vmul.f32 %v71_v21, %v71_v21 }
  0x52   :  { %v121_v38 = vadd.f32 %v120_v34, %v57_v29  ;;  %v256_v40 = vadd.f32 %v255_v36, %v193_v31  ;;  %v73_v29 = vld [vmem:[%s523_s0 + $0x1c8] sm:$0xff]  ;;  %v209_v31 = vmul.f32 %v72_v25, %v72_v25 }
  0x54   :  { %v122_v42 = vadd.f32 %v121_v38, %v58_v33  ;;  %v257_v44 = vadd.f32 %v256_v40, %v194_v35  ;;  %v74_v33 = vld [vmem:[%s523_s0 + $0x1d0] sm:$0xff]  ;;  %v210_v35 = vmul.f32 %v73_v29, %v73_v29 }
  0x56   :  { %v123_v46 = vadd.f32 %v122_v42, %v59_v37  ;;  %v258_v48 = vadd.f32 %v257_v44, %v195_v39  ;;  %v75_v37 = vld [vmem:[%s523_s0 + $0x1d8] sm:$0xff]  ;;  %v211_v39 = vmul.f32 %v74_v33, %v74_v33 }
  0x58   :  { %v124_v50 = vadd.f32 %v123_v46, %v60_v41  ;;  %v259_v52 = vadd.f32 %v258_v48, %v196_v43  ;;  %v76_v41 = vld [vmem:[%s523_s0 + $0x1e0] sm:$0xff]  ;;  %v212_v43 = vmul.f32 %v75_v37, %v75_v37 }
  0x5a   :  { %v125_v54 = vadd.f32 %v124_v50, %v61_v45  ;;  %v260_v56 = vadd.f32 %v259_v52, %v197_v47  ;;  %v77_v45 = vld [vmem:[%s523_s0 + $0x1e8] sm:$0xff]  ;;  %v213_v47 = vmul.f32 %v76_v41, %v76_v41 }
  0x5c   :  { %v126_v58 = vadd.f32 %v125_v54, %v62_v49  ;;  %v261_v60 = vadd.f32 %v260_v56, %v198_v51  ;;  %v78_v49 = vld [vmem:[%s523_s0 + $0x1f0] sm:$0xff]  ;;  %v214_v51 = vmul.f32 %v77_v45, %v77_v45 }
  0x5e   :  { %v127_v62 = vadd.f32 %v126_v58, %v63_v53  ;;  %v262_v0 = vadd.f32 %v261_v60, %v199_v55  ;;  %v79_v53 = vld [vmem:[%s523_s0 + $0x1f8] sm:$0xff]  ;;  %v215_v55 = vmul.f32 %v78_v49, %v78_v49 }
  0x5f   :  { %v216_v58 = vmul.f32 %v79_v53, %v79_v53 }
  0x60   :  { %v128_v2 = vadd.f32 %v127_v62, %v64_v57  ;;  %v263_v4 = vadd.f32 %v262_v0, %v200_v59 }
  0x62   :  { %v129_v6 = vadd.f32 %v128_v2, %v65_v61  ;;  %v264_v8 = vadd.f32 %v263_v4, %v201_v63 }
  0x64   :  { %v130_v10 = vadd.f32 %v129_v6, %v66_v1  ;;  %v265_v12 = vadd.f32 %v264_v8, %v202_v3 }
  0x66   :  { %v131_v14 = vadd.f32 %v130_v10, %v67_v5  ;;  %v266_v16 = vadd.f32 %v265_v12, %v203_v7  ;;  %v80_v7 = vld [vmem:[%s524_s1] sm:$0x1] }
  0x67   :  { %v152_v12 = vld [vmem:[%s525_s2] sm:$0x1] }
  0x68   :  { %v132_v18 = vadd.f32 %v131_v14, %v68_v9  ;;  %v267_v20 = vadd.f32 %v266_v16, %v204_v11 }
  0x6a   :  { %v133_v22 = vadd.f32 %v132_v18, %v69_v13  ;;  %v268_v24 = vadd.f32 %v267_v20, %v205_v15 }
  0x6c   :  { %v134_v26 = vadd.f32 %v133_v22, %v70_v17  ;;  %v269_v28 = vadd.f32 %v268_v24, %v206_v19 }
  0x6e   :  { %v135_v30 = vadd.f32 %v134_v26, %v71_v21  ;;  %v270_v32 = vadd.f32 %v269_v28, %v207_v23 }
  0x70   :  { %v136_v34 = vadd.f32 %v135_v30, %v72_v25  ;;  %v271_v36 = vadd.f32 %v270_v32, %v208_v27 }
  0x72   :  { %v137_v38 = vadd.f32 %v136_v34, %v73_v29  ;;  %v272_v40 = vadd.f32 %v271_v36, %v209_v31 }
  0x74   :  { %v138_v42 = vadd.f32 %v137_v38, %v74_v33  ;;  %v273_v44 = vadd.f32 %v272_v40, %v210_v35 }
  0x76   :  { %v139_v46 = vadd.f32 %v138_v42, %v75_v37  ;;  %v274_v48 = vadd.f32 %v273_v44, %v211_v39 }
  0x78   :  { %v140_v50 = vadd.f32 %v139_v46, %v76_v41  ;;  %v275_v52 = vadd.f32 %v274_v48, %v212_v43 }
  0x7a   :  { %v141_v54 = vadd.f32 %v140_v50, %v77_v45  ;;  %v276_v56 = vadd.f32 %v275_v52, %v213_v47 }
  0x7c   :  { %v142_v57 = vadd.f32 %v141_v54, %v78_v49  ;;  %v277_v59 = vadd.f32 %v276_v56, %v214_v51 }
  0x7e   :  { %v143_v60 = vadd.f32 %v142_v57, %v79_v53  ;;  %v278_v61 = vadd.f32 %v277_v59, %v215_v55 }
  0x80   :  { %v144_v62 = vrot.slane %v143_v60, 4  ;;  %v279_v63 = vadd.f32 %v278_v61, %v216_v58 }
  0x82   :  { %v145_v0 = vadd.f32 %v144_v62, %v143_v60  ;;  %v280_v1 = vrot.slane %v279_v63, 4 }
  0x84   :  { %v146_v2 = vrot.slane %v145_v0, 2  ;;  %v281_v3 = vadd.f32 %v280_v1, %v279_v63 }
  0x86   :  { %v147_v4 = vadd.f32 %v146_v2, %v145_v0  ;;  %v282_v5 = vrot.slane %v281_v3, 2 }
  0x88   :  { %v148_v6 = vrot.slane %v147_v4, 1  ;;  %v283_v8 = vadd.f32 %v282_v5, %v281_v3 }
  0x8a   :  { %v149_v9 = vadd.f32 %v148_v6, %v147_v4  ;;  %v284_v10 = vrot.slane %v283_v8, 1 }
  0x8c   :  { %v150_v11 = vadd.f32 %v149_v9, %v80_v7  ;;  %v285_v13 = vadd.f32 %v284_v10, %v283_v8 }
  0x8e   :  { %151 = vst [vmem:[%s524_s1] sm:$0x1] %v150_v11  ;;  %v286_v14 = vadd.f32 %v285_v13, %v152_v12 }
  0x90   :  { %287 = vst [vmem:[%s525_s2] sm:$0x1] %v286_v14 }

// kernel: dtn_forward.13
= control target key start
LH: loop header
LB: loop body
LE: loop exit
PB: predicated region body
PF: predicated region fallthrough
CT: control target
= control target key end

     0   :  { %s1708_s1 = inlined_call_operand.vmem [shape: bf16[128,128], index: 1, kind: input, shape index: {}]   ;;  %s1709_s0 = inlined_call_operand.vmem [shape: bf16[512,128], index: 0, kind: input, shape index: {}]   ;;  %s1710_s2 = inlined_call_operand.vmem [shape: f32[1,128], index: 2, kind: input, shape index: {}]   ;;  %s1711_s3 = inlined_call_operand.vmem [shape: f32[512,128], index: 3, kind: output, shape index: {}]  }
   0x1   :  { %v1267_v0 = vld [vmem:[%s1708_s1] sm:$0xff]   ;;  %v1268_v1 = vld [vmem:[%s1708_s1 + $0x8] sm:$0xff]   ;;  %v1269_v2 = vld [vmem:[%s1708_s1 + $0x10] sm:$0xff]  }
   0x2   :  { %1171 = vmatprep.subr.bf16.mxu0 %v1267_v0  ;;  %1251 = vmatprep.subr.bf16.mxu1 %v1267_v0  ;;  %v1270_v3 = vld [vmem:[%s1708_s1 + $0x18] sm:$0xff]   ;;  %v1275_v4 = vld [vmem:[%s1709_s0] sm:$0xff]   ;;  %v1272_v7 = vld [vmem:[%s1708_s1 + $0x28] sm:$0xff]  }
   0x3   :  { %1172 = vmatpush3.bf16.msra.mxu0 %v1267_v0  ;;  %1259 = vmatpush3.bf16.msra.mxu1 %v1267_v0  ;;  %v1276_v5 = vld [vmem:[%s1709_s0 + $0x80] sm:$0xff]   ;;  %v1273_v8 = vld [vmem:[%s1708_s1 + $0x30] sm:$0xff]   ;;  %v1274_v9 = vld [vmem:[%s1708_s1 + $0x38] sm:$0xff]  }
   0x4   :  { %1173 = vmatprep.subr.bf16.mxu0 %v1268_v1  ;;  %1252 = vmatprep.subr.bf16.mxu1 %v1268_v1  ;;  %v1271_v6 = vld [vmem:[%s1708_s1 + $0x20] sm:$0xff]   ;;  %v1277_v10 = vld [vmem:[%s1709_s0 + $0x8] sm:$0xff]   ;;  %v1279_v12 = vld [vmem:[%s1709_s0 + $0x10] sm:$0xff]  }
   0x5   :  { %1187 = vmatprep.mubr.bf16.mxu0 %v1275_v4  ;;  %1219 = vmatprep.mubr.bf16.mxu1 %v1276_v5  ;;  %v1278_v11 = vld [vmem:[%s1709_s0 + $0x88] sm:$0xff]   ;;  %v1280_v13 = vld [vmem:[%s1709_s0 + $0x90] sm:$0xff]   ;;  %v1281_v14 = vld [vmem:[%s1709_s0 + $0x18] sm:$0xff]  }
   0x6   :  { %v1282_v15 = vld [vmem:[%s1709_s0 + $0x98] sm:$0xff]   ;;  %v1283_v16 = vld [vmem:[%s1709_s0 + $0x20] sm:$0xff]   ;;  %v1285_v18 = vld [vmem:[%s1709_s0 + $0x28] sm:$0xff]  }
   0x7   :  { %1174 = vmatpush3.bf16.msra.mxu0 %v1268_v1  ;;  %1260 = vmatpush3.bf16.msra.mxu1 %v1268_v1  ;;  %v1284_v17 = vld [vmem:[%s1709_s0 + $0xa0] sm:$0xff]   ;;  %v1286_v19 = vld [vmem:[%s1709_s0 + $0xa8] sm:$0xff]   ;;  %v1287_v20 = vld [vmem:[%s1709_s0 + $0x30] sm:$0xff]  }
   0x8   :  { %1175 = vmatprep.subr.bf16.mxu0 %v1269_v2  ;;  %1253 = vmatprep.subr.bf16.mxu1 %v1269_v2  ;;  %v1288_v21 = vld [vmem:[%s1709_s0 + $0xb0] sm:$0xff]   ;;  %v1289_v22 = vld [vmem:[%s1709_s0 + $0x38] sm:$0xff]   ;;  %v1291_v24 = vld [vmem:[%s1709_s0 + $0x40] sm:$0xff]  }
   0x9   :  { %v1290_v23 = vld [vmem:[%s1709_s0 + $0xb8] sm:$0xff]   ;;  %v1292_v25 = vld [vmem:[%s1709_s0 + $0xc0] sm:$0xff]   ;;  %v1293_v26 = vld [vmem:[%s1709_s0 + $0x48] sm:$0xff]  }
   0xa   :  { %v1294_v27 = vld [vmem:[%s1709_s0 + $0xc8] sm:$0xff]   ;;  %v1295_v28 = vld [vmem:[%s1709_s0 + $0x50] sm:$0xff]   ;;  %v1297_v30 = vld [vmem:[%s1709_s0 + $0x58] sm:$0xff]  }
   0xb   :  { %1176 = vmatpush3.bf16.msra.mxu0 %v1269_v2  ;;  %1261 = vmatpush3.bf16.msra.mxu1 %v1269_v2  ;;  %v1296_v29 = vld [vmem:[%s1709_s0 + $0xd0] sm:$0xff]   ;;  %v1298_v31 = vld [vmem:[%s1709_s0 + $0xd8] sm:$0xff]   ;;  %v1299_v32 = vld [vmem:[%s1709_s0 + $0x60] sm:$0xff]  }
   0xc   :  { %1177 = vmatprep.subr.bf16.mxu0 %v1270_v3  ;;  %1254 = vmatprep.subr.bf16.mxu1 %v1270_v3  ;;  %v1300_v33 = vld [vmem:[%s1709_s0 + $0xe0] sm:$0xff]   ;;  %v1301_v34 = vld [vmem:[%s1709_s0 + $0x68] sm:$0xff]   ;;  %v1303_v36 = vld [vmem:[%s1709_s0 + $0x70] sm:$0xff]  }
   0xd   :  { %v1302_v35 = vld [vmem:[%s1709_s0 + $0xe8] sm:$0xff]   ;;  %v1304_v37 = vld [vmem:[%s1709_s0 + $0xf0] sm:$0xff]   ;;  %v1305_v38 = vld [vmem:[%s1709_s0 + $0x78] sm:$0xff]  }
   0xe   :  { %v1306_v39 = vld [vmem:[%s1709_s0 + $0xf8] sm:$0xff]   ;;  %v1450_v40 = vld [vmem:[%s1710_s2] ss:$0 sm:$0xff] }
   0xf   :  { %1178 = vmatpush3.bf16.msra.mxu0 %v1270_v3  ;;  %1262 = vmatpush3.bf16.msra.mxu1 %v1270_v3 }
  0x10   :  { %1179 = vmatprep.subr.bf16.mxu0 %v1271_v6  ;;  %1255 = vmatprep.subr.bf16.mxu1 %v1271_v6 }
  0x13   :  { %1180 = vmatpush3.bf16.msra.mxu0 %v1271_v6  ;;  %1263 = vmatpush3.bf16.msra.mxu1 %v1271_v6 }
  0x14   :  { %1181 = vmatprep.subr.bf16.mxu0 %v1272_v7  ;;  %1256 = vmatprep.subr.bf16.mxu1 %v1272_v7 }
  0x17   :  { %1182 = vmatpush3.bf16.msra.mxu0 %v1272_v7  ;;  %1264 = vmatpush3.bf16.msra.mxu1 %v1272_v7 }
  0x18   :  { %1183 = vmatprep.subr.bf16.mxu0 %v1273_v8  ;;  %1257 = vmatprep.subr.bf16.mxu1 %v1273_v8 }
  0x1b   :  { %1184 = vmatpush3.bf16.msra.mxu0 %v1273_v8  ;;  %1265 = vmatpush3.bf16.msra.mxu1 %v1273_v8 }
  0x1c   :  { %1185 = vmatprep.subr.bf16.mxu0 %v1274_v9  ;;  %1258 = vmatprep.subr.bf16.mxu1 %v1274_v9 }
  0x1f   :  { %1186 = vmatpush3.bf16.msra.mxu0 %v1274_v9  ;;  %1266 = vmatpush3.bf16.msra.mxu1 %v1274_v9 }
  0x22   :  { %1188 = vmatmul.mubr.bf16.vlgmr.msra.gmra.mrb[0].mxu0 %v1277_v10  ;;  %1220 = vmatmul.mubr.bf16.vlgmr.msra.gmra.mrb[0].mxu1 %v1278_v11 }
  0x23   :  { %1191 = vmatprep.mubr.bf16.mxu0 %v1279_v12  ;;  %1223 = vmatprep.mubr.bf16.mxu1 %v1280_v13 }
  0x2a   :  { %1192 = vmatmul.mubr.bf16.gmra.mrb[4].mxu0 %v1281_v14  ;;  %1224 = vmatmul.mubr.bf16.gmra.mrb[4].mxu1 %v1282_v15 }
  0x2b   :  { %1195 = vmatprep.mubr.bf16.mxu0 %v1283_v16  ;;  %1227 = vmatprep.mubr.bf16.mxu1 %v1284_v17 }
  0x32   :  { %1196 = vmatmul.mubr.bf16.gmra.mrb[8].mxu0 %v1285_v18  ;;  %1228 = vmatmul.mubr.bf16.gmra.mrb[8].mxu1 %v1286_v19 }
  0x33   :  { %1199 = vmatprep.mubr.bf16.mxu0 %v1287_v20  ;;  %1231 = vmatprep.mubr.bf16.mxu1 %v1288_v21 }
  0x3a   :  { %1200 = vmatmul.mubr.bf16.gmra.mrb[12].mxu0 %v1289_v22  ;;  %1232 = vmatmul.mubr.bf16.gmra.mrb[12].mxu1 %v1290_v23 }
  0x3b   :  { %1203 = vmatprep.mubr.bf16.mxu0 %v1291_v24  ;;  %1235 = vmatprep.mubr.bf16.mxu1 %v1292_v25 }
  0x42   :  { %1204 = vmatmul.mubr.bf16.gmra.mrb[16].mxu0 %v1293_v26  ;;  %1236 = vmatmul.mubr.bf16.gmra.mrb[16].mxu1 %v1294_v27 }
  0x43   :  { %1207 = vmatprep.mubr.bf16.mxu0 %v1295_v28  ;;  %1239 = vmatprep.mubr.bf16.mxu1 %v1296_v29 }
  0x4a   :  { %1208 = vmatmul.mubr.bf16.gmra.mrb[20].mxu0 %v1297_v30  ;;  %1240 = vmatmul.mubr.bf16.gmra.mrb[20].mxu1 %v1298_v31 }
  0x4b   :  { %1211 = vmatprep.mubr.bf16.mxu0 %v1299_v32  ;;  %1243 = vmatprep.mubr.bf16.mxu1 %v1300_v33 }
  0x52   :  { %1212 = vmatmul.mubr.bf16.gmra.mrb[24].mxu0 %v1301_v34  ;;  %1244 = vmatmul.mubr.bf16.gmra.mrb[24].mxu1 %v1302_v35 }
  0x53   :  { %1215 = vmatprep.mubr.bf16.mxu0 %v1303_v36  ;;  %1247 = vmatprep.mubr.bf16.mxu1 %v1304_v37 }
  0x5a   :  { %1216 = vmatmul.mubr.bf16.gmra.mrb[28].mxu0 %v1305_v38  ;;  %1248 = vmatmul.mubr.bf16.gmra.mrb[28].mxu1 %v1306_v39 }
  0xf5   :  { %v1189_v41 = vpop.f32.mrb[0].mxu0  ;;  %v1221_v42 = vpop.f32.mrb[0].mxu1 }
  0xf6   :  { %v960_v43 = vadd.f32 %v1189_v41, %v1450_v40  ;;  %v992_v44 = vadd.f32 %v1221_v42, %v1450_v40  ;;  %v501_v45 = vpop.f32.mrb[1].mxu0  ;;  %v629_v46 = vpop.f32.mrb[1].mxu1 }
  0xf7   :  { %v958_v47 = vadd.f32 %v1450_v40, %v501_v45  ;;  %v990_v48 = vadd.f32 %v1450_v40, %v629_v46  ;;  %v1190_v49 = vpop.f32.mrb[2].mxu0  ;;  %v1222_v50 = vpop.f32.mrb[2].mxu1 }
  0xf8   :  { %1024 = vst [vmem:[%s1711_s3 + $0x10] sm:$0xff] %v960_v43  ;;  %1056 = vst [vmem:[%s1711_s3 + $0x110] sm:$0xff] %v992_v44  ;;  %v961_v51 = vadd.f32 %v1190_v49, %v1450_v40  ;;  %v993_v52 = vadd.f32 %v1222_v50, %v1450_v40  ;;  %v504_v53 = vpop.f32.mrb[3].mxu0  ;;  %v632_v54 = vpop.f32.mrb[3].mxu1 }
  0xf9   :  { %1022 = vst [vmem:[%s1711_s3] sm:$0xff] %v958_v47  ;;  %1054 = vst [vmem:[%s1711_s3 + $0x100] sm:$0xff] %v990_v48  ;;  %v959_v55 = vadd.f32 %v1450_v40, %v504_v53  ;;  %v991_v56 = vadd.f32 %v1450_v40, %v632_v54 }
  0xfa   :  { %1025 = vst [vmem:[%s1711_s3 + $0x18] sm:$0xff] %v961_v51  ;;  %1057 = vst [vmem:[%s1711_s3 + $0x118] sm:$0xff] %v993_v52 }
  0xfb   :  { %1023 = vst [vmem:[%s1711_s3 + $0x8] sm:$0xff] %v959_v55  ;;  %1055 = vst [vmem:[%s1711_s3 + $0x108] sm:$0xff] %v991_v56 }
  0xfd   :  { %v1193_v57 = vpop.f32.mrb[4].mxu0  ;;  %v1225_v58 = vpop.f32.mrb[4].mxu1 }
  0xfe   :  { %v964_v59 = vadd.f32 %v1193_v57, %v1450_v40  ;;  %v996_v60 = vadd.f32 %v1225_v58, %v1450_v40  ;;  %v517_v61 = vpop.f32.mrb[5].mxu0  ;;  %v645_v62 = vpop.f32.mrb[5].mxu1 }
  0xff   :  { %v962_v63 = vadd.f32 %v1450_v40, %v517_v61  ;;  %v994_v0 = vadd.f32 %v1450_v40, %v645_v62  ;;  %v1194_v1 = vpop.f32.mrb[6].mxu0  ;;  %v1226_v2 = vpop.f32.mrb[6].mxu1 }
 0x100   :  { %1028 = vst [vmem:[%s1711_s3 + $0x30] sm:$0xff] %v964_v59  ;;  %1060 = vst [vmem:[%s1711_s3 + $0x130] sm:$0xff] %v996_v60  ;;  %v965_v3 = vadd.f32 %v1194_v1, %v1450_v40  ;;  %v997_v4 = vadd.f32 %v1226_v2, %v1450_v40  ;;  %v520_v5 = vpop.f32.mrb[7].mxu0  ;;  %v648_v6 = vpop.f32.mrb[7].mxu1 }
 0x101   :  { %1026 = vst [vmem:[%s1711_s3 + $0x20] sm:$0xff] %v962_v63  ;;  %1058 = vst [vmem:[%s1711_s3 + $0x120] sm:$0xff] %v994_v0  ;;  %v963_v7 = vadd.f32 %v1450_v40, %v520_v5  ;;  %v995_v8 = vadd.f32 %v1450_v40, %v648_v6 }
 0x102   :  { %1029 = vst [vmem:[%s1711_s3 + $0x38] sm:$0xff] %v965_v3  ;;  %1061 = vst [vmem:[%s1711_s3 + $0x138] sm:$0xff] %v997_v4 }
 0x103   :  { %1027 = vst [vmem:[%s1711_s3 + $0x28] sm:$0xff] %v963_v7  ;;  %1059 = vst [vmem:[%s1711_s3 + $0x128] sm:$0xff] %v995_v8 }
 0x105   :  { %v1197_v9 = vpop.f32.mrb[8].mxu0  ;;  %v1229_v10 = vpop.f32.mrb[8].mxu1 }
 0x106   :  { %v968_v11 = vadd.f32 %v1197_v9, %v1450_v40  ;;  %v1000_v12 = vadd.f32 %v1229_v10, %v1450_v40  ;;  %v533_v13 = vpop.f32.mrb[9].mxu0  ;;  %v661_v14 = vpop.f32.mrb[9].mxu1 }
 0x107   :  { %v966_v15 = vadd.f32 %v1450_v40, %v533_v13  ;;  %v998_v16 = vadd.f32 %v1450_v40, %v661_v14  ;;  %v1198_v17 = vpop.f32.mrb[10].mxu0  ;;  %v1230_v18 = vpop.f32.mrb[10].mxu1 }
 0x108   :  { %1032 = vst [vmem:[%s1711_s3 + $0x50] sm:$0xff] %v968_v11  ;;  %1064 = vst [vmem:[%s1711_s3 + $0x150] sm:$0xff] %v1000_v12  ;;  %v969_v19 = vadd.f32 %v1198_v17, %v1450_v40  ;;  %v1001_v20 = vadd.f32 %v1230_v18, %v1450_v40  ;;  %v536_v21 = vpop.f32.mrb[11].mxu0  ;;  %v664_v22 = vpop.f32.mrb[11].mxu1 }
 0x109   :  { %1030 = vst [vmem:[%s1711_s3 + $0x40] sm:$0xff] %v966_v15  ;;  %1062 = vst [vmem:[%s1711_s3 + $0x140] sm:$0xff] %v998_v16  ;;  %v967_v23 = vadd.f32 %v1450_v40, %v536_v21  ;;  %v999_v24 = vadd.f32 %v1450_v40, %v664_v22 }
 0x10a   :  { %1033 = vst [vmem:[%s1711_s3 + $0x58] sm:$0xff] %v969_v19  ;;  %1065 = vst [vmem:[%s1711_s3 + $0x158] sm:$0xff] %v1001_v20 }
 0x10b   :  { %1031 = vst [vmem:[%s1711_s3 + $0x48] sm:$0xff] %v967_v23  ;;  %1063 = vst [vmem:[%s1711_s3 + $0x148] sm:$0xff] %v999_v24 }
 0x10d   :  { %v1201_v25 = vpop.f32.mrb[12].mxu0  ;;  %v1233_v26 = vpop.f32.mrb[12].mxu1 }
 0x10e   :  { %v972_v27 = vadd.f32 %v1201_v25, %v1450_v40  ;;  %v1004_v28 = vadd.f32 %v1233_v26, %v1450_v40  ;;  %v549_v29 = vpop.f32.mrb[13].mxu0  ;;  %v677_v30 = vpop.f32.mrb[13].mxu1 }
 0x10f   :  { %v970_v31 = vadd.f32 %v1450_v40, %v549_v29  ;;  %v1002_v32 = vadd.f32 %v1450_v40, %v677_v30  ;;  %v1202_v33 = vpop.f32.mrb[14].mxu0  ;;  %v1234_v34 = vpop.f32.mrb[14].mxu1 }
 0x110   :  { %1036 = vst [vmem:[%s1711_s3 + $0x70] sm:$0xff] %v972_v27  ;;  %1068 = vst [vmem:[%s1711_s3 + $0x170] sm:$0xff] %v1004_v28  ;;  %v973_v35 = vadd.f32 %v1202_v33, %v1450_v40  ;;  %v1005_v36 = vadd.f32 %v1234_v34, %v1450_v40  ;;  %v552_v37 = vpop.f32.mrb[15].mxu0  ;;  %v680_v38 = vpop.f32.mrb[15].mxu1 }
 0x111   :  { %1034 = vst [vmem:[%s1711_s3 + $0x60] sm:$0xff] %v970_v31  ;;  %1066 = vst [vmem:[%s1711_s3 + $0x160] sm:$0xff] %v1002_v32  ;;  %v971_v39 = vadd.f32 %v1450_v40, %v552_v37  ;;  %v1003_v41 = vadd.f32 %v1450_v40, %v680_v38 }
 0x112   :  { %1037 = vst [vmem:[%s1711_s3 + $0x78] sm:$0xff] %v973_v35  ;;  %1069 = vst [vmem:[%s1711_s3 + $0x178] sm:$0xff] %v1005_v36 }
 0x113   :  { %1035 = vst [vmem:[%s1711_s3 + $0x68] sm:$0xff] %v971_v39  ;;  %1067 = vst [vmem:[%s1711_s3 + $0x168] sm:$0xff] %v1003_v41 }
 0x115   :  { %v1205_v42 = vpop.f32.mrb[16].mxu0  ;;  %v1237_v43 = vpop.f32.mrb[16].mxu1 }
 0x116   :  { %v976_v44 = vadd.f32 %v1205_v42, %v1450_v40  ;;  %v1008_v45 = vadd.f32 %v1237_v43, %v1450_v40  ;;  %v565_v46 = vpop.f32.mrb[17].mxu0  ;;  %v693_v47 = vpop.f32.mrb[17].mxu1 }
 0x117   :  { %v974_v48 = vadd.f32 %v1450_v40, %v565_v46  ;;  %v1006_v49 = vadd.f32 %v1450_v40, %v693_v47  ;;  %v1206_v50 = vpop.f32.mrb[18].mxu0  ;;  %v1238_v51 = vpop.f32.mrb[18].mxu1 }
 0x118   :  { %1040 = vst [vmem:[%s1711_s3 + $0x90] sm:$0xff] %v976_v44  ;;  %1072 = vst [vmem:[%s1711_s3 + $0x190] sm:$0xff] %v1008_v45  ;;  %v977_v52 = vadd.f32 %v1206_v50, %v1450_v40  ;;  %v1009_v53 = vadd.f32 %v1238_v51, %v1450_v40  ;;  %v568_v54 = vpop.f32.mrb[19].mxu0  ;;  %v696_v55 = vpop.f32.mrb[19].mxu1 }
 0x119   :  { %1038 = vst [vmem:[%s1711_s3 + $0x80] sm:$0xff] %v974_v48  ;;  %1070 = vst [vmem:[%s1711_s3 + $0x180] sm:$0xff] %v1006_v49  ;;  %v975_v56 = vadd.f32 %v1450_v40, %v568_v54  ;;  %v1007_v57 = vadd.f32 %v1450_v40, %v696_v55 }
 0x11a   :  { %1041 = vst [vmem:[%s1711_s3 + $0x98] sm:$0xff] %v977_v52  ;;  %1073 = vst [vmem:[%s1711_s3 + $0x198] sm:$0xff] %v1009_v53 }
 0x11b   :  { %1039 = vst [vmem:[%s1711_s3 + $0x88] sm:$0xff] %v975_v56  ;;  %1071 = vst [vmem:[%s1711_s3 + $0x188] sm:$0xff] %v1007_v57 }
 0x11d   :  { %v1209_v58 = vpop.f32.mrb[20].mxu0  ;;  %v1241_v59 = vpop.f32.mrb[20].mxu1 }
 0x11e   :  { %v980_v60 = vadd.f32 %v1209_v58, %v1450_v40  ;;  %v1012_v61 = vadd.f32 %v1241_v59, %v1450_v40  ;;  %v581_v62 = vpop.f32.mrb[21].mxu0  ;;  %v709_v63 = vpop.f32.mrb[21].mxu1 }
 0x11f   :  { %v978_v0 = vadd.f32 %v1450_v40, %v581_v62  ;;  %v1010_v1 = vadd.f32 %v1450_v40, %v709_v63  ;;  %v1210_v2 = vpop.f32.mrb[22].mxu0  ;;  %v1242_v3 = vpop.f32.mrb[22].mxu1 }
 0x120   :  { %1044 = vst [vmem:[%s1711_s3 + $0xb0] sm:$0xff] %v980_v60  ;;  %1076 = vst [vmem:[%s1711_s3 + $0x1b0] sm:$0xff] %v1012_v61  ;;  %v981_v4 = vadd.f32 %v1210_v2, %v1450_v40  ;;  %v1013_v5 = vadd.f32 %v1242_v3, %v1450_v40  ;;  %v584_v6 = vpop.f32.mrb[23].mxu0  ;;  %v712_v7 = vpop.f32.mrb[23].mxu1 }
 0x121   :  { %1042 = vst [vmem:[%s1711_s3 + $0xa0] sm:$0xff] %v978_v0  ;;  %1074 = vst [vmem:[%s1711_s3 + $0x1a0] sm:$0xff] %v1010_v1  ;;  %v979_v8 = vadd.f32 %v1450_v40, %v584_v6  ;;  %v1011_v9 = vadd.f32 %v1450_v40, %v712_v7 }
 0x122   :  { %1045 = vst [vmem:[%s1711_s3 + $0xb8] sm:$0xff] %v981_v4  ;;  %1077 = vst [vmem:[%s1711_s3 + $0x1b8] sm:$0xff] %v1013_v5 }
 0x123   :  { %1043 = vst [vmem:[%s1711_s3 + $0xa8] sm:$0xff] %v979_v8  ;;  %1075 = vst [vmem:[%s1711_s3 + $0x1a8] sm:$0xff] %v1011_v9 }
 0x125   :  { %v1213_v10 = vpop.f32.mrb[24].mxu0  ;;  %v1245_v11 = vpop.f32.mrb[24].mxu1 }
 0x126   :  { %v984_v12 = vadd.f32 %v1213_v10, %v1450_v40  ;;  %v1016_v13 = vadd.f32 %v1245_v11, %v1450_v40  ;;  %v597_v14 = vpop.f32.mrb[25].mxu0  ;;  %v725_v15 = vpop.f32.mrb[25].mxu1 }
 0x127   :  { %v982_v16 = vadd.f32 %v1450_v40, %v597_v14  ;;  %v1014_v17 = vadd.f32 %v1450_v40, %v725_v15  ;;  %v1214_v18 = vpop.f32.mrb[26].mxu0  ;;  %v1246_v19 = vpop.f32.mrb[26].mxu1 }
 0x128   :  { %1048 = vst [vmem:[%s1711_s3 + $0xd0] sm:$0xff] %v984_v12  ;;  %1080 = vst [vmem:[%s1711_s3 + $0x1d0] sm:$0xff] %v1016_v13  ;;  %v985_v20 = vadd.f32 %v1214_v18, %v1450_v40  ;;  %v1017_v21 = vadd.f32 %v1246_v19, %v1450_v40  ;;  %v600_v22 = vpop.f32.mrb[27].mxu0  ;;  %v728_v23 = vpop.f32.mrb[27].mxu1 }
 0x129   :  { %1046 = vst [vmem:[%s1711_s3 + $0xc0] sm:$0xff] %v982_v16  ;;  %1078 = vst [vmem:[%s1711_s3 + $0x1c0] sm:$0xff] %v1014_v17  ;;  %v983_v24 = vadd.f32 %v1450_v40, %v600_v22  ;;  %v1015_v25 = vadd.f32 %v1450_v40, %v728_v23 }
 0x12a   :  { %1049 = vst [vmem:[%s1711_s3 + $0xd8] sm:$0xff] %v985_v20  ;;  %1081 = vst [vmem:[%s1711_s3 + $0x1d8] sm:$0xff] %v1017_v21 }
 0x12b   :  { %1047 = vst [vmem:[%s1711_s3 + $0xc8] sm:$0xff] %v983_v24  ;;  %1079 = vst [vmem:[%s1711_s3 + $0x1c8] sm:$0xff] %v1015_v25 }
 0x12d   :  { %v1217_v26 = vpop.f32.mrb[28].mxu0  ;;  %v1249_v27 = vpop.f32.mrb[28].mxu1 }
 0x12e   :  { %v988_v28 = vadd.f32 %v1217_v26, %v1450_v40  ;;  %v1020_v29 = vadd.f32 %v1249_v27, %v1450_v40  ;;  %v613_v30 = vpop.f32.mrb[29].mxu0  ;;  %v741_v31 = vpop.f32.mrb[29].mxu1 }
 0x12f   :  { %v986_v32 = vadd.f32 %v1450_v40, %v613_v30  ;;  %v1018_v33 = vadd.f32 %v1450_v40, %v741_v31  ;;  %v1218_v34 = vpop.f32.mrb[30].mxu0  ;;  %v1250_v35 = vpop.f32.mrb[30].mxu1 }
 0x130   :  { %1052 = vst [vmem:[%s1711_s3 + $0xf0] sm:$0xff] %v988_v28  ;;  %1084 = vst [vmem:[%s1711_s3 + $0x1f0] sm:$0xff] %v1020_v29  ;;  %v989_v36 = vadd.f32 %v1218_v34, %v1450_v40  ;;  %v1021_v37 = vadd.f32 %v1250_v35, %v1450_v40  ;;  %v616_v38 = vpop.f32.mrb[31].mxu0  ;;  %v744_v39 = vpop.f32.mrb[31].mxu1 }
 0x131   :  { %1050 = vst [vmem:[%s1711_s3 + $0xe0] sm:$0xff] %v986_v32  ;;  %1082 = vst [vmem:[%s1711_s3 + $0x1e0] sm:$0xff] %v1018_v33  ;;  %v987_v41 = vadd.f32 %v1450_v40, %v616_v38  ;;  %v1019_v42 = vadd.f32 %v1450_v40, %v744_v39 }
 0x132   :  { %1053 = vst [vmem:[%s1711_s3 + $0xf8] sm:$0xff] %v989_v36  ;;  %1085 = vst [vmem:[%s1711_s3 + $0x1f8] sm:$0xff] %v1021_v37 }
 0x133   :  { %1051 = vst [vmem:[%s1711_s3 + $0xe8] sm:$0xff] %v987_v41  ;;  %1083 = vst [vmem:[%s1711_s3 + $0x1e8] sm:$0xff] %v1019_v42 }

// kernel: dtn_forward.15
= control target key start
LH: loop header
LB: loop body
LE: loop exit
PB: predicated region body
PF: predicated region fallthrough
CT: control target
= control target key end

     0   :  { %s896_s0 = inlined_call_operand.vmem [shape: f32[512,128], index: 0, kind: input, shape index: {}]   ;;  %s897_s1 = inlined_call_operand.vmem [shape: f32[1,128], index: 1, kind: input, shape index: {}]   ;;  %s898_s2 = inlined_call_operand.vmem [shape: f32[1,128], index: 2, kind: input, shape index: {}]   ;;  %s899_s3 = inlined_call_operand.vmem [shape: f32[512,128], index: 3, kind: output, shape index: {}]  }
   0x1   :  { %v14_v0 = vld [vmem:[%s896_s0] sm:$0xff]  ;;  %v15_v4 = vld [vmem:[%s896_s0 + $0x8] sm:$0xff]  ;;  %v16_v5 = vld [vmem:[%s896_s0 + $0x10] sm:$0xff] }
   0x2   :  { %v380_v1 = vld [vmem:[%s897_s1] ss:$0 sm:$0xff]  ;;  %v17_v6 = vld [vmem:[%s896_s0 + $0x18] sm:$0xff]  ;;  %v19_v11 = vld [vmem:[%s896_s0 + $0x28] sm:$0xff] }
   0x3   :  { %v385_v2 = vld [vmem:[%s898_s2] ss:$0 sm:$0xff]  ;;  %v85_v3 = vmul.f32 %v380_v1, %v14_v0  ;;  %v86_v7 = vmul.f32 %v380_v1, %v15_v4  ;;  %v87_v8 = vmul.f32 %v380_v1, %v16_v5  ;;  %v88_v9 = vmul.f32 %v380_v1, %v17_v6  ;;  %v20_v12 = vld [vmem:[%s896_s0 + $0x30] sm:$0xff]  ;;  %v21_v17 = vld [vmem:[%s896_s0 + $0x38] sm:$0xff] }
   0x4   :  { %v18_v10 = vld [vmem:[%s896_s0 + $0x20] sm:$0xff]  ;;  %v90_v15 = vmul.f32 %v380_v1, %v19_v11  ;;  %v91_v16 = vmul.f32 %v380_v1, %v20_v12  ;;  %v92_v21 = vmul.f32 %v380_v1, %v21_v17  ;;  %v23_v27 = vld [vmem:[%s896_s0 + $0x48] sm:$0xff]  ;;  %v24_v28 = vld [vmem:[%s896_s0 + $0x50] sm:$0xff] }
   0x5   :  { %v156_v13 = vadd.f32 %v385_v2, %v85_v3  ;;  %v89_v14 = vmul.f32 %v380_v1, %v18_v10  ;;  %v157_v18 = vadd.f32 %v385_v2, %v86_v7  ;;  %v158_v19 = vadd.f32 %v385_v2, %v87_v8  ;;  %v22_v22 = vld [vmem:[%s896_s0 + $0x40] sm:$0xff]  ;;  %v25_v29 = vld [vmem:[%s896_s0 + $0x58] sm:$0xff]  ;;  %v27_v35 = vld [vmem:[%s896_s0 + $0x68] sm:$0xff] }
   0x6   :  { %v159_v20 = vadd.f32 %v385_v2, %v88_v9  ;;  %v161_v25 = vadd.f32 %v385_v2, %v90_v15  ;;  %v162_v26 = vadd.f32 %v385_v2, %v91_v16  ;;  %v163_v33 = vadd.f32 %v385_v2, %v92_v21  ;;  %v26_v34 = vld [vmem:[%s896_s0 + $0x60] sm:$0xff]  ;;  %v28_v36 = vld [vmem:[%s896_s0 + $0x70] sm:$0xff]  ;;  %v29_v41 = vld [vmem:[%s896_s0 + $0x78] sm:$0xff] }
   0x7   :  { %v220_v23 = vmax.f32 %v156_v13, 0.0  ;;  %v160_v24 = vadd.f32 %v385_v2, %v89_v14  ;;  %v221_v30 = vmax.f32 %v157_v18, 0.0  ;;  %v222_v31 = vmax.f32 %v158_v19, 0.0  ;;  %v30_v54 = vld [vmem:[%s896_s0 + $0x80] sm:$0xff]  ;;  %v31_v59 = vld [vmem:[%s896_s0 + $0x88] sm:$0xff]  ;;  %v32_v60 = vld [vmem:[%s896_s0 + $0x90] sm:$0xff] }
   0x8   :  { %v223_v32 = vmax.f32 %v159_v20, 0.0  ;;  %v225_v38 = vmax.f32 %v161_v25, 0.0  ;;  %v226_v39 = vmax.f32 %v162_v26, 0.0  ;;  %v93_v40 = vmul.f32 %v380_v1, %v22_v22  ;;  %v33_v61 = vld [vmem:[%s896_s0 + $0x98] sm:$0xff]  ;;  %v34_v4 = vld [vmem:[%s896_s0 + $0xa0] sm:$0xff]  ;;  %v35_v5 = vld [vmem:[%s896_s0 + $0xa8] sm:$0xff] }
   0x9   :  { %284 = vst [vmem:[%s899_s3] sm:$0xff] %v220_v23  ;;  %v224_v37 = vmax.f32 %v160_v24, 0.0  ;;  %285 = vst [vmem:[%s899_s3 + $0x8] sm:$0xff] %v221_v30  ;;  %v227_v42 = vmax.f32 %v163_v33, 0.0  ;;  %v94_v43 = vmul.f32 %v380_v1, %v23_v27  ;;  %v95_v44 = vmul.f32 %v380_v1, %v24_v28  ;;  %v36_v6 = vld [vmem:[%s896_s0 + $0xb0] sm:$0xff]  ;;  %v37_v11 = vld [vmem:[%s896_s0 + $0xb8] sm:$0xff] }
   0xa   :  { %286 = vst [vmem:[%s899_s3 + $0x10] sm:$0xff] %v222_v31  ;;  %287 = vst [vmem:[%s899_s3 + $0x18] sm:$0xff] %v223_v32  ;;  %v96_v45 = vmul.f32 %v380_v1, %v25_v29  ;;  %v164_v46 = vadd.f32 %v385_v2, %v93_v40  ;;  %v97_v47 = vmul.f32 %v380_v1, %v26_v34  ;;  %v38_v24 = vld [vmem:[%s896_s0 + $0xc0] sm:$0xff]  ;;  %v39_v29 = vld [vmem:[%s896_s0 + $0xc8] sm:$0xff] }
   0xb   :  { %288 = vst [vmem:[%s899_s3 + $0x20] sm:$0xff] %v224_v37  ;;  %289 = vst [vmem:[%s899_s3 + $0x28] sm:$0xff] %v225_v38  ;;  %v98_v48 = vmul.f32 %v380_v1, %v27_v35  ;;  %v99_v49 = vmul.f32 %v380_v1, %v28_v36  ;;  %v165_v50 = vadd.f32 %v385_v2, %v94_v43  ;;  %v40_v30 = vld [vmem:[%s896_s0 + $0xd0] sm:$0xff]  ;;  %v41_v31 = vld [vmem:[%s896_s0 + $0xd8] sm:$0xff] }
   0xc   :  { %290 = vst [vmem:[%s899_s3 + $0x30] sm:$0xff] %v226_v39  ;;  %291 = vst [vmem:[%s899_s3 + $0x38] sm:$0xff] %v227_v42  ;;  %v166_v51 = vadd.f32 %v385_v2, %v95_v44  ;;  %v167_v52 = vadd.f32 %v385_v2, %v96_v45  ;;  %v100_v53 = vmul.f32 %v380_v1, %v29_v41  ;;  %v228_v55 = vmax.f32 %v164_v46, 0.0  ;;  %v42_v36 = vld [vmem:[%s896_s0 + $0xe0] sm:$0xff]  ;;  %v43_v37 = vld [vmem:[%s896_s0 + $0xe8] sm:$0xff] }
   0xd   :  { %v168_v56 = vadd.f32 %v385_v2, %v97_v47  ;;  %v169_v57 = vadd.f32 %v385_v2, %v98_v48  ;;  %v170_v58 = vadd.f32 %v385_v2, %v99_v49  ;;  %v229_v62 = vmax.f32 %v165_v50, 0.0  ;;  %v44_v38 = vld [vmem:[%s896_s0 + $0xf0] sm:$0xff]  ;;  %v45_v43 = vld [vmem:[%s896_s0 + $0xf8] sm:$0xff] }
   0xe   :  { %v230_v63 = vmax.f32 %v166_v51, 0.0  ;;  %v231_v0 = vmax.f32 %v167_v52, 0.0  ;;  %v171_v3 = vadd.f32 %v385_v2, %v100_v53  ;;  %292 = vst [vmem:[%s899_s3 + $0x40] sm:$0xff] %v228_v55  ;;  %v101_v10 = vmul.f32 %v380_v1, %v30_v54 }
   0xf   :  { %v232_v7 = vmax.f32 %v168_v56, 0.0  ;;  %v233_v8 = vmax.f32 %v169_v57, 0.0  ;;  %v234_v9 = vmax.f32 %v170_v58, 0.0  ;;  %293 = vst [vmem:[%s899_s3 + $0x48] sm:$0xff] %v229_v62  ;;  %v102_v13 = vmul.f32 %v380_v1, %v31_v59  ;;  %v46_v56 = vld [vmem:[%s896_s0 + $0x100] sm:$0xff]  ;;  %v48_v62 = vld [vmem:[%s896_s0 + $0x110] sm:$0xff] }
  0x10   :  { %294 = vst [vmem:[%s899_s3 + $0x50] sm:$0xff] %v230_v63  ;;  %295 = vst [vmem:[%s899_s3 + $0x58] sm:$0xff] %v231_v0  ;;  %v235_v12 = vmax.f32 %v171_v3, 0.0  ;;  %v103_v14 = vmul.f32 %v380_v1, %v32_v60  ;;  %v104_v15 = vmul.f32 %v380_v1, %v33_v61  ;;  %v172_v16 = vadd.f32 %v385_v2, %v101_v10  ;;  %v47_v61 = vld [vmem:[%s896_s0 + $0x108] sm:$0xff]  ;;  %v49_v63 = vld [vmem:[%s896_s0 + $0x118] sm:$0xff] }
  0x11   :  { %296 = vst [vmem:[%s899_s3 + $0x60] sm:$0xff] %v232_v7  ;;  %297 = vst [vmem:[%s899_s3 + $0x68] sm:$0xff] %v233_v8  ;;  %v105_v17 = vmul.f32 %v380_v1, %v34_v4  ;;  %v106_v18 = vmul.f32 %v380_v1, %v35_v5  ;;  %v107_v19 = vmul.f32 %v380_v1, %v36_v6  ;;  %v50_v6 = vld [vmem:[%s896_s0 + $0x120] sm:$0xff]  ;;  %v51_v7 = vld [vmem:[%s896_s0 + $0x128] sm:$0xff] }
  0x12   :  { %298 = vst [vmem:[%s899_s3 + $0x70] sm:$0xff] %v234_v9  ;;  %299 = vst [vmem:[%s899_s3 + $0x78] sm:$0xff] %v235_v12  ;;  %v173_v20 = vadd.f32 %v385_v2, %v102_v13  ;;  %v174_v21 = vadd.f32 %v385_v2, %v103_v14  ;;  %v175_v22 = vadd.f32 %v385_v2, %v104_v15  ;;  %v236_v25 = vmax.f32 %v172_v16, 0.0  ;;  %v52_v8 = vld [vmem:[%s896_s0 + $0x130] sm:$0xff]  ;;  %v53_v13 = vld [vmem:[%s896_s0 + $0x138] sm:$0xff] }
  0x13   :  { %v108_v23 = vmul.f32 %v380_v1, %v37_v11  ;;  %v176_v26 = vadd.f32 %v385_v2, %v105_v17  ;;  %v177_v27 = vadd.f32 %v385_v2, %v106_v18  ;;  %v178_v28 = vadd.f32 %v385_v2, %v107_v19 }
  0x14   :  { %v237_v32 = vmax.f32 %v173_v20, 0.0  ;;  %v238_v33 = vmax.f32 %v174_v21, 0.0  ;;  %v239_v34 = vmax.f32 %v175_v22, 0.0  ;;  %300 = vst [vmem:[%s899_s3 + $0x80] sm:$0xff] %v236_v25  ;;  %v109_v42 = vmul.f32 %v380_v1, %v38_v24 }
  0x15   :  { %v179_v35 = vadd.f32 %v385_v2, %v108_v23  ;;  %v240_v39 = vmax.f32 %v176_v26, 0.0  ;;  %v241_v40 = vmax.f32 %v177_v27, 0.0  ;;  %v242_v41 = vmax.f32 %v178_v28, 0.0  ;;  %v54_v26 = vld [vmem:[%s896_s0 + $0x140] sm:$0xff] }
  0x16   :  { %301 = vst [vmem:[%s899_s3 + $0x88] sm:$0xff] %v237_v32  ;;  %302 = vst [vmem:[%s899_s3 + $0x90] sm:$0xff] %v238_v33  ;;  %v110_v45 = vmul.f32 %v380_v1, %v39_v29  ;;  %v111_v46 = vmul.f32 %v380_v1, %v40_v30  ;;  %v112_v47 = vmul.f32 %v380_v1, %v41_v31  ;;  %v55_v31 = vld [vmem:[%s896_s0 + $0x148] sm:$0xff]  ;;  %v56_v32 = vld [vmem:[%s896_s0 + $0x150] sm:$0xff] }
  0x17   :  { %303 = vst [vmem:[%s899_s3 + $0x98] sm:$0xff] %v239_v34  ;;  %v243_v44 = vmax.f32 %v179_v35, 0.0  ;;  %304 = vst [vmem:[%s899_s3 + $0xa0] sm:$0xff] %v240_v39  ;;  %v180_v48 = vadd.f32 %v385_v2, %v109_v42  ;;  %v113_v49 = vmul.f32 %v380_v1, %v42_v36  ;;  %v114_v50 = vmul.f32 %v380_v1, %v43_v37  ;;  %v57_v33 = vld [vmem:[%s896_s0 + $0x158] sm:$0xff]  ;;  %v59_v39 = vld [vmem:[%s896_s0 + $0x168] sm:$0xff] }
  0x18   :  { %305 = vst [vmem:[%s899_s3 + $0xa8] sm:$0xff] %v241_v40  ;;  %306 = vst [vmem:[%s899_s3 + $0xb0] sm:$0xff] %v242_v41  ;;  %v115_v51 = vmul.f32 %v380_v1, %v44_v38  ;;  %v181_v52 = vadd.f32 %v385_v2, %v110_v45  ;;  %v182_v53 = vadd.f32 %v385_v2, %v111_v46  ;;  %v58_v38 = vld [vmem:[%s896_s0 + $0x160] sm:$0xff]  ;;  %v60_v40 = vld [vmem:[%s896_s0 + $0x170] sm:$0xff] }
  0x19   :  { %307 = vst [vmem:[%s899_s3 + $0xb8] sm:$0xff] %v243_v44  ;;  %v183_v54 = vadd.f32 %v385_v2, %v112_v47  ;;  %v116_v55 = vmul.f32 %v380_v1, %v45_v43  ;;  %v244_v57 = vmax.f32 %v180_v48, 0.0  ;;  %v184_v58 = vadd.f32 %v385_v2, %v113_v49  ;;  %v61_v45 = vld [vmem:[%s896_s0 + $0x178] sm:$0xff] }
  0x1a   :  { %v185_v59 = vadd.f32 %v385_v2, %v114_v50  ;;  %v186_v60 = vadd.f32 %v385_v2, %v115_v51  ;;  %v245_v0 = vmax.f32 %v181_v52, 0.0  ;;  %v246_v3 = vmax.f32 %v182_v53, 0.0 }
  0x1b   :  { %v247_v4 = vmax.f32 %v183_v54, 0.0  ;;  %v187_v5 = vadd.f32 %v385_v2, %v116_v55  ;;  %308 = vst [vmem:[%s899_s3 + $0xc0] sm:$0xff] %v244_v57  ;;  %v248_v9 = vmax.f32 %v184_v58, 0.0  ;;  %v117_v12 = vmul.f32 %v380_v1, %v46_v56  ;;  %v62_v58 = vld [vmem:[%s896_s0 + $0x180] sm:$0xff] }
  0x1c   :  { %v249_v10 = vmax.f32 %v185_v59, 0.0  ;;  %v250_v11 = vmax.f32 %v186_v60, 0.0  ;;  %309 = vst [vmem:[%s899_s3 + $0xc8] sm:$0xff] %v245_v0  ;;  %310 = vst [vmem:[%s899_s3 + $0xd0] sm:$0xff] %v246_v3  ;;  %v118_v15 = vmul.f32 %v380_v1, %v47_v61  ;;  %v119_v16 = vmul.f32 %v380_v1, %v48_v62  ;;  %v64_v0 = vld [vmem:[%s896_s0 + $0x190] sm:$0xff]  ;;  %v65_v3 = vld [vmem:[%s896_s0 + $0x198] sm:$0xff] }
  0x1d   :  { %311 = vst [vmem:[%s899_s3 + $0xd8] sm:$0xff] %v247_v4  ;;  %v251_v14 = vmax.f32 %v187_v5, 0.0  ;;  %v120_v17 = vmul.f32 %v380_v1, %v49_v63  ;;  %312 = vst [vmem:[%s899_s3 + $0xe0] sm:$0xff] %v248_v9  ;;  %v188_v18 = vadd.f32 %v385_v2, %v117_v12  ;;  %v121_v19 = vmul.f32 %v380_v1, %v50_v6  ;;  %v63_v63 = vld [vmem:[%s896_s0 + $0x188] sm:$0xff] }
  0x1e   :  { %313 = vst [vmem:[%s899_s3 + $0xe8] sm:$0xff] %v249_v10  ;;  %314 = vst [vmem:[%s899_s3 + $0xf0] sm:$0xff] %v250_v11  ;;  %v122_v20 = vmul.f32 %v380_v1, %v51_v7  ;;  %v123_v21 = vmul.f32 %v380_v1, %v52_v8  ;;  %v189_v22 = vadd.f32 %v385_v2, %v118_v15  ;;  %v66_v8 = vld [vmem:[%s896_s0 + $0x1a0] sm:$0xff]  ;;  %v67_v9 = vld [vmem:[%s896_s0 + $0x1a8] sm:$0xff] }
  0x1f   :  { %315 = vst [vmem:[%s899_s3 + $0xf8] sm:$0xff] %v251_v14  ;;  %v190_v23 = vadd.f32 %v385_v2, %v119_v16  ;;  %v191_v24 = vadd.f32 %v385_v2, %v120_v17  ;;  %v124_v25 = vmul.f32 %v380_v1, %v53_v13  ;;  %v252_v27 = vmax.f32 %v188_v18, 0.0  ;;  %v68_v10 = vld [vmem:[%s896_s0 + $0x1b0] sm:$0xff]  ;;  %v69_v15 = vld [vmem:[%s896_s0 + $0x1b8] sm:$0xff] }
  0x20   :  { %v192_v28 = vadd.f32 %v385_v2, %v121_v19  ;;  %v193_v29 = vadd.f32 %v385_v2, %v122_v20  ;;  %v194_v30 = vadd.f32 %v385_v2, %v123_v21  ;;  %v253_v34 = vmax.f32 %v189_v22, 0.0 }
  0x21   :  { %v254_v35 = vmax.f32 %v190_v23, 0.0  ;;  %v255_v36 = vmax.f32 %v191_v24, 0.0  ;;  %v195_v37 = vadd.f32 %v385_v2, %v124_v25  ;;  %316 = vst [vmem:[%s899_s3 + $0x100] sm:$0xff] %v252_v27  ;;  %v125_v44 = vmul.f32 %v380_v1, %v54_v26 }
  0x22   :  { %v256_v41 = vmax.f32 %v192_v28, 0.0  ;;  %v257_v42 = vmax.f32 %v193_v29, 0.0  ;;  %v258_v43 = vmax.f32 %v194_v30, 0.0  ;;  %317 = vst [vmem:[%s899_s3 + $0x108] sm:$0xff] %v253_v34  ;;  %v126_v47 = vmul.f32 %v380_v1, %v55_v31  ;;  %v70_v28 = vld [vmem:[%s896_s0 + $0x1c0] sm:$0xff]  ;;  %v72_v34 = vld [vmem:[%s896_s0 + $0x1d0] sm:$0xff] }
  0x23   :  { %318 = vst [vmem:[%s899_s3 + $0x110] sm:$0xff] %v254_v35  ;;  %319 = vst [vmem:[%s899_s3 + $0x118] sm:$0xff] %v255_v36  ;;  %v259_v46 = vmax.f32 %v195_v37, 0.0  ;;  %v127_v48 = vmul.f32 %v380_v1, %v56_v32  ;;  %v128_v49 = vmul.f32 %v380_v1, %v57_v33  ;;  %v196_v50 = vadd.f32 %v385_v2, %v125_v44  ;;  %v71_v33 = vld [vmem:[%s896_s0 + $0x1c8] sm:$0xff]  ;;  %v73_v35 = vld [vmem:[%s896_s0 + $0x1d8] sm:$0xff] }
  0x24   :  { %320 = vst [vmem:[%s899_s3 + $0x120] sm:$0xff] %v256_v41  ;;  %321 = vst [vmem:[%s899_s3 + $0x128] sm:$0xff] %v257_v42  ;;  %v129_v51 = vmul.f32 %v380_v1, %v58_v38  ;;  %v130_v52 = vmul.f32 %v380_v1, %v59_v39  ;;  %v131_v53 = vmul.f32 %v380_v1, %v60_v40  ;;  %v74_v40 = vld [vmem:[%s896_s0 + $0x1e0] sm:$0xff]  ;;  %v75_v41 = vld [vmem:[%s896_s0 + $0x1e8] sm:$0xff] }
  0x25   :  { %322 = vst [vmem:[%s899_s3 + $0x130] sm:$0xff] %v258_v43  ;;  %323 = vst [vmem:[%s899_s3 + $0x138] sm:$0xff] %v259_v46  ;;  %v197_v54 = vadd.f32 %v385_v2, %v126_v47  ;;  %v198_v55 = vadd.f32 %v385_v2, %v127_v48  ;;  %v199_v56 = vadd.f32 %v385_v2, %v128_v49  ;;  %v260_v59 = vmax.f32 %v196_v50, 0.0  ;;  %v76_v42 = vld [vmem:[%s896_s0 + $0x1f0] sm:$0xff]  ;;  %v77_v47 = vld [vmem:[%s896_s0 + $0x1f8] sm:$0xff] }
  0x26   :  { %v132_v57 = vmul.f32 %v380_v1, %v61_v45  ;;  %v200_v60 = vadd.f32 %v385_v2, %v129_v51  ;;  %v201_v61 = vadd.f32 %v385_v2, %v130_v52  ;;  %v202_v62 = vadd.f32 %v385_v2, %v131_v53 }
  0x27   :  { %v261_v4 = vmax.f32 %v197_v54, 0.0  ;;  %v262_v5 = vmax.f32 %v198_v55, 0.0  ;;  %v263_v6 = vmax.f32 %v199_v56, 0.0  ;;  %324 = vst [vmem:[%s899_s3 + $0x140] sm:$0xff] %v260_v59  ;;  %v133_v14 = vmul.f32 %v380_v1, %v62_v58 }
  0x28   :  { %v203_v7 = vadd.f32 %v385_v2, %v132_v57  ;;  %v264_v11 = vmax.f32 %v200_v60, 0.0  ;;  %v265_v12 = vmax.f32 %v201_v61, 0.0  ;;  %v266_v13 = vmax.f32 %v202_v62, 0.0 }
  0x29   :  { %325 = vst [vmem:[%s899_s3 + $0x148] sm:$0xff] %v261_v4  ;;  %326 = vst [vmem:[%s899_s3 + $0x150] sm:$0xff] %v262_v5  ;;  %v134_v17 = vmul.f32 %v380_v1, %v63_v63  ;;  %v135_v18 = vmul.f32 %v380_v1, %v64_v0  ;;  %v136_v19 = vmul.f32 %v380_v1, %v65_v3 }
  0x2a   :  { %327 = vst [vmem:[%s899_s3 + $0x158] sm:$0xff] %v263_v6  ;;  %v267_v16 = vmax.f32 %v203_v7, 0.0  ;;  %328 = vst [vmem:[%s899_s3 + $0x160] sm:$0xff] %v264_v11  ;;  %v204_v20 = vadd.f32 %v385_v2, %v133_v14  ;;  %v137_v21 = vmul.f32 %v380_v1, %v66_v8  ;;  %v138_v22 = vmul.f32 %v380_v1, %v67_v9 }
  0x2b   :  { %329 = vst [vmem:[%s899_s3 + $0x168] sm:$0xff] %v265_v12  ;;  %330 = vst [vmem:[%s899_s3 + $0x170] sm:$0xff] %v266_v13  ;;  %v139_v23 = vmul.f32 %v380_v1, %v68_v10  ;;  %v205_v24 = vadd.f32 %v385_v2, %v134_v17  ;;  %v206_v25 = vadd.f32 %v385_v2, %v135_v18 }
  0x2c   :  { %331 = vst [vmem:[%s899_s3 + $0x178] sm:$0xff] %v267_v16  ;;  %v207_v26 = vadd.f32 %v385_v2, %v136_v19  ;;  %v140_v27 = vmul.f32 %v380_v1, %v69_v15  ;;  %v268_v29 = vmax.f32 %v204_v20, 0.0  ;;  %v208_v30 = vadd.f32 %v385_v2, %v137_v21 }
  0x2d   :  { %v209_v31 = vadd.f32 %v385_v2, %v138_v22  ;;  %v210_v32 = vadd.f32 %v385_v2, %v139_v23  ;;  %v269_v36 = vmax.f32 %v205_v24, 0.0  ;;  %v270_v37 = vmax.f32 %v206_v25, 0.0 }
  0x2e   :  { %v271_v38 = vmax.f32 %v207_v26, 0.0  ;;  %v211_v39 = vadd.f32 %v385_v2, %v140_v27  ;;  %332 = vst [vmem:[%s899_s3 + $0x180] sm:$0xff] %v268_v29  ;;  %v272_v43 = vmax.f32 %v208_v30, 0.0  ;;  %v141_v46 = vmul.f32 %v380_v1, %v70_v28 }
  0x2f   :  { %v273_v44 = vmax.f32 %v209_v31, 0.0  ;;  %v274_v45 = vmax.f32 %v210_v32, 0.0  ;;  %333 = vst [vmem:[%s899_s3 + $0x188] sm:$0xff] %v269_v36  ;;  %334 = vst [vmem:[%s899_s3 + $0x190] sm:$0xff] %v270_v37  ;;  %v142_v49 = vmul.f32 %v380_v1, %v71_v33  ;;  %v143_v50 = vmul.f32 %v380_v1, %v72_v34 }
  0x30   :  { %335 = vst [vmem:[%s899_s3 + $0x198] sm:$0xff] %v271_v38  ;;  %v275_v48 = vmax.f32 %v211_v39, 0.0  ;;  %v144_v51 = vmul.f32 %v380_v1, %v73_v35  ;;  %336 = vst [vmem:[%s899_s3 + $0x1a0] sm:$0xff] %v272_v43  ;;  %v212_v52 = vadd.f32 %v385_v2, %v141_v46  ;;  %v145_v53 = vmul.f32 %v380_v1, %v74_v40 }
  0x31   :  { %337 = vst [vmem:[%s899_s3 + $0x1a8] sm:$0xff] %v273_v44  ;;  %338 = vst [vmem:[%s899_s3 + $0x1b0] sm:$0xff] %v274_v45  ;;  %v146_v54 = vmul.f32 %v380_v1, %v75_v41  ;;  %v147_v55 = vmul.f32 %v380_v1, %v76_v42  ;;  %v213_v56 = vadd.f32 %v385_v2, %v142_v49 }
  0x32   :  { %339 = vst [vmem:[%s899_s3 + $0x1b8] sm:$0xff] %v275_v48  ;;  %v214_v57 = vadd.f32 %v385_v2, %v143_v50  ;;  %v215_v58 = vadd.f32 %v385_v2, %v144_v51  ;;  %v148_v59 = vmul.f32 %v380_v1, %v77_v47  ;;  %v276_v60 = vmax.f32 %v212_v52, 0.0 }
  0x33   :  { %v216_v61 = vadd.f32 %v385_v2, %v145_v53  ;;  %v217_v62 = vadd.f32 %v385_v2, %v146_v54  ;;  %v218_v63 = vadd.f32 %v385_v2, %v147_v55  ;;  %v277_v0 = vmax.f32 %v213_v56, 0.0 }
  0x34   :  { %v278_v3 = vmax.f32 %v214_v57, 0.0  ;;  %v279_v4 = vmax.f32 %v215_v58, 0.0  ;;  %v219_v5 = vadd.f32 %v385_v2, %v148_v59  ;;  %340 = vst [vmem:[%s899_s3 + $0x1c0] sm:$0xff] %v276_v60 }
  0x35   :  { %v280_v6 = vmax.f32 %v216_v61, 0.0  ;;  %v281_v7 = vmax.f32 %v217_v62, 0.0  ;;  %v282_v8 = vmax.f32 %v218_v63, 0.0  ;;  %341 = vst [vmem:[%s899_s3 + $0x1c8] sm:$0xff] %v277_v0 }
  0x36   :  { %342 = vst [vmem:[%s899_s3 + $0x1d0] sm:$0xff] %v278_v3  ;;  %343 = vst [vmem:[%s899_s3 + $0x1d8] sm:$0xff] %v279_v4  ;;  %v283_v1 = vmax.f32 %v219_v5, 0.0 }
  0x37   :  { %344 = vst [vmem:[%s899_s3 + $0x1e0] sm:$0xff] %v280_v6  ;;  %345 = vst [vmem:[%s899_s3 + $0x1e8] sm:$0xff] %v281_v7 }
  0x38   :  { %346 = vst [vmem:[%s899_s3 + $0x1f0] sm:$0xff] %v282_v8  ;;  %347 = vst [vmem:[%s899_s3 + $0x1f8] sm:$0xff] %v283_v1 }

// kernel: dtn_forward.16
= control target key start
LH: loop header
LB: loop body
LE: loop exit
PB: predicated region body
PF: predicated region fallthrough
CT: control target
= control target key end

     0   :  { %s1031_s12 = smov 0   ;;  %s1033_s13 = smov 0   ;;  %s1187_s0 = inlined_call_operand.vmem [shape: bf16[128,1664], index: 0, kind: input, shape index: {}]   ;;  %s1188_s1 = inlined_call_operand.vmem [shape: bf16[1664,128], index: 1, kind: input, shape index: {}]   ;;  %s1189_s2 = inlined_call_operand.vmem [shape: f32[1,128], index: 2, kind: input, shape index: {}]   ;;  %s1190_s3 = inlined_call_operand.vmem [shape: f32[128,128], index: 3, kind: output, shape index: {}]  }
   0x1   :  { %s1035_s14 = smov 0   ;;  %s1037_s15 = smov 0  }
   0x2   :  { %s1039_s16 = smov 0  }
   0x3 LB: > { %s25_s17 = sadd.s32 1, %s1004_s15  ;;  %p48_p1 = scmp.ne.s32.totalorder %s996_s13, %s992_s12  ;;  %s1008_s16 = sphi %s1039_s16, %s13_s16   ;;  %s1004_s15 = sphi %s1037_s15, %s1194_s15   ;;  %s1000_s14 = sphi %s1035_s14, %s1193_s14   ;;  %s996_s13 = sphi %s1033_s13, %s1192_s13   ;;  %s992_s12 = sphi %s1031_s12, %s1191_s12  }
   0x4   : > { %p26_p0 = scmp.ge.s32.totalorder %s25_s17, 13  ;;  %p49_p2 = scmp.eq.s32.totalorder %s1008_s16, 0 }
   0x5   : > { %s41_s19 = sadd.s32 1, %s996_s13  ;;  %p819_p5 = scmp.ge.s32.totalorder %s1008_s16, 13 }
   0x6   : > { %s1196_s17 = smov (%p26_p0, %s25_s17), 0  ;;  %p50_p3 = por %p49_p2, %p48_p1 }
   0x7   : > { %s37_s18 = ssub.s32 %s1004_s15, %s1196_s17  ;;  %162 = sbr.rel (%p819_p5) target bundleno = 28 (0x1c), region = 20 }
   0x8   : > { %p39_p4 = scmp.eq.s32.totalorder %s37_s18, 0 }
   0xa   : > { %s1066_s20 = scalar_select %p39_p4, %s996_s13, %s41_s19  }
   0xe   : > { %165 = sbr.rel (!%p50_p3) target bundleno = 28 (0x1c), region = 24  ;;  %s167_s21 = sand.u32 (%p50_p3), 1, %s996_s13  }
   0xf   : > { %s821_s22 = sshll.u32 (%p50_p3), %s1004_s15, 2  ;;  %s820_s23 = sshll.u32 (%p50_p3), %s167_s21, 6 }
  0x10   : > { %s1074_s26 = scalar_lea.vmem (%p50_p3), %s1187_s0, %s821_s22  ;;  %s169_s27 = scalar_lea.vmem (%p50_p3), [#allocation3], %s820_s23 }
  0x11   : > { %v190_v0 = vld [vmem:[%s1074_s26] sm:$0xf] (%p50_p3)  ;;  %v192_v1 = vld [vmem:[%s1074_s26 + $0x34] sm:$0xf] (%p50_p3)  ;;  %v194_v2 = vld [vmem:[%s1074_s26 + $0x68] sm:$0xf] (%p50_p3) }
  0x12   : > { %191 = vst [vmem:[%s169_s27] sm:$0xf] (%p50_p3), %v190_v0  ;;  %193 = vst [vmem:[%s169_s27 + $0x4] sm:$0xf] (%p50_p3), %v192_v1  ;;  %v196_v3 = vld [vmem:[%s1074_s26 + $0x9c] sm:$0xf] (%p50_p3) }
  0x13   : > { %v198_v4 = vld [vmem:[%s1074_s26 + $0xd0] sm:$0xf] (%p50_p3)  ;;  %195 = vst [vmem:[%s169_s27 + $0x8] sm:$0xf] (%p50_p3), %v194_v2  ;;  %197 = vst [vmem:[%s169_s27 + $0xc] sm:$0xf] (%p50_p3), %v196_v3 }
  0x14   : > { %199 = vst [vmem:[%s169_s27 + $0x10] sm:$0xf] (%p50_p3), %v198_v4  ;;  %v200_v5 = vld [vmem:[%s1074_s26 + $0x104] sm:$0xf] (%p50_p3)  ;;  %v202_v6 = vld [vmem:[%s1074_s26 + $0x138] sm:$0xf] (%p50_p3) }
  0x15   : > { %v204_v7 = vld [vmem:[%s1074_s26 + $0x16c] sm:$0xf]  ;;  %201 = vst [vmem:[%s169_s27 + $0x14] sm:$0xf] %v200_v5  ;;  %203 = vst [vmem:[%s169_s27 + $0x18] sm:$0xf] %v202_v6 }
  0x16   : > { %205 = vst [vmem:[%s169_s27 + $0x1c] sm:$0xf] %v204_v7  ;;  %v206_v8 = vld [vmem:[%s1074_s26 + $0x1a0] sm:$0xf]  ;;  %v208_v9 = vld [vmem:[%s1074_s26 + $0x1d4] sm:$0xf] }
  0x17   : > { %v210_v10 = vld [vmem:[%s1074_s26 + $0x208] sm:$0xf]  ;;  %207 = vst [vmem:[%s169_s27 + $0x20] sm:$0xf] %v206_v8  ;;  %209 = vst [vmem:[%s169_s27 + $0x24] sm:$0xf] %v208_v9 }
  0x18   : > { %211 = vst [vmem:[%s169_s27 + $0x28] sm:$0xf] %v210_v10  ;;  %v212_v11 = vld [vmem:[%s1074_s26 + $0x23c] sm:$0xf]  ;;  %v214_v12 = vld [vmem:[%s1074_s26 + $0x270] sm:$0xf] }
  0x19   : > { %v216_v13 = vld [vmem:[%s1074_s26 + $0x2a4] sm:$0xf]  ;;  %213 = vst [vmem:[%s169_s27 + $0x2c] sm:$0xf] %v212_v11  ;;  %215 = vst [vmem:[%s169_s27 + $0x30] sm:$0xf] %v214_v12 }
  0x1a   : > { %217 = vst [vmem:[%s169_s27 + $0x34] sm:$0xf] %v216_v13  ;;  %v218_v14 = vld [vmem:[%s1074_s26 + $0x2d8] sm:$0xf]  ;;  %v220_v15 = vld [vmem:[%s1074_s26 + $0x30c] sm:$0xf] }
  0x1b   : > { %219 = vst [vmem:[%s169_s27 + $0x38] sm:$0xf] %v218_v14  ;;  %221 = vst [vmem:[%s169_s27 + $0x3c] sm:$0xf] %v220_v15 }
  0x1c PF: > { %p822_p6 = scmp.ge.s32.totalorder %s1008_s16, 1  ;;  %p287_p7 = scmp.lt.s32.totalorder %s1008_s16, 14 }
  0x1e   : > { %p288_p8 = pnand %p822_p6, %p287_p7 }
  0x1f   : > { %s294_s28 = sand.u32 (!%p288_p8), 1, %s992_s12   ;;  %s824_s29 = sshll.u32 (!%p288_p8), %s1000_s14, 4 }
  0x20   : > { %291 = sbr.rel (%p288_p8) target bundleno = 319 (0x13f), region = 69  ;;  %s823_s30 = sshll.u32 (!%p288_p8), %s294_s28, 6 }
  0x21   : > { %p333_p9 = scmp.lt.s32.totalorder (!%p288_p8), %s824_s29, 207  ;;  %s1101_s8 = scalar_lea.vmem (!%p288_p8), [#allocation3], %s823_s30 }
  0x22   : > { %p826_p10 = scmp.ne.s32.totalorder (!%p288_p8), %s1000_s14, 0 }
  0x27   : > { %s1198_s29 = smov (!%p333_p9, %s824_s29), 207  ;;  %357 = sbr.rel (%p826_p10) target bundleno = 49 (0x31), region = 77 }
  0x28   : > { %s825_s4 = sshll.u32 %s1198_s29, 2  ;;  %v1010_v16 = vmov (!%p826_p10), 0.0  }
  0x29   : > { %s1099_s7 = scalar_lea.vmem %s1188_s1, %s825_s4  ;;  %358 = vst [vmem:[#allocation2] sm:$0xff] (!%p826_p10), %v1010_v16  ;;  %359 = vst [vmem:[#allocation2 + $0x8] sm:$0xff] (!%p826_p10), %v1010_v16 }
  0x2a   : > { %360 = vst [vmem:[#allocation2 + $0x10] sm:$0xff] (!%p826_p10), %v1010_v16  ;;  %361 = vst [vmem:[#allocation2 + $0x18] sm:$0xff] (!%p826_p10), %v1010_v16 }
  0x2b   : > { %362 = vst [vmem:[#allocation2 + $0x20] sm:$0xff] (!%p826_p10), %v1010_v16  ;;  %363 = vst [vmem:[#allocation2 + $0x28] sm:$0xff] (!%p826_p10), %v1010_v16 }
  0x2c   : > { %364 = vst [vmem:[#allocation2 + $0x30] sm:$0xff] (!%p826_p10), %v1010_v16  ;;  %365 = vst [vmem:[#allocation2 + $0x38] sm:$0xff] (!%p826_p10), %v1010_v16 }
  0x2d   : > { %366 = vst [vmem:[#allocation2 + $0x40] sm:$0xff] (!%p826_p10), %v1010_v16  ;;  %367 = vst [vmem:[#allocation2 + $0x48] sm:$0xff] (!%p826_p10), %v1010_v16 }
  0x2e   : > { %368 = vst [vmem:[#allocation2 + $0x50] sm:$0xff] %v1010_v16  ;;  %369 = vst [vmem:[#allocation2 + $0x58] sm:$0xff] %v1010_v16 }
  0x2f   : > { %370 = vst [vmem:[#allocation2 + $0x60] sm:$0xff] %v1010_v16  ;;  %371 = vst [vmem:[#allocation2 + $0x68] sm:$0xff] %v1010_v16 }
  0x30   : > { %372 = vst [vmem:[#allocation2 + $0x70] sm:$0xff] %v1010_v16  ;;  %373 = vst [vmem:[#allocation2 + $0x78] sm:$0xff] %v1010_v16 }
  0x31 PF: > { %v954_v17 = vld [vmem:[%s1099_s7] sm:$0xff]   ;;  %v955_v18 = vld [vmem:[%s1099_s7 + $0x8] sm:$0xff]   ;;  %v956_v19 = vld [vmem:[%s1099_s7 + $0x10] sm:$0xff]   ;;  %p843_p11 = scmp.ne.s32.totalorder %s1000_s14, 12 }
  0x32   : > { %865 = vmatprep.subr.bf16.mxu0 %v954_v17  ;;  %897 = vmatprep.subr.bf16.mxu1 %v954_v17  ;;  %v957_v20 = vld [vmem:[%s1099_s7 + $0x18] sm:$0xff]   ;;  %v962_v21 = vld [vmem:[%s1101_s8] sm:$0xff]   ;;  %v959_v24 = vld [vmem:[%s1099_s7 + $0x28] sm:$0xff]  }
  0x33   : > { %866 = vmatpush3.bf16.msra.mxu0 %v954_v17  ;;  %905 = vmatpush3.bf16.msra.mxu1 %v954_v17  ;;  %v963_v22 = vld [vmem:[%s1101_s8 + $0x20] sm:$0xff]   ;;  %v960_v25 = vld [vmem:[%s1099_s7 + $0x30] sm:$0xff]   ;;  %v961_v26 = vld [vmem:[%s1099_s7 + $0x38] sm:$0xff]  }
  0x34   : > { %867 = vmatprep.subr.bf16.mxu0 %v955_v18  ;;  %898 = vmatprep.subr.bf16.mxu1 %v955_v18  ;;  %v958_v23 = vld [vmem:[%s1099_s7 + $0x20] sm:$0xff]   ;;  %v964_v27 = vld [vmem:[%s1101_s8 + $0x8] sm:$0xff]   ;;  %v966_v29 = vld [vmem:[%s1101_s8 + $0x10] sm:$0xff]  }
  0x35   : > { %881 = vmatprep.mubr.bf16.mxu0 %v962_v21  ;;  %889 = vmatprep.mubr.bf16.mxu1 %v963_v22  ;;  %v965_v28 = vld [vmem:[%s1101_s8 + $0x28] sm:$0xff]   ;;  %v967_v30 = vld [vmem:[%s1101_s8 + $0x30] sm:$0xff]   ;;  %v968_v31 = vld [vmem:[%s1101_s8 + $0x18] sm:$0xff]  }
  0x36   : > { %v969_v32 = vld [vmem:[%s1101_s8 + $0x38] sm:$0xff]   ;;  %v376_v33 = vld [vmem:[#allocation2 + $0x10] sm:$0xff]  ;;  %v374_v35 = vld [vmem:[#allocation2] sm:$0xff] }
  0x37   : > { %868 = vmatpush3.bf16.msra.mxu0 %v955_v18  ;;  %906 = vmatpush3.bf16.msra.mxu1 %v955_v18  ;;  %v384_v34 = vld [vmem:[#allocation2 + $0x50] sm:$0xff]  ;;  %v382_v36 = vld [vmem:[#allocation2 + $0x40] sm:$0xff]  ;;  %v377_v39 = vld [vmem:[#allocation2 + $0x18] sm:$0xff] }
  0x38   : > { %869 = vmatprep.subr.bf16.mxu0 %v956_v19  ;;  %899 = vmatprep.subr.bf16.mxu1 %v956_v19  ;;  %v385_v40 = vld [vmem:[#allocation2 + $0x58] sm:$0xff]  ;;  %v375_v45 = vld [vmem:[#allocation2 + $0x8] sm:$0xff]  ;;  %v380_v57 = vld [vmem:[#allocation2 + $0x30] sm:$0xff] }
  0x39   : > { %v383_v46 = vld [vmem:[#allocation2 + $0x48] sm:$0xff]  ;;  %v388_v58 = vld [vmem:[#allocation2 + $0x70] sm:$0xff]  ;;  %v378_v59 = vld [vmem:[#allocation2 + $0x20] sm:$0xff] }
  0x3a   : > { %v386_v60 = vld [vmem:[#allocation2 + $0x60] sm:$0xff]  ;;  %v381_v63 = vld [vmem:[#allocation2 + $0x38] sm:$0xff]  ;;  %v379_v5 = vld [vmem:[#allocation2 + $0x28] sm:$0xff] }
  0x3b   : > { %870 = vmatpush3.bf16.msra.mxu0 %v956_v19  ;;  %907 = vmatpush3.bf16.msra.mxu1 %v956_v19  ;;  %v389_v0 = vld [vmem:[#allocation2 + $0x78] sm:$0xff]  ;;  %v387_v6 = vld [vmem:[#allocation2 + $0x68] sm:$0xff]  ;;  %v844_v18 = vld [vmem:[%s1189_s2] ss:$0 sm:$0xff] (!%p843_p11) }
  0x3c   : > { %871 = vmatprep.subr.bf16.mxu0 %v957_v20  ;;  %900 = vmatprep.subr.bf16.mxu1 %v957_v20 }
  0x3f   : > { %872 = vmatpush3.bf16.msra.mxu0 %v957_v20  ;;  %908 = vmatpush3.bf16.msra.mxu1 %v957_v20 }
  0x40   : > { %873 = vmatprep.subr.bf16.mxu0 %v958_v23  ;;  %901 = vmatprep.subr.bf16.mxu1 %v958_v23 }
  0x43   : > { %874 = vmatpush3.bf16.msra.mxu0 %v958_v23  ;;  %909 = vmatpush3.bf16.msra.mxu1 %v958_v23 }
  0x44   : > { %875 = vmatprep.subr.bf16.mxu0 %v959_v24  ;;  %902 = vmatprep.subr.bf16.mxu1 %v959_v24 }
  0x47   : > { %876 = vmatpush3.bf16.msra.mxu0 %v959_v24  ;;  %910 = vmatpush3.bf16.msra.mxu1 %v959_v24 }
  0x48   : > { %877 = vmatprep.subr.bf16.mxu0 %v960_v25  ;;  %903 = vmatprep.subr.bf16.mxu1 %v960_v25 }
  0x4b   : > { %878 = vmatpush3.bf16.msra.mxu0 %v960_v25  ;;  %911 = vmatpush3.bf16.msra.mxu1 %v960_v25 }
  0x4c   : > { %879 = vmatprep.subr.bf16.mxu0 %v961_v26  ;;  %904 = vmatprep.subr.bf16.mxu1 %v961_v26 }
  0x4f   : > { %880 = vmatpush3.bf16.msra.mxu0 %v961_v26  ;;  %912 = vmatpush3.bf16.msra.mxu1 %v961_v26 }
  0x52   : > { %882 = vmatmul.mubr.bf16.vlgmr.msra.gmra.mrb[0].mxu0 %v964_v27  ;;  %890 = vmatmul.mubr.bf16.vlgmr.msra.gmra.mrb[0].mxu1 %v965_v28 }
  0x53   : > { %885 = vmatprep.mubr.bf16.mxu0 %v966_v29  ;;  %893 = vmatprep.mubr.bf16.mxu1 %v967_v30 }
  0x5a   : > { %886 = vmatmul.mubr.bf16.gmra.mrb[4].mxu0 %v968_v31  ;;  %894 = vmatmul.mubr.bf16.gmra.mrb[4].mxu1 %v969_v32 }
 0x125   : > { %v883_v37 = vpop.f32.mrb[0].mxu0  ;;  %v891_v38 = vpop.f32.mrb[0].mxu1 }
 0x126   : > { %v617_v41 = vadd.f32 %v883_v37, %v376_v33  ;;  %v625_v42 = vadd.f32 %v891_v38, %v384_v34  ;;  %v552_v43 = vpop.f32.mrb[1].mxu0  ;;  %v584_v44 = vpop.f32.mrb[1].mxu1 }
 0x127   : > { %v615_v47 = vadd.f32 %v552_v43, %v374_v35  ;;  %v623_v48 = vadd.f32 %v584_v44, %v382_v36  ;;  %v884_v49 = vpop.f32.mrb[2].mxu0  ;;  %v892_v50 = vpop.f32.mrb[2].mxu1 }
 0x128   : > { %633 = vst [vmem:[#allocation2 + $0x10] sm:$0xff] %v617_v41  ;;  %641 = vst [vmem:[#allocation2 + $0x50] sm:$0xff] %v625_v42  ;;  %v618_v51 = vadd.f32 %v884_v49, %v377_v39  ;;  %v626_v52 = vadd.f32 %v892_v50, %v385_v40  ;;  %v555_v53 = vpop.f32.mrb[3].mxu0  ;;  %v587_v54 = vpop.f32.mrb[3].mxu1 }
 0x129   : > { %631 = vst [vmem:[#allocation2] sm:$0xff] %v615_v47  ;;  %639 = vst [vmem:[#allocation2 + $0x40] sm:$0xff] %v623_v48  ;;  %v616_v55 = vadd.f32 %v555_v53, %v375_v45  ;;  %v624_v56 = vadd.f32 %v587_v54, %v383_v46 }
 0x12a   : > { %634 = vst [vmem:[#allocation2 + $0x18] sm:$0xff] %v618_v51  ;;  %642 = vst [vmem:[#allocation2 + $0x58] sm:$0xff] %v626_v52 }
 0x12b   : > { %632 = vst [vmem:[#allocation2 + $0x8] sm:$0xff] %v616_v55  ;;  %640 = vst [vmem:[#allocation2 + $0x48] sm:$0xff] %v624_v56 }
 0x12d   : > { %v887_v61 = vpop.f32.mrb[4].mxu0  ;;  %v895_v62 = vpop.f32.mrb[4].mxu1  ;;  %650 = sbr.rel (%p843_p11) target bundleno = 319 (0x13f), region = 81 }
 0x12e   : > { %v621_v1 = vadd.f32 %v887_v61, %v380_v57  ;;  %v629_v2 = vadd.f32 %v895_v62, %v388_v58  ;;  %v568_v3 = vpop.f32.mrb[5].mxu0  ;;  %v600_v4 = vpop.f32.mrb[5].mxu1 }
 0x12f   : > { %v619_v7 = vadd.f32 %v568_v3, %v378_v59  ;;  %v627_v8 = vadd.f32 %v600_v4, %v386_v60  ;;  %v888_v9 = vpop.f32.mrb[6].mxu0  ;;  %v896_v10 = vpop.f32.mrb[6].mxu1  ;;  %v653_v22 = vld [vmem:[#allocation2 + $0x10] sm:$0xff] (!%p843_p11) }
 0x130   : > { %637 = vst [vmem:[#allocation2 + $0x30] sm:$0xff] %v621_v1  ;;  %645 = vst [vmem:[#allocation2 + $0x70] sm:$0xff] %v629_v2  ;;  %v622_v11 = vadd.f32 %v888_v9, %v381_v63  ;;  %v630_v12 = vadd.f32 %v896_v10, %v389_v0  ;;  %v571_v13 = vpop.f32.mrb[7].mxu0  ;;  %v603_v14 = vpop.f32.mrb[7].mxu1  ;;  %v651_v17 = vld [vmem:[#allocation2] sm:$0xff] (!%p843_p11)  ;;  %v676_v25 = vadd.f32 (!%p843_p11), %v844_v18, %v653_v22  ;;  %v661_v36 = vld [vmem:[#allocation2 + $0x50] sm:$0xff] (!%p843_p11) }
 0x131   : > { %635 = vst [vmem:[#allocation2 + $0x20] sm:$0xff] %v619_v7  ;;  %643 = vst [vmem:[#allocation2 + $0x60] sm:$0xff] %v627_v8  ;;  %v620_v15 = vadd.f32 %v571_v13, %v379_v5  ;;  %v628_v16 = vadd.f32 %v603_v14, %v387_v6  ;;  %v674_v20 = vadd.f32 (!%p843_p11), %v844_v18, %v651_v17  ;;  %v654_v23 = vld [vmem:[#allocation2 + $0x18] sm:$0xff] (!%p843_p11)  ;;  %v659_v34 = vld [vmem:[#allocation2 + $0x40] sm:$0xff] (!%p843_p11) }
 0x132   : > { %638 = vst [vmem:[#allocation2 + $0x38] sm:$0xff] %v622_v11  ;;  %646 = vst [vmem:[#allocation2 + $0x78] sm:$0xff] %v630_v12  ;;  %v652_v19 = vld [vmem:[#allocation2 + $0x8] sm:$0xff] (!%p843_p11)  ;;  %v677_v26 = vadd.f32 (!%p843_p11), %v844_v18, %v654_v23  ;;  %v682_v37 = vadd.f32 (!%p843_p11), %v844_v18, %v659_v34  ;;  %v684_v39 = vadd.f32 (!%p843_p11), %v844_v18, %v661_v36  ;;  %v662_v40 = vld [vmem:[#allocation2 + $0x58] sm:$0xff] (!%p843_p11) }
 0x133   : > { %636 = vst [vmem:[#allocation2 + $0x28] sm:$0xff] %v620_v15  ;;  %644 = vst [vmem:[#allocation2 + $0x68] sm:$0xff] %v628_v16  ;;  %v675_v21 = vadd.f32 (!%p843_p11), %v844_v18, %v652_v19  ;;  %v660_v35 = vld [vmem:[#allocation2 + $0x48] sm:$0xff] (!%p843_p11)  ;;  %v685_v43 = vadd.f32 (!%p843_p11), %v844_v18, %v662_v40 }
 0x134   : > { %690 = vst [vmem:[%s1190_s3] sm:$0xff] %v674_v20  ;;  %692 = vst [vmem:[%s1190_s3 + $0x10] sm:$0xff] %v676_v25  ;;  %v683_v38 = vadd.f32 %v844_v18, %v660_v35 }
 0x135   : > { %691 = vst [vmem:[%s1190_s3 + $0x8] sm:$0xff] %v675_v21  ;;  %693 = vst [vmem:[%s1190_s3 + $0x18] sm:$0xff] %v677_v26 }
 0x136   : > { %698 = vst [vmem:[%s1190_s3 + $0x40] sm:$0xff] %v682_v37  ;;  %699 = vst [vmem:[%s1190_s3 + $0x48] sm:$0xff] %v683_v38 }
 0x137   : > { %v657_v29 = vld [vmem:[#allocation2 + $0x30] sm:$0xff]  ;;  %700 = vst [vmem:[%s1190_s3 + $0x50] sm:$0xff] %v684_v39  ;;  %701 = vst [vmem:[%s1190_s3 + $0x58] sm:$0xff] %v685_v43 }
 0x138   : > { %v655_v24 = vld [vmem:[#allocation2 + $0x20] sm:$0xff]  ;;  %v680_v32 = vadd.f32 %v844_v18, %v657_v29  ;;  %v665_v46 = vld [vmem:[#allocation2 + $0x70] sm:$0xff] }
 0x139   : > { %v678_v27 = vadd.f32 %v844_v18, %v655_v24  ;;  %v658_v30 = vld [vmem:[#allocation2 + $0x38] sm:$0xff]  ;;  %v663_v41 = vld [vmem:[#allocation2 + $0x60] sm:$0xff]  ;;  %v688_v48 = vadd.f32 %v844_v18, %v665_v46 }
 0x13a   : > { %v656_v28 = vld [vmem:[#allocation2 + $0x28] sm:$0xff]  ;;  %v681_v33 = vadd.f32 %v844_v18, %v658_v30  ;;  %696 = vst [vmem:[%s1190_s3 + $0x30] sm:$0xff] %v680_v32  ;;  %v686_v44 = vadd.f32 %v844_v18, %v663_v41  ;;  %v666_v47 = vld [vmem:[#allocation2 + $0x78] sm:$0xff] }
 0x13b   : > { %v679_v31 = vadd.f32 %v844_v18, %v656_v28  ;;  %694 = vst [vmem:[%s1190_s3 + $0x20] sm:$0xff] %v678_v27  ;;  %v664_v42 = vld [vmem:[#allocation2 + $0x68] sm:$0xff]  ;;  %v689_v49 = vadd.f32 %v844_v18, %v666_v47  ;;  %704 = vst [vmem:[%s1190_s3 + $0x70] sm:$0xff] %v688_v48 }
 0x13c   : > { %697 = vst [vmem:[%s1190_s3 + $0x38] sm:$0xff] %v681_v33  ;;  %v687_v45 = vadd.f32 %v844_v18, %v664_v42  ;;  %702 = vst [vmem:[%s1190_s3 + $0x60] sm:$0xff] %v686_v44 }
 0x13d   : > { %695 = vst [vmem:[%s1190_s3 + $0x28] sm:$0xff] %v679_v31  ;;  %705 = vst [vmem:[%s1190_s3 + $0x78] sm:$0xff] %v689_v49 }
 0x13e   : > { %703 = vst [vmem:[%s1190_s3 + $0x68] sm:$0xff] %v687_v45 }
 0x13f PF: > { %s13_s16 = sadd.s32 1, %s1008_s16   ;;  %s1191_s12 = smov %s996_s13 }
 0x140   : > { %p10_p12 = scmp.ge.s32.totalorder %s13_s16, 15   ;;  %s1192_s13 = smov %s1066_s20 }
 0x141   : > { %s1193_s14 = smov %s1004_s15  ;;  %s1194_s15 = smov %s1196_s17 }
 0x142   :  { %12 = sbr.rel (!%p10_p12) target bundleno = 3 (0x3), region = 122 }

// kernel: dtn_forward.17
= control target key start
LH: loop header
LB: loop body
LE: loop exit
PB: predicated region body
PF: predicated region fallthrough
CT: control target
= control target key end

     0   :  { %v105_v0 = vmov 0.0   ;;  %s187_s1 = inlined_call_operand.vmem [shape: f32[1,128], index: 1, kind: output, shape index: {0}]   ;;  %s188_s2 = inlined_call_operand.vmem [shape: f32[1,128], index: 2, kind: output, shape index: {1}]   ;;  %s189_s0 = inlined_call_operand.vmem [shape: f32[128,128], index: 0, kind: input, shape index: {}]  }
   0x1   :  { %14 = vst [vmem:[%s187_s1] sm:$0x1] %v105_v0  ;;  %15 = vst [vmem:[%s188_s2] sm:$0x1] %v105_v0  ;;  %v16_v1 = vld [vmem:[%s189_s0] sm:$0xff]  ;;  %v17_v2 = vld [vmem:[%s189_s0 + $0x8] sm:$0xff] }
   0x2   :  { %v18_v3 = vld [vmem:[%s189_s0 + $0x10] sm:$0xff]  ;;  %v19_v4 = vld [vmem:[%s189_s0 + $0x18] sm:$0xff]  ;;  %v33_v5 = vadd.f32 %v17_v2, %v16_v1  ;;  %v57_v6 = vmul.f32 %v16_v1, %v16_v1  ;;  %v58_v7 = vmul.f32 %v17_v2, %v17_v2  ;;  %v20_v9 = vld [vmem:[%s189_s0 + $0x20] sm:$0xff] }
   0x3   :  { %v59_v8 = vmul.f32 %v18_v3, %v18_v3  ;;  %v60_v11 = vmul.f32 %v19_v4, %v19_v4  ;;  %v21_v13 = vld [vmem:[%s189_s0 + $0x28] sm:$0xff]  ;;  %v61_v15 = vmul.f32 %v20_v9, %v20_v9  ;;  %v22_v17 = vld [vmem:[%s189_s0 + $0x30] sm:$0xff]  ;;  %v23_v21 = vld [vmem:[%s189_s0 + $0x38] sm:$0xff] }
   0x4   :  { %v34_v10 = vadd.f32 %v33_v5, %v18_v3  ;;  %v73_v12 = vadd.f32 %v58_v7, %v57_v6  ;;  %v62_v19 = vmul.f32 %v21_v13, %v21_v13  ;;  %v63_v23 = vmul.f32 %v22_v17, %v22_v17  ;;  %v24_v25 = vld [vmem:[%s189_s0 + $0x40] sm:$0xff]  ;;  %v25_v29 = vld [vmem:[%s189_s0 + $0x48] sm:$0xff]  ;;  %v26_v33 = vld [vmem:[%s189_s0 + $0x50] sm:$0xff] }
   0x5   :  { %v64_v27 = vmul.f32 %v23_v21, %v23_v21  ;;  %v65_v31 = vmul.f32 %v24_v25, %v24_v25  ;;  %v66_v35 = vmul.f32 %v25_v29, %v25_v29  ;;  %v27_v37 = vld [vmem:[%s189_s0 + $0x58] sm:$0xff]  ;;  %v67_v39 = vmul.f32 %v26_v33, %v26_v33  ;;  %v28_v41 = vld [vmem:[%s189_s0 + $0x60] sm:$0xff]  ;;  %v29_v45 = vld [vmem:[%s189_s0 + $0x68] sm:$0xff] }
   0x6   :  { %v35_v14 = vadd.f32 %v34_v10, %v19_v4  ;;  %v74_v16 = vadd.f32 %v73_v12, %v59_v8  ;;  %v68_v43 = vmul.f32 %v27_v37, %v27_v37  ;;  %v69_v47 = vmul.f32 %v28_v41, %v28_v41  ;;  %v30_v49 = vld [vmem:[%s189_s0 + $0x70] sm:$0xff]  ;;  %v31_v53 = vld [vmem:[%s189_s0 + $0x78] sm:$0xff] }
   0x7   :  { %v70_v51 = vmul.f32 %v29_v45, %v29_v45  ;;  %v71_v55 = vmul.f32 %v30_v49, %v30_v49  ;;  %v72_v58 = vmul.f32 %v31_v53, %v31_v53 }
   0x8   :  { %v36_v18 = vadd.f32 %v35_v14, %v20_v9  ;;  %v75_v20 = vadd.f32 %v74_v16, %v60_v11  ;;  %v32_v7 = vld [vmem:[%s187_s1] sm:$0x1] }
   0x9   :  { %v56_v12 = vld [vmem:[%s188_s2] sm:$0x1] }
   0xa   :  { %v37_v22 = vadd.f32 %v36_v18, %v21_v13  ;;  %v76_v24 = vadd.f32 %v75_v20, %v61_v15 }
   0xc   :  { %v38_v26 = vadd.f32 %v37_v22, %v22_v17  ;;  %v77_v28 = vadd.f32 %v76_v24, %v62_v19 }
   0xe   :  { %v39_v30 = vadd.f32 %v38_v26, %v23_v21  ;;  %v78_v32 = vadd.f32 %v77_v28, %v63_v23 }
  0x10   :  { %v40_v34 = vadd.f32 %v39_v30, %v24_v25  ;;  %v79_v36 = vadd.f32 %v78_v32, %v64_v27 }
  0x12   :  { %v41_v38 = vadd.f32 %v40_v34, %v25_v29  ;;  %v80_v40 = vadd.f32 %v79_v36, %v65_v31 }
  0x14   :  { %v42_v42 = vadd.f32 %v41_v38, %v26_v33  ;;  %v81_v44 = vadd.f32 %v80_v40, %v66_v35 }
  0x16   :  { %v43_v46 = vadd.f32 %v42_v42, %v27_v37  ;;  %v82_v48 = vadd.f32 %v81_v44, %v67_v39 }
  0x18   :  { %v44_v50 = vadd.f32 %v43_v46, %v28_v41  ;;  %v83_v52 = vadd.f32 %v82_v48, %v68_v43 }
  0x1a   :  { %v45_v54 = vadd.f32 %v44_v50, %v29_v45  ;;  %v84_v56 = vadd.f32 %v83_v52, %v69_v47 }
  0x1c   :  { %v46_v57 = vadd.f32 %v45_v54, %v30_v49  ;;  %v85_v59 = vadd.f32 %v84_v56, %v70_v51 }
  0x1e   :  { %v47_v60 = vadd.f32 %v46_v57, %v31_v53  ;;  %v86_v61 = vadd.f32 %v85_v59, %v71_v55 }
  0x20   :  { %v48_v62 = vrot.slane %v47_v60, 4  ;;  %v87_v63 = vadd.f32 %v86_v61, %v72_v58 }
  0x22   :  { %v49_v0 = vadd.f32 %v48_v62, %v47_v60  ;;  %v88_v1 = vrot.slane %v87_v63, 4 }
  0x24   :  { %v50_v2 = vrot.slane %v49_v0, 2  ;;  %v89_v3 = vadd.f32 %v88_v1, %v87_v63 }
  0x26   :  { %v51_v4 = vadd.f32 %v50_v2, %v49_v0  ;;  %v90_v5 = vrot.slane %v89_v3, 2 }
  0x28   :  { %v52_v6 = vrot.slane %v51_v4, 1  ;;  %v91_v8 = vadd.f32 %v90_v5, %v89_v3 }
  0x2a   :  { %v53_v9 = vadd.f32 %v52_v6, %v51_v4  ;;  %v92_v10 = vrot.slane %v91_v8, 1 }
  0x2c   :  { %v54_v11 = vadd.f32 %v53_v9, %v32_v7  ;;  %v93_v13 = vadd.f32 %v92_v10, %v91_v8 }
  0x2e   :  { %55 = vst [vmem:[%s187_s1] sm:$0x1] %v54_v11  ;;  %v94_v14 = vadd.f32 %v93_v13, %v56_v12 }
  0x30   :  { %95 = vst [vmem:[%s188_s2] sm:$0x1] %v94_v14 }

// kernel: dtn_forward.18
= control target key start
LH: loop header
LB: loop body
LE: loop exit
PB: predicated region body
PF: predicated region fallthrough
CT: control target
= control target key end

     0   :  { %s254_s0 = inlined_call_operand.vmem [shape: f32[128,128], index: 0, kind: input, shape index: {}]   ;;  %s255_s1 = inlined_call_operand.vmem [shape: f32[1,128], index: 1, kind: input, shape index: {}]   ;;  %s256_s2 = inlined_call_operand.vmem [shape: f32[1,128], index: 2, kind: input, shape index: {}]   ;;  %s257_s3 = inlined_call_operand.vmem [shape: f32[128,128], index: 3, kind: output, shape index: {}]  }
   0x1   :  { %v14_v0 = vld [vmem:[%s254_s0] sm:$0xff]  ;;  %v15_v4 = vld [vmem:[%s254_s0 + $0x8] sm:$0xff]  ;;  %v16_v5 = vld [vmem:[%s254_s0 + $0x10] sm:$0xff] }
   0x2   :  { %v112_v1 = vld [vmem:[%s255_s1] ss:$0 sm:$0xff]  ;;  %v17_v6 = vld [vmem:[%s254_s0 + $0x18] sm:$0xff]  ;;  %v19_v11 = vld [vmem:[%s254_s0 + $0x28] sm:$0xff] }
   0x3   :  { %v143_v2 = vld [vmem:[%s256_s2] ss:$0 sm:$0xff]  ;;  %v37_v3 = vmul.f32 %v112_v1, %v14_v0  ;;  %v38_v7 = vmul.f32 %v112_v1, %v15_v4  ;;  %v39_v8 = vmul.f32 %v112_v1, %v16_v5  ;;  %v40_v9 = vmul.f32 %v112_v1, %v17_v6  ;;  %v20_v12 = vld [vmem:[%s254_s0 + $0x30] sm:$0xff]  ;;  %v21_v17 = vld [vmem:[%s254_s0 + $0x38] sm:$0xff] }
   0x4   :  { %v18_v10 = vld [vmem:[%s254_s0 + $0x20] sm:$0xff]  ;;  %v42_v15 = vmul.f32 %v112_v1, %v19_v11  ;;  %v43_v16 = vmul.f32 %v112_v1, %v20_v12  ;;  %v44_v21 = vmul.f32 %v112_v1, %v21_v17  ;;  %v23_v27 = vld [vmem:[%s254_s0 + $0x48] sm:$0xff]  ;;  %v24_v28 = vld [vmem:[%s254_s0 + $0x50] sm:$0xff] }
   0x5   :  { %v60_v13 = vadd.f32 %v143_v2, %v37_v3  ;;  %v41_v14 = vmul.f32 %v112_v1, %v18_v10  ;;  %v61_v18 = vadd.f32 %v143_v2, %v38_v7  ;;  %v62_v19 = vadd.f32 %v143_v2, %v39_v8  ;;  %v22_v22 = vld [vmem:[%s254_s0 + $0x40] sm:$0xff]  ;;  %v25_v29 = vld [vmem:[%s254_s0 + $0x58] sm:$0xff]  ;;  %v27_v35 = vld [vmem:[%s254_s0 + $0x68] sm:$0xff] }
   0x6   :  { %v63_v20 = vadd.f32 %v143_v2, %v40_v9  ;;  %v65_v25 = vadd.f32 %v143_v2, %v42_v15  ;;  %v66_v26 = vadd.f32 %v143_v2, %v43_v16  ;;  %v67_v33 = vadd.f32 %v143_v2, %v44_v21  ;;  %v26_v34 = vld [vmem:[%s254_s0 + $0x60] sm:$0xff]  ;;  %v28_v36 = vld [vmem:[%s254_s0 + $0x70] sm:$0xff]  ;;  %v29_v41 = vld [vmem:[%s254_s0 + $0x78] sm:$0xff] }
   0x7   :  { %v76_v23 = vmax.f32 %v60_v13, 0.0  ;;  %v64_v24 = vadd.f32 %v143_v2, %v41_v14  ;;  %v77_v30 = vmax.f32 %v61_v18, 0.0  ;;  %v78_v31 = vmax.f32 %v62_v19, 0.0 }
   0x8   :  { %v79_v32 = vmax.f32 %v63_v20, 0.0  ;;  %v81_v38 = vmax.f32 %v65_v25, 0.0  ;;  %v82_v39 = vmax.f32 %v66_v26, 0.0  ;;  %v45_v40 = vmul.f32 %v112_v1, %v22_v22 }
   0x9   :  { %92 = vst [vmem:[%s257_s3] sm:$0xff] %v76_v23  ;;  %v80_v37 = vmax.f32 %v64_v24, 0.0  ;;  %93 = vst [vmem:[%s257_s3 + $0x8] sm:$0xff] %v77_v30  ;;  %v83_v42 = vmax.f32 %v67_v33, 0.0  ;;  %v46_v43 = vmul.f32 %v112_v1, %v23_v27  ;;  %v47_v44 = vmul.f32 %v112_v1, %v24_v28 }
   0xa   :  { %94 = vst [vmem:[%s257_s3 + $0x10] sm:$0xff] %v78_v31  ;;  %95 = vst [vmem:[%s257_s3 + $0x18] sm:$0xff] %v79_v32  ;;  %v48_v45 = vmul.f32 %v112_v1, %v25_v29  ;;  %v68_v46 = vadd.f32 %v143_v2, %v45_v40  ;;  %v49_v47 = vmul.f32 %v112_v1, %v26_v34 }
   0xb   :  { %96 = vst [vmem:[%s257_s3 + $0x20] sm:$0xff] %v80_v37  ;;  %97 = vst [vmem:[%s257_s3 + $0x28] sm:$0xff] %v81_v38  ;;  %v50_v48 = vmul.f32 %v112_v1, %v27_v35  ;;  %v51_v49 = vmul.f32 %v112_v1, %v28_v36  ;;  %v69_v50 = vadd.f32 %v143_v2, %v46_v43 }
   0xc   :  { %98 = vst [vmem:[%s257_s3 + $0x30] sm:$0xff] %v82_v39  ;;  %99 = vst [vmem:[%s257_s3 + $0x38] sm:$0xff] %v83_v42  ;;  %v70_v51 = vadd.f32 %v143_v2, %v47_v44  ;;  %v71_v52 = vadd.f32 %v143_v2, %v48_v45  ;;  %v52_v53 = vmul.f32 %v112_v1, %v29_v41  ;;  %v84_v54 = vmax.f32 %v68_v46, 0.0 }
   0xd   :  { %v72_v55 = vadd.f32 %v143_v2, %v49_v47  ;;  %v73_v56 = vadd.f32 %v143_v2, %v50_v48  ;;  %v74_v57 = vadd.f32 %v143_v2, %v51_v49  ;;  %v85_v58 = vmax.f32 %v69_v50, 0.0 }
   0xe   :  { %v86_v59 = vmax.f32 %v70_v51, 0.0  ;;  %v87_v60 = vmax.f32 %v71_v52, 0.0  ;;  %v75_v61 = vadd.f32 %v143_v2, %v52_v53  ;;  %100 = vst [vmem:[%s257_s3 + $0x40] sm:$0xff] %v84_v54 }
   0xf   :  { %v88_v62 = vmax.f32 %v72_v55, 0.0  ;;  %v89_v63 = vmax.f32 %v73_v56, 0.0  ;;  %v90_v0 = vmax.f32 %v74_v57, 0.0  ;;  %101 = vst [vmem:[%s257_s3 + $0x48] sm:$0xff] %v85_v58 }
  0x10   :  { %102 = vst [vmem:[%s257_s3 + $0x50] sm:$0xff] %v86_v59  ;;  %103 = vst [vmem:[%s257_s3 + $0x58] sm:$0xff] %v87_v60  ;;  %v91_v1 = vmax.f32 %v75_v61, 0.0 }
  0x11   :  { %104 = vst [vmem:[%s257_s3 + $0x60] sm:$0xff] %v88_v62  ;;  %105 = vst [vmem:[%s257_s3 + $0x68] sm:$0xff] %v89_v63 }
  0x12   :  { %106 = vst [vmem:[%s257_s3 + $0x70] sm:$0xff] %v90_v0  ;;  %107 = vst [vmem:[%s257_s3 + $0x78] sm:$0xff] %v91_v1 }

// kernel: dtn_forward.19
= control target key start
LH: loop header
LB: loop body
LE: loop exit
PB: predicated region body
PF: predicated region fallthrough
CT: control target
= control target key end

     0   :  { %s869_s12 = smov 0   ;;  %s871_s13 = smov 0   ;;  %s988_s0 = inlined_call_operand.vmem [shape: bf16[32,3200], index: 0, kind: input, shape index: {}]   ;;  %s989_s1 = inlined_call_operand.vmem [shape: bf16[3200,256], index: 1, kind: input, shape index: {}]   ;;  %s990_s2 = inlined_call_operand.vmem [shape: f32[1,256], index: 2, kind: input, shape index: {}]   ;;  %s991_s3 = inlined_call_operand.vmem [shape: f32[32,256], index: 3, kind: output, shape index: {}]  }
   0x1   :  { %s873_s14 = smov 0   ;;  %s875_s15 = smov 0  }
   0x2   :  { %s877_s16 = smov 0  }
   0x3 LB: > { %s25_s17 = sadd.s32 1, %s841_s15  ;;  %p48_p1 = scmp.ne.s32.totalorder %s833_s13, %s829_s12  ;;  %s845_s16 = sphi %s877_s16, %s13_s16   ;;  %s841_s15 = sphi %s875_s15, %s995_s15   ;;  %s837_s14 = sphi %s873_s14, %s994_s14   ;;  %s833_s13 = sphi %s871_s13, %s993_s13   ;;  %s829_s12 = sphi %s869_s12, %s992_s12  }
   0x4   : > { %p26_p0 = scmp.ge.s32.totalorder %s25_s17, 25  ;;  %p49_p2 = scmp.eq.s32.totalorder %s845_s16, 0 }
   0x5   : > { %s41_s19 = sadd.s32 1, %s833_s13  ;;  %p690_p5 = scmp.ge.s32.totalorder %s845_s16, 25 }
   0x6   : > { %s997_s17 = smov (%p26_p0, %s25_s17), 0  ;;  %p50_p3 = por %p49_p2, %p48_p1 }
   0x7   : > { %s37_s18 = ssub.s32 %s841_s15, %s997_s17  ;;  %164 = sbr.rel (%p690_p5) target bundleno = 21 (0x15), region = 20 }
   0x8   : > { %p39_p4 = scmp.eq.s32.totalorder %s37_s18, 0 }
   0xa   : > { %s904_s20 = scalar_select %p39_p4, %s833_s13, %s41_s19  }
   0xe   : > { %167 = sbr.rel (!%p50_p3) target bundleno = 21 (0x15), region = 24  ;;  %s169_s21 = sand.u32 (%p50_p3), 1, %s833_s13  }
   0xf   : > { %s692_s22 = sshll.u32 (%p50_p3), %s841_s15, 2  ;;  %s691_s23 = sshll.u32 (%p50_p3), %s169_s21, 4 }
  0x10   : > { %s176_s26 = scalar_lea.vmem (%p50_p3), %s988_s0, %s692_s22  ;;  %s171_s27 = scalar_lea.vmem (%p50_p3), [#allocation3], %s691_s23 }
  0x11   : > { %v192_v0 = vld [vmem:[%s176_s26] sm:$0xf] (%p50_p3)  ;;  %v194_v1 = vld [vmem:[%s176_s26 + $0x64] sm:$0xf] (%p50_p3)  ;;  %v196_v2 = vld [vmem:[%s176_s26 + $0xc8] sm:$0xf] (%p50_p3) }
  0x12   : > { %193 = vst [vmem:[%s171_s27] sm:$0xf] (%p50_p3), %v192_v0  ;;  %195 = vst [vmem:[%s171_s27 + $0x4] sm:$0xf] (%p50_p3), %v194_v1  ;;  %v198_v3 = vld [vmem:[%s176_s26 + $0x12c] sm:$0xf] (%p50_p3) }
  0x13   : > { %197 = vst [vmem:[%s171_s27 + $0x8] sm:$0xf] (%p50_p3), %v196_v2  ;;  %199 = vst [vmem:[%s171_s27 + $0xc] sm:$0xf] (%p50_p3), %v198_v3 }
  0x15 PF: > { %p693_p6 = scmp.ge.s32.totalorder %s845_s16, 1  ;;  %p244_p7 = scmp.lt.s32.totalorder %s845_s16, 26 }
  0x17   : > { %p245_p8 = pnand %p693_p6, %p244_p7 }
  0x18   : > { %s251_s28 = sand.u32 (!%p245_p8), 1, %s829_s12   ;;  %s695_s29 = sshll.u32 (!%p245_p8), %s837_s14, 4 }
  0x19   : > { %248 = sbr.rel (%p245_p8) target bundleno = 302 (0x12e), region = 69  ;;  %s916_s30 = sshll.u32 (!%p245_p8), %s251_s28, 4 }
  0x1a   : > { %p296_p9 = scmp.lt.s32.totalorder (!%p245_p8), %s695_s29, 399  ;;  %s253_s8 = scalar_lea.vmem (!%p245_p8), [#allocation3], %s916_s30 }
  0x1b   : > { %p698_p10 = scmp.ne.s32.totalorder (!%p245_p8), %s837_s14, 0 }
  0x20   : > { %s999_s29 = smov (!%p296_p9, %s695_s29), 399  ;;  %327 = sbr.rel (%p698_p10) target bundleno = 39 (0x27), region = 77 }
  0x21   : > { %s722_s4 = sshll.u32 %s999_s29, 3  ;;  %v847_v4 = vmov (!%p698_p10), 0.0  }
  0x22   : > { %s921_s7 = scalar_lea.vmem %s989_s1, %s722_s4  ;;  %328 = vst [vmem:[#allocation2] sm:$0xff] (!%p698_p10), %v847_v4  ;;  %329 = vst [vmem:[#allocation2 + $0x8] sm:$0xff] (!%p698_p10), %v847_v4 }
  0x23   : > { %330 = vst [vmem:[#allocation2 + $0x10] sm:$0xff] (!%p698_p10), %v847_v4  ;;  %331 = vst [vmem:[#allocation2 + $0x18] sm:$0xff] (!%p698_p10), %v847_v4 }
  0x24   : > { %332 = vst [vmem:[#allocation2 + $0x20] sm:$0xff] (!%p698_p10), %v847_v4  ;;  %333 = vst [vmem:[#allocation2 + $0x28] sm:$0xff] (!%p698_p10), %v847_v4 }
  0x25   : > { %334 = vst [vmem:[#allocation2 + $0x30] sm:$0xff] (!%p698_p10), %v847_v4  ;;  %335 = vst [vmem:[#allocation2 + $0x38] sm:$0xff] (!%p698_p10), %v847_v4 }
  0x27 PF: > { %v781_v5 = vld [vmem:[%s921_s7 + $0x4] ss:$8 sps:$4 sm:$0xff]   ;;  %v783_v6 = vld [vmem:[%s921_s7] ss:$8 sps:$4 sm:$0xff]   ;;  %v848_v7 = vmov 0   ;;  %p717_p11 = scmp.ne.s32.totalorder %s837_s14, 24 }
  0x28   : > { %488 = vmatprep.mubr.bf16.mxu0 %v848_v7  ;;  %498 = vmatprep.mubr.bf16.mxu1 %v848_v7  ;;  %v784_v8 = vld [vmem:[%s921_s7 + $0x14] ss:$8 sps:$4 sm:$0xff]   ;;  %v786_v9 = vld [vmem:[%s921_s7 + $0x10] ss:$8 sps:$4 sm:$0xff]   ;;  %v787_v10 = vld [vmem:[%s921_s7 + $0x24] ss:$8 sps:$4 sm:$0xff]   ;;  %v539_v48 = vlaneseq (!%p717_p11) }
  0x29   : > { %456 = vmatprep.subr.bf16.mxu0 %v781_v5  ;;  %723 = vmatprep.subr.bf16.mxu1 %v781_v5  ;;  %v789_v11 = vld [vmem:[%s921_s7 + $0x20] ss:$8 sps:$4 sm:$0xff]   ;;  %v790_v12 = vld [vmem:[%s921_s7 + $0x34] ss:$8 sps:$4 sm:$0xff]   ;;  %v792_v13 = vld [vmem:[%s921_s7 + $0x30] ss:$8 sps:$4 sm:$0xff]  }
  0x2a   : > { %457 = vmatpush1.bf16.msra.mxu0 %v783_v6  ;;  %731 = vmatpush1.bf16.msra.mxu1 %v783_v6  ;;  %v793_v14 = vld [vmem:[%s921_s7 + $0x44] ss:$8 sps:$4 sm:$0xff]   ;;  %v795_v15 = vld [vmem:[%s921_s7 + $0x40] ss:$8 sps:$4 sm:$0xff]   ;;  %v796_v16 = vld [vmem:[%s921_s7 + $0x54] ss:$8 sps:$4 sm:$0xff]  }
  0x2b   : > { %458 = vmatprep.subr.bf16.mxu0 %v784_v8  ;;  %724 = vmatprep.subr.bf16.mxu1 %v784_v8  ;;  %v798_v17 = vld [vmem:[%s921_s7 + $0x50] ss:$8 sps:$4 sm:$0xff]   ;;  %v799_v18 = vld [vmem:[%s921_s7 + $0x64] ss:$8 sps:$4 sm:$0xff]   ;;  %v801_v19 = vld [vmem:[%s921_s7 + $0x60] ss:$8 sps:$4 sm:$0xff]  }
  0x2c   : > { %v802_v20 = vld [vmem:[%s921_s7 + $0x74] ss:$8 sps:$4 sm:$0xff]   ;;  %v804_v21 = vld [vmem:[%s921_s7 + $0x70] ss:$8 sps:$4 sm:$0xff]   ;;  %v336_v24 = vld [vmem:[#allocation2] sm:$0xff]  ;;  %v540_v49 = vshrl.u32 (!%p717_p11), %v539_v48, 7 }
  0x2d   : > { %v805_v22 = vld [vmem:[%s253_s8] sm:$0xff]   ;;  %v806_v23 = vld [vmem:[%s253_s8 + $0x8] sm:$0xff]  }
  0x2e   : > { %459 = vmatpush1.bf16.msra.mxu0 %v786_v9  ;;  %732 = vmatpush1.bf16.msra.mxu1 %v786_v9  ;;  %v340_v25 = vld [vmem:[#allocation2 + $0x20] sm:$0xff]  ;;  %v337_v26 = vld [vmem:[#allocation2 + $0x8] sm:$0xff]  ;;  %v338_v30 = vld [vmem:[#allocation2 + $0x10] sm:$0xff]  ;;  %v541_v52 = vsub.s32 (!%p717_p11), 0, %v540_v49  ;;  %v545_v54 = vsub.s32 (!%p717_p11), 1, %v540_v49 }
  0x2f   : > { %460 = vmatprep.subr.bf16.mxu0 %v787_v10  ;;  %725 = vmatprep.subr.bf16.mxu1 %v787_v10  ;;  %v341_v27 = vld [vmem:[#allocation2 + $0x28] sm:$0xff]  ;;  %v342_v31 = vld [vmem:[#allocation2 + $0x30] sm:$0xff]  ;;  %v339_v36 = vld [vmem:[#allocation2 + $0x18] sm:$0xff] }
  0x30   : > { %v343_v37 = vld [vmem:[#allocation2 + $0x38] sm:$0xff]  ;;  %v537_v50 = vld [vmem:[%s990_s2] sm:$0x3] (!%p717_p11) }
  0x31   : > { %v542_v58 = vrot.slane (!%p717_p11), %v537_v50, %v541_v52  ;;  %v546_v59 = vrot.slane (!%p717_p11), %v537_v50, %v545_v54 }
  0x32   : > { %461 = vmatpush1.bf16.msra.mxu0 %v789_v11  ;;  %733 = vmatpush1.bf16.msra.mxu1 %v789_v11 }
  0x33   : > { %462 = vmatprep.subr.bf16.mxu0 %v790_v12  ;;  %726 = vmatprep.subr.bf16.mxu1 %v790_v12 }
  0x36   : > { %463 = vmatpush1.bf16.msra.mxu0 %v792_v13  ;;  %734 = vmatpush1.bf16.msra.mxu1 %v792_v13 }
  0x37   : > { %464 = vmatprep.subr.bf16.mxu0 %v793_v14  ;;  %727 = vmatprep.subr.bf16.mxu1 %v793_v14 }
  0x3a   : > { %465 = vmatpush1.bf16.msra.mxu0 %v795_v15  ;;  %735 = vmatpush1.bf16.msra.mxu1 %v795_v15 }
  0x3b   : > { %466 = vmatprep.subr.bf16.mxu0 %v796_v16  ;;  %728 = vmatprep.subr.bf16.mxu1 %v796_v16 }
  0x3e   : > { %467 = vmatpush1.bf16.msra.mxu0 %v798_v17  ;;  %736 = vmatpush1.bf16.msra.mxu1 %v798_v17 }
  0x3f   : > { %468 = vmatprep.subr.bf16.mxu0 %v799_v18  ;;  %729 = vmatprep.subr.bf16.mxu1 %v799_v18 }
  0x42   : > { %469 = vmatpush1.bf16.msra.mxu0 %v801_v19  ;;  %737 = vmatpush1.bf16.msra.mxu1 %v801_v19 }
  0x43   : > { %470 = vmatprep.subr.bf16.mxu0 %v802_v20  ;;  %730 = vmatprep.subr.bf16.mxu1 %v802_v20 }
  0x46   : > { %471 = vmatpush1.bf16.msra.mxu0 %v804_v21  ;;  %738 = vmatpush1.bf16.msra.mxu1 %v804_v21 }
  0x49   : > { %489 = vmatmul.mubr.bf16.vlgmr.msra.gmra.mrb[0].mxu0 %v805_v22  ;;  %499 = vmatmul.mubr.bf16.vlgmr.msra.gmra.mrb[0].mxu1 %v806_v23 }
 0x11c   : > { %v490_v28 = vpop.f32.mrb[0].mxu0  ;;  %v500_v29 = vpop.f32.mrb[0].mxu1  ;;  %528 = sbr.rel (%p717_p11) target bundleno = 302 (0x12e), region = 81 }
 0x11d   : > { %v509_v32 = vadd.f32 %v490_v28, %v336_v24  ;;  %v513_v33 = vadd.f32 %v500_v29, %v340_v25  ;;  %v492_v34 = vpop.f32.mrb[1].mxu0  ;;  %v502_v35 = vpop.f32.mrb[1].mxu1 }
 0x11e   : > { %v510_v38 = vadd.f32 %v492_v34, %v337_v26  ;;  %v514_v39 = vadd.f32 %v502_v35, %v341_v27  ;;  %v494_v40 = vpop.f32.mrb[2].mxu0  ;;  %v504_v41 = vpop.f32.mrb[2].mxu1 }
 0x11f   : > { %517 = vst [vmem:[#allocation2] sm:$0xff] %v509_v32  ;;  %521 = vst [vmem:[#allocation2 + $0x20] sm:$0xff] %v513_v33  ;;  %v511_v42 = vadd.f32 %v494_v40, %v338_v30  ;;  %v515_v43 = vadd.f32 %v504_v41, %v342_v31  ;;  %v496_v44 = vpop.f32.mrb[3].mxu0  ;;  %v506_v45 = vpop.f32.mrb[3].mxu1 }
 0x120   : > { %518 = vst [vmem:[#allocation2 + $0x8] sm:$0xff] %v510_v38  ;;  %522 = vst [vmem:[#allocation2 + $0x28] sm:$0xff] %v514_v39  ;;  %v512_v46 = vadd.f32 %v496_v44, %v339_v36  ;;  %v516_v47 = vadd.f32 %v506_v45, %v343_v37 }
 0x121   : > { %519 = vst [vmem:[#allocation2 + $0x10] sm:$0xff] %v511_v42  ;;  %523 = vst [vmem:[#allocation2 + $0x30] sm:$0xff] %v515_v43 }
 0x122   : > { %520 = vst [vmem:[#allocation2 + $0x18] sm:$0xff] %v512_v46  ;;  %524 = vst [vmem:[#allocation2 + $0x38] sm:$0xff] %v516_v47 }
 0x126   : > { %v529_v51 = vld [vmem:[#allocation2] sm:$0xff] }
 0x127   : > { %v530_v53 = vld [vmem:[#allocation2 + $0x8] sm:$0xff]  ;;  %v533_v57 = vld [vmem:[#allocation2 + $0x20] sm:$0xff]  ;;  %v549_v63 = vadd.f32 %v542_v58, %v529_v51 }
 0x128   : > { %v531_v55 = vld [vmem:[#allocation2 + $0x10] sm:$0xff]  ;;  %v534_v60 = vld [vmem:[#allocation2 + $0x28] sm:$0xff]  ;;  %v550_v0 = vadd.f32 %v546_v59, %v530_v53  ;;  %v553_v3 = vadd.f32 %v542_v58, %v533_v57 }
 0x129   : > { %v532_v56 = vld [vmem:[#allocation2 + $0x18] sm:$0xff]  ;;  %v535_v61 = vld [vmem:[#allocation2 + $0x30] sm:$0xff]  ;;  %v551_v1 = vadd.f32 %v542_v58, %v531_v55  ;;  %v554_v4 = vadd.f32 %v546_v59, %v534_v60  ;;  %557 = vst [vmem:[%s991_s3] sm:$0xff] %v549_v63 }
 0x12a   : > { %v536_v62 = vld [vmem:[#allocation2 + $0x38] sm:$0xff]  ;;  %v552_v2 = vadd.f32 %v546_v59, %v532_v56  ;;  %v555_v5 = vadd.f32 %v542_v58, %v535_v61  ;;  %558 = vst [vmem:[%s991_s3 + $0x8] sm:$0xff] %v550_v0  ;;  %561 = vst [vmem:[%s991_s3 + $0x20] sm:$0xff] %v553_v3 }
 0x12b   : > { %v556_v6 = vadd.f32 %v546_v59, %v536_v62  ;;  %559 = vst [vmem:[%s991_s3 + $0x10] sm:$0xff] %v551_v1  ;;  %562 = vst [vmem:[%s991_s3 + $0x28] sm:$0xff] %v554_v4 }
 0x12c   : > { %560 = vst [vmem:[%s991_s3 + $0x18] sm:$0xff] %v552_v2  ;;  %563 = vst [vmem:[%s991_s3 + $0x30] sm:$0xff] %v555_v5 }
 0x12d   : > { %564 = vst [vmem:[%s991_s3 + $0x38] sm:$0xff] %v556_v6 }
 0x12e PF: > { %s13_s16 = sadd.s32 1, %s845_s16   ;;  %s992_s12 = smov %s833_s13 }
 0x12f   : > { %p10_p12 = scmp.ge.s32.totalorder %s13_s16, 27   ;;  %s993_s13 = smov %s904_s20 }
 0x130   : > { %s994_s14 = smov %s841_s15  ;;  %s995_s15 = smov %s997_s17 }
 0x131   :  { %12 = sbr.rel (!%p10_p12) target bundleno = 3 (0x3), region = 122 }

// kernel: dtn_forward.21
= control target key start
LH: loop header
LB: loop body
LE: loop exit
PB: predicated region body
PF: predicated region fallthrough
CT: control target
= control target key end

     0   :  { %v24_v0 = vlaneseq  ;;  %s156_s1 = inlined_call_operand.vmem [shape: f32[1,256], index: 1, kind: input, shape index: {}]   ;;  %s157_s2 = inlined_call_operand.vmem [shape: f32[1,256], index: 2, kind: input, shape index: {}]   ;;  %s158_s0 = inlined_call_operand.vmem [shape: f32[32,256], index: 0, kind: input, shape index: {}]   ;;  %s159_s3 = inlined_call_operand.vmem [shape: f32[32,256], index: 3, kind: output, shape index: {}]  }
   0x1   :  { %v22_v2 = vld [vmem:[%s156_s1] sm:$0x3]  ;;  %v15_v6 = vld [vmem:[%s158_s0 + $0x8] sm:$0xff]  ;;  %v16_v8 = vld [vmem:[%s158_s0 + $0x10] sm:$0xff] }
   0x2   :  { %v25_v1 = vshrl.u32 %v24_v0, 7  ;;  %v42_v3 = vld [vmem:[%s157_s2] sm:$0x3]  ;;  %v17_v9 = vld [vmem:[%s158_s0 + $0x18] sm:$0xff]  ;;  %v19_v15 = vld [vmem:[%s158_s0 + $0x28] sm:$0xff] }
   0x3   :  { %v14_v4 = vld [vmem:[%s158_s0] sm:$0xff]  ;;  %v20_v16 = vld [vmem:[%s158_s0 + $0x30] sm:$0xff]  ;;  %v21_v17 = vld [vmem:[%s158_s0 + $0x38] sm:$0xff] }
   0x4   :  { %v26_v5 = vsub.s32 0, %v25_v1  ;;  %v30_v7 = vsub.s32 1, %v25_v1  ;;  %v18_v10 = vld [vmem:[%s158_s0 + $0x20] sm:$0xff] }
   0x6   :  { %v27_v11 = vrot.slane %v22_v2, %v26_v5  ;;  %v47_v12 = vrot.slane %v42_v3, %v26_v5  ;;  %v31_v13 = vrot.slane %v22_v2, %v30_v7  ;;  %v51_v14 = vrot.slane %v42_v3, %v30_v7 }
   0x8   :  { %v34_v18 = vmul.f32 %v27_v11, %v14_v4  ;;  %v35_v19 = vmul.f32 %v31_v13, %v15_v6  ;;  %v36_v20 = vmul.f32 %v27_v11, %v16_v8  ;;  %v37_v21 = vmul.f32 %v31_v13, %v17_v9 }
   0x9   :  { %v38_v22 = vmul.f32 %v27_v11, %v18_v10  ;;  %v39_v23 = vmul.f32 %v31_v13, %v19_v15  ;;  %v40_v24 = vmul.f32 %v27_v11, %v20_v16  ;;  %v41_v25 = vmul.f32 %v31_v13, %v21_v17 }
   0xa   :  { %v54_v26 = vadd.f32 %v47_v12, %v34_v18  ;;  %v55_v27 = vadd.f32 %v51_v14, %v35_v19  ;;  %v56_v28 = vadd.f32 %v47_v12, %v36_v20  ;;  %v57_v29 = vadd.f32 %v51_v14, %v37_v21 }
   0xb   :  { %v58_v30 = vadd.f32 %v47_v12, %v38_v22  ;;  %v59_v31 = vadd.f32 %v51_v14, %v39_v23  ;;  %v60_v32 = vadd.f32 %v47_v12, %v40_v24  ;;  %v61_v33 = vadd.f32 %v51_v14, %v41_v25 }
   0xc   :  { %v62_v34 = vmax.f32 %v54_v26, 0.0  ;;  %v63_v35 = vmax.f32 %v55_v27, 0.0  ;;  %v64_v36 = vmax.f32 %v56_v28, 0.0  ;;  %v65_v37 = vmax.f32 %v57_v29, 0.0 }
   0xd   :  { %v66_v38 = vmax.f32 %v58_v30, 0.0  ;;  %v67_v39 = vmax.f32 %v59_v31, 0.0  ;;  %v68_v40 = vmax.f32 %v60_v32, 0.0  ;;  %v69_v41 = vmax.f32 %v61_v33, 0.0 }
   0xe   :  { %70 = vst [vmem:[%s159_s3] sm:$0xff] %v62_v34  ;;  %71 = vst [vmem:[%s159_s3 + $0x8] sm:$0xff] %v63_v35 }
   0xf   :  { %72 = vst [vmem:[%s159_s3 + $0x10] sm:$0xff] %v64_v36  ;;  %73 = vst [vmem:[%s159_s3 + $0x18] sm:$0xff] %v65_v37 }
  0x10   :  { %74 = vst [vmem:[%s159_s3 + $0x20] sm:$0xff] %v66_v38  ;;  %75 = vst [vmem:[%s159_s3 + $0x28] sm:$0xff] %v67_v39 }
  0x11   :  { %76 = vst [vmem:[%s159_s3 + $0x30] sm:$0xff] %v68_v40  ;;  %77 = vst [vmem:[%s159_s3 + $0x38] sm:$0xff] %v69_v41 }

// kernel: dtn_forward.20
= control target key start
LH: loop header
LB: loop body
LE: loop exit
PB: predicated region body
PF: predicated region fallthrough
CT: control target
= control target key end

     0   :  { %v14_v0 = vlaneseq  ;;  %v128_v10 = vmov 0.0   ;;  %v129_v35 = vmov 1966171168   ;;  %s199_s0 = inlined_call_operand.vmem [shape: f32[32,256], index: 0, kind: input, shape index: {}]   ;;  %s200_s1 = inlined_call_operand.vmem [shape: f32[1,256], index: 1, kind: output, shape index: {0}]   ;;  %s201_s2 = inlined_call_operand.vmem [shape: f32[1,256], index: 2, kind: output, shape index: {1}]  }
   0x1   :  { %v20_v1 = vld [vmem:[%s199_s0] sm:$0xff]  ;;  %v21_v2 = vld [vmem:[%s199_s0 + $0x8] sm:$0xff]  ;;  %v22_v3 = vld [vmem:[%s199_s0 + $0x10] sm:$0xff]  ;;  %v51_v36 = vunpack.c.l.s4 %v129_v35 }
   0x2   :  { %vm154_vm0 = vcmp.lt.s32.totalorder %v14_v0, 256  ;;  %v23_v5 = vld [vmem:[%s199_s0 + $0x18] sm:$0xff]  ;;  %v24_v6 = vld [vmem:[%s199_s0 + $0x20] sm:$0xff]  ;;  %v25_v7 = vld [vmem:[%s199_s0 + $0x28] sm:$0xff]  ;;  %v29_v8 = vadd.f32 %v22_v3, %v20_v1  ;;  %v72_v9 = vmul.f32 %v20_v1, %v20_v1  ;;  %v73_v14 = vmul.f32 %v21_v2, %v21_v2 }
   0x3   :  { %18 = vst.msk [vmem:[%s200_s1] sm:$0x3] %vm154_vm0, %v128_v10  ;;  %v26_v11 = vld [vmem:[%s199_s0 + $0x30] sm:$0xff]  ;;  %v27_v12 = vld [vmem:[%s199_s0 + $0x38] sm:$0xff]  ;;  %v38_v13 = vadd.f32 %v23_v5, %v21_v2  ;;  %19 = vst.msk [vmem:[%s201_s2] sm:$0x3] %vm154_vm0, %v128_v10  ;;  %v74_v15 = vmul.f32 %v22_v3, %v22_v3  ;;  %v75_v17 = vmul.f32 %v23_v5, %v23_v5  ;;  %v52_v45 = vunpack.c.0.s8 %v51_v36 }
   0x4   :  { %v30_v16 = vadd.f32 %v29_v8, %v24_v6  ;;  %v76_v18 = vmul.f32 %v24_v6, %v24_v6  ;;  %v77_v19 = vmul.f32 %v25_v7, %v25_v7  ;;  %v78_v21 = vmul.f32 %v26_v11, %v26_v11 }
   0x5   :  { %v39_v20 = vadd.f32 %v38_v13, %v25_v7  ;;  %v79_v23 = vmul.f32 %v27_v12, %v27_v12  ;;  %v80_v24 = vadd.f32 %v74_v15, %v72_v9  ;;  %v89_v25 = vadd.f32 %v75_v17, %v73_v14 }
   0x6   :  { %v31_v22 = vadd.f32 %v30_v16, %v26_v11  ;;  %v54_v46 = vshrl.u32 %v14_v0, 7 }
   0x7   :  { %v40_v26 = vadd.f32 %v39_v20, %v27_v12  ;;  %v81_v28 = vadd.f32 %v80_v24, %v76_v18  ;;  %v90_v29 = vadd.f32 %v89_v25, %v77_v19 }
   0x8   :  { %v32_v27 = vrot.slane %v31_v22, 4  ;;  %v55_v55 = vsub.s32 %v52_v45, %v54_v46 }
   0x9   :  { %v41_v30 = vrot.slane %v40_v26, 4  ;;  %v82_v32 = vadd.f32 %v81_v28, %v78_v21  ;;  %v91_v33 = vadd.f32 %v90_v29, %v79_v23 }
   0xa   :  { %v33_v31 = vadd.f32 %v32_v27, %v31_v22  ;;  %v28_v62 = vld [vmem:[%s200_s1] sm:$0x3] }
   0xb   :  { %v42_v34 = vadd.f32 %v41_v30, %v40_v26  ;;  %v83_v38 = vrot.slane %v82_v32, 4  ;;  %v92_v39 = vrot.slane %v91_v33, 4  ;;  %v71_v3 = vld [vmem:[%s201_s2] sm:$0x3] }
   0xc   :  { %v34_v37 = vrot.slane %v33_v31, 2 }
   0xd   :  { %v43_v40 = vrot.slane %v42_v34, 2  ;;  %v84_v42 = vadd.f32 %v83_v38, %v82_v32  ;;  %v93_v43 = vadd.f32 %v92_v39, %v91_v33 }
   0xe   :  { %v35_v41 = vadd.f32 %v34_v37, %v33_v31 }
   0xf   :  { %v44_v44 = vadd.f32 %v43_v40, %v42_v34  ;;  %v85_v48 = vrot.slane %v84_v42, 2  ;;  %v94_v49 = vrot.slane %v93_v43, 2 }
  0x10   :  { %v36_v47 = vrot.slane %v35_v41, 1 }
  0x11   :  { %v45_v50 = vrot.slane %v44_v44, 1  ;;  %v86_v52 = vadd.f32 %v85_v48, %v84_v42  ;;  %v95_v53 = vadd.f32 %v94_v49, %v93_v43 }
  0x12   :  { %v37_v51 = vadd.f32 %v36_v47, %v35_v41 }
  0x13   :  { %v46_v54 = vadd.f32 %v45_v50, %v44_v44  ;;  %v87_v56 = vrot.slane %v86_v52, 1  ;;  %v96_v57 = vrot.slane %v95_v53, 1 }
  0x15   :  { %v49_v58 = vcombine.low %v37_v51, %v46_v54  ;;  %v88_v59 = vadd.f32 %v87_v56, %v86_v52  ;;  %v97_v60 = vadd.f32 %v96_v57, %v95_v53 }
  0x17   :  { %v56_v61 = vrot.slane %v49_v58, %v55_v55  ;;  %v100_v63 = vcombine.low %v88_v59, %v97_v60 }
  0x19   :  { %v63_v0 = vrot.slane %v56_v61, %v55_v55  ;;  %v107_v1 = vrot.slane %v100_v63, %v55_v55 }
  0x1b   :  { %v65_v2 = vadd.f32 %v63_v0, %v28_v62  ;;  %v114_v5 = vrot.slane %v107_v1, %v55_v55 }
  0x1d   :  { %70 = vst.msk [vmem:[%s200_s1] sm:$0x3] %vm154_vm0, %v65_v2  ;;  %v116_v6 = vadd.f32 %v114_v5, %v71_v3 }
  0x1f   :  { %117 = vst.msk [vmem:[%s201_s2] sm:$0x3] %vm154_vm0, %v116_v6 }

// kernel: dtn_forward.22
= control target key start
LH: loop header
LB: loop body
LE: loop exit
PB: predicated region body
PF: predicated region fallthrough
CT: control target
= control target key end

     0   :  { %s1512_s12 = smov 0   ;;  %s1514_s13 = smov 0   ;;  %s1824_s0 = inlined_call_operand.vmem [shape: bf16[8,4096], index: 0, kind: input, shape index: {}]   ;;  %s1825_s1 = inlined_call_operand.vmem [shape: bf16[4096,512], index: 1, kind: input, shape index: {}]   ;;  %s1826_s2 = inlined_call_operand.vmem [shape: f32[1,512], index: 2, kind: input, shape index: {}]   ;;  %s1827_s3 = inlined_call_operand.vmem [shape: f32[8,512], index: 3, kind: output, shape index: {}]  }
   0x1   :  { %s1516_s14 = smov 0   ;;  %s1518_s15 = smov 0  }
   0x2   :  { %s1520_s16 = smov 0   ;;  %s1522_s17 = smov 0  }
   0x3   :  { %s1524_s18 = smov 0  }
   0x4 LB: > { %s25_s19 = sadd.s32 1, %s1481_s16  ;;  %s28_s20 = sadd.s32 1, %s1485_s17  ;;  %s1489_s18 = sphi %s1524_s18, %s13_s18   ;;  %s1485_s17 = sphi %s1522_s17, %s1833_s17   ;;  %s1481_s16 = sphi %s1520_s16, %s1832_s16   ;;  %s1477_s15 = sphi %s1518_s15, %s1831_s15   ;;  %s1473_s14 = sphi %s1516_s14, %s1830_s14   ;;  %s1469_s13 = sphi %s1514_s13, %s1829_s13   ;;  %s1465_s12 = sphi %s1512_s12, %s1828_s12  }
   0x5   : > { %p26_p0 = scmp.ge.s32.totalorder %s25_s19, 8  ;;  %p76_p1 = scmp.ne.s32.totalorder %s1469_s13, %s1465_s12 }
   0x6   : > { %p77_p2 = scmp.eq.s32.totalorder %s1489_s18, 0  ;;  %s69_s24 = sadd.s32 1, %s1469_s13 }
   0x7   : > { %s1835_s19 = smov (%p26_p0, %s25_s19), 0  ;;  %s1837_s20 = smov (!%p26_p0, %s28_s20), %s1485_s17 }
   0x8   : > { %p78_p3 = por %p77_p2, %p76_p1  ;;  %p30_p4 = scmp.ge.s32.totalorder %s1837_s20, 2 }
   0x9   : > { %s64_s21 = ssub.s32 %s1481_s16, %s1835_s19  ;;  %p1192_p6 = scmp.ge.s32.totalorder %s1489_s18, 16 }
   0xa   : > { %s1839_s20 = smov (%p30_p4, %s1837_s20), 0 }
   0xb   : > { %s65_s22 = ssub.s32 %s1485_s17, %s1839_s20  ;;  %156 = sbr.rel (%p1192_p6) target bundleno = 57 (0x39), region = 16 }
   0xc   : > { %s66_s23 = sor.u32 %s65_s22, %s64_s21 }
   0xd   : > { %p67_p5 = scmp.eq.s32.totalorder %s66_s23, 0 }
   0xf   : > { %s1563_s25 = scalar_select %p67_p5, %s1469_s13, %s69_s24  }
  0x12   : > { %172 = sbr.rel (!%p78_p3) target bundleno = 57 (0x39), region = 24  ;;  %s174_s26 = sand.u32 (%p78_p3), 1, %s1469_s13  }
  0x13   : > { %s1195_s27 = sshll.u32 (%p78_p3), %s1485_s17, 1  ;;  %s1193_s28 = sshll.u32 (%p78_p3), %s174_s26, 9 }
  0x14   : > { %s1277_s29 = sshll.u32 (%p78_p3), %s1481_s16, 8  ;;  %s1577_s8 = scalar_lea.vmem (%p78_p3), [#allocation3], %s1193_s28 }
  0x15   : > { %s180_s30 = sadd.s32 (%p78_p3), %s1277_s29, %s1195_s27 }
  0x16   : > { %s1197_s4 = sshll.u32 (%p78_p3), %s180_s30, 2 }
  0x17   : > { %s1572_s7 = scalar_lea.vmem (%p78_p3), %s1825_s1, %s1197_s4 }
  0x18   : > { %v336_v0 = vld [vmem:[%s1572_s7] sm:$0xff] (%p78_p3)  ;;  %v338_v1 = vld [vmem:[%s1572_s7 + $0x10] sm:$0xff] (%p78_p3) }
  0x19   : > { %v340_v2 = vld [vmem:[%s1572_s7 + $0x20] sm:$0xff]  ;;  %337 = vst [vmem:[%s1577_s8] sm:$0xff] %v336_v0  ;;  %339 = vst [vmem:[%s1577_s8 + $0x8] sm:$0xff] %v338_v1  ;;  %v342_v3 = vld [vmem:[%s1572_s7 + $0x30] sm:$0xff] }
  0x1a   : > { %341 = vst [vmem:[%s1577_s8 + $0x10] sm:$0xff] %v340_v2  ;;  %v344_v4 = vld [vmem:[%s1572_s7 + $0x40] sm:$0xff]  ;;  %v346_v5 = vld [vmem:[%s1572_s7 + $0x50] sm:$0xff]  ;;  %343 = vst [vmem:[%s1577_s8 + $0x18] sm:$0xff] %v342_v3 }
  0x1b   : > { %345 = vst [vmem:[%s1577_s8 + $0x20] sm:$0xff] %v344_v4  ;;  %347 = vst [vmem:[%s1577_s8 + $0x28] sm:$0xff] %v346_v5  ;;  %v348_v6 = vld [vmem:[%s1572_s7 + $0x60] sm:$0xff]  ;;  %v350_v7 = vld [vmem:[%s1572_s7 + $0x70] sm:$0xff] }
  0x1c   : > { %v352_v8 = vld [vmem:[%s1572_s7 + $0x80] sm:$0xff]  ;;  %349 = vst [vmem:[%s1577_s8 + $0x30] sm:$0xff] %v348_v6  ;;  %351 = vst [vmem:[%s1577_s8 + $0x38] sm:$0xff] %v350_v7  ;;  %v354_v9 = vld [vmem:[%s1572_s7 + $0x90] sm:$0xff] }
  0x1d   : > { %353 = vst [vmem:[%s1577_s8 + $0x40] sm:$0xff] %v352_v8  ;;  %v356_v10 = vld [vmem:[%s1572_s7 + $0xa0] sm:$0xff]  ;;  %v358_v11 = vld [vmem:[%s1572_s7 + $0xb0] sm:$0xff]  ;;  %355 = vst [vmem:[%s1577_s8 + $0x48] sm:$0xff] %v354_v9 }
  0x1e   : > { %357 = vst [vmem:[%s1577_s8 + $0x50] sm:$0xff] %v356_v10  ;;  %359 = vst [vmem:[%s1577_s8 + $0x58] sm:$0xff] %v358_v11  ;;  %v360_v12 = vld [vmem:[%s1572_s7 + $0xc0] sm:$0xff]  ;;  %v362_v13 = vld [vmem:[%s1572_s7 + $0xd0] sm:$0xff] }
  0x1f   : > { %v364_v14 = vld [vmem:[%s1572_s7 + $0xe0] sm:$0xff]  ;;  %361 = vst [vmem:[%s1577_s8 + $0x60] sm:$0xff] %v360_v12  ;;  %363 = vst [vmem:[%s1577_s8 + $0x68] sm:$0xff] %v362_v13  ;;  %v366_v15 = vld [vmem:[%s1572_s7 + $0xf0] sm:$0xff] }
  0x20   : > { %365 = vst [vmem:[%s1577_s8 + $0x70] sm:$0xff] %v364_v14  ;;  %v368_v16 = vld [vmem:[%s1572_s7 + $0x100] sm:$0xff]  ;;  %v370_v17 = vld [vmem:[%s1572_s7 + $0x110] sm:$0xff]  ;;  %367 = vst [vmem:[%s1577_s8 + $0x78] sm:$0xff] %v366_v15 }
  0x21   : > { %369 = vst [vmem:[%s1577_s8 + $0x80] sm:$0xff] %v368_v16  ;;  %371 = vst [vmem:[%s1577_s8 + $0x88] sm:$0xff] %v370_v17  ;;  %v372_v18 = vld [vmem:[%s1572_s7 + $0x120] sm:$0xff]  ;;  %v374_v19 = vld [vmem:[%s1572_s7 + $0x130] sm:$0xff] }
  0x22   : > { %v376_v20 = vld [vmem:[%s1572_s7 + $0x140] sm:$0xff]  ;;  %373 = vst [vmem:[%s1577_s8 + $0x90] sm:$0xff] %v372_v18  ;;  %375 = vst [vmem:[%s1577_s8 + $0x98] sm:$0xff] %v374_v19  ;;  %v378_v21 = vld [vmem:[%s1572_s7 + $0x150] sm:$0xff] }
  0x23   : > { %377 = vst [vmem:[%s1577_s8 + $0xa0] sm:$0xff] %v376_v20  ;;  %v380_v22 = vld [vmem:[%s1572_s7 + $0x160] sm:$0xff]  ;;  %v382_v23 = vld [vmem:[%s1572_s7 + $0x170] sm:$0xff]  ;;  %379 = vst [vmem:[%s1577_s8 + $0xa8] sm:$0xff] %v378_v21 }
  0x24   : > { %381 = vst [vmem:[%s1577_s8 + $0xb0] sm:$0xff] %v380_v22  ;;  %383 = vst [vmem:[%s1577_s8 + $0xb8] sm:$0xff] %v382_v23  ;;  %v384_v24 = vld [vmem:[%s1572_s7 + $0x180] sm:$0xff]  ;;  %v386_v25 = vld [vmem:[%s1572_s7 + $0x190] sm:$0xff] }
  0x25   : > { %v388_v26 = vld [vmem:[%s1572_s7 + $0x1a0] sm:$0xff]  ;;  %385 = vst [vmem:[%s1577_s8 + $0xc0] sm:$0xff] %v384_v24  ;;  %387 = vst [vmem:[%s1577_s8 + $0xc8] sm:$0xff] %v386_v25  ;;  %v390_v27 = vld [vmem:[%s1572_s7 + $0x1b0] sm:$0xff] }
  0x26   : > { %389 = vst [vmem:[%s1577_s8 + $0xd0] sm:$0xff] %v388_v26  ;;  %v392_v28 = vld [vmem:[%s1572_s7 + $0x1c0] sm:$0xff]  ;;  %v394_v29 = vld [vmem:[%s1572_s7 + $0x1d0] sm:$0xff]  ;;  %391 = vst [vmem:[%s1577_s8 + $0xd8] sm:$0xff] %v390_v27 }
  0x27   : > { %393 = vst [vmem:[%s1577_s8 + $0xe0] sm:$0xff] %v392_v28  ;;  %395 = vst [vmem:[%s1577_s8 + $0xe8] sm:$0xff] %v394_v29  ;;  %v396_v30 = vld [vmem:[%s1572_s7 + $0x1e0] sm:$0xff]  ;;  %v398_v31 = vld [vmem:[%s1572_s7 + $0x1f0] sm:$0xff] }
  0x28   : > { %v400_v32 = vld [vmem:[%s1572_s7 + $0x200] sm:$0xff]  ;;  %397 = vst [vmem:[%s1577_s8 + $0xf0] sm:$0xff] %v396_v30  ;;  %399 = vst [vmem:[%s1577_s8 + $0xf8] sm:$0xff] %v398_v31  ;;  %v402_v33 = vld [vmem:[%s1572_s7 + $0x210] sm:$0xff] }
  0x29   : > { %401 = vst [vmem:[%s1577_s8 + $0x100] sm:$0xff] %v400_v32  ;;  %v404_v34 = vld [vmem:[%s1572_s7 + $0x220] sm:$0xff]  ;;  %v406_v35 = vld [vmem:[%s1572_s7 + $0x230] sm:$0xff]  ;;  %403 = vst [vmem:[%s1577_s8 + $0x108] sm:$0xff] %v402_v33 }
  0x2a   : > { %405 = vst [vmem:[%s1577_s8 + $0x110] sm:$0xff] %v404_v34  ;;  %407 = vst [vmem:[%s1577_s8 + $0x118] sm:$0xff] %v406_v35  ;;  %v408_v36 = vld [vmem:[%s1572_s7 + $0x240] sm:$0xff]  ;;  %v410_v37 = vld [vmem:[%s1572_s7 + $0x250] sm:$0xff] }
  0x2b   : > { %v412_v38 = vld [vmem:[%s1572_s7 + $0x260] sm:$0xff]  ;;  %409 = vst [vmem:[%s1577_s8 + $0x120] sm:$0xff] %v408_v36  ;;  %411 = vst [vmem:[%s1577_s8 + $0x128] sm:$0xff] %v410_v37  ;;  %v414_v39 = vld [vmem:[%s1572_s7 + $0x270] sm:$0xff] }
  0x2c   : > { %413 = vst [vmem:[%s1577_s8 + $0x130] sm:$0xff] %v412_v38  ;;  %v416_v40 = vld [vmem:[%s1572_s7 + $0x280] sm:$0xff]  ;;  %v418_v41 = vld [vmem:[%s1572_s7 + $0x290] sm:$0xff]  ;;  %415 = vst [vmem:[%s1577_s8 + $0x138] sm:$0xff] %v414_v39 }
  0x2d   : > { %417 = vst [vmem:[%s1577_s8 + $0x140] sm:$0xff] %v416_v40  ;;  %419 = vst [vmem:[%s1577_s8 + $0x148] sm:$0xff] %v418_v41  ;;  %v420_v42 = vld [vmem:[%s1572_s7 + $0x2a0] sm:$0xff]  ;;  %v422_v43 = vld [vmem:[%s1572_s7 + $0x2b0] sm:$0xff] }
  0x2e   : > { %v424_v44 = vld [vmem:[%s1572_s7 + $0x2c0] sm:$0xff]  ;;  %421 = vst [vmem:[%s1577_s8 + $0x150] sm:$0xff] %v420_v42  ;;  %423 = vst [vmem:[%s1577_s8 + $0x158] sm:$0xff] %v422_v43  ;;  %v426_v45 = vld [vmem:[%s1572_s7 + $0x2d0] sm:$0xff] }
  0x2f   : > { %425 = vst [vmem:[%s1577_s8 + $0x160] sm:$0xff] %v424_v44  ;;  %v428_v46 = vld [vmem:[%s1572_s7 + $0x2e0] sm:$0xff]  ;;  %v430_v47 = vld [vmem:[%s1572_s7 + $0x2f0] sm:$0xff]  ;;  %427 = vst [vmem:[%s1577_s8 + $0x168] sm:$0xff] %v426_v45 }
  0x30   : > { %429 = vst [vmem:[%s1577_s8 + $0x170] sm:$0xff] %v428_v46  ;;  %431 = vst [vmem:[%s1577_s8 + $0x178] sm:$0xff] %v430_v47  ;;  %v432_v48 = vld [vmem:[%s1572_s7 + $0x300] sm:$0xff]  ;;  %v434_v49 = vld [vmem:[%s1572_s7 + $0x310] sm:$0xff] }
  0x31   : > { %v436_v50 = vld [vmem:[%s1572_s7 + $0x320] sm:$0xff]  ;;  %433 = vst [vmem:[%s1577_s8 + $0x180] sm:$0xff] %v432_v48  ;;  %435 = vst [vmem:[%s1577_s8 + $0x188] sm:$0xff] %v434_v49  ;;  %v438_v51 = vld [vmem:[%s1572_s7 + $0x330] sm:$0xff] }
  0x32   : > { %437 = vst [vmem:[%s1577_s8 + $0x190] sm:$0xff] %v436_v50  ;;  %v440_v52 = vld [vmem:[%s1572_s7 + $0x340] sm:$0xff]  ;;  %v442_v53 = vld [vmem:[%s1572_s7 + $0x350] sm:$0xff]  ;;  %439 = vst [vmem:[%s1577_s8 + $0x198] sm:$0xff] %v438_v51 }
  0x33   : > { %441 = vst [vmem:[%s1577_s8 + $0x1a0] sm:$0xff] %v440_v52  ;;  %443 = vst [vmem:[%s1577_s8 + $0x1a8] sm:$0xff] %v442_v53  ;;  %v444_v54 = vld [vmem:[%s1572_s7 + $0x360] sm:$0xff]  ;;  %v446_v55 = vld [vmem:[%s1572_s7 + $0x370] sm:$0xff] }
  0x34   : > { %v448_v56 = vld [vmem:[%s1572_s7 + $0x380] sm:$0xff]  ;;  %445 = vst [vmem:[%s1577_s8 + $0x1b0] sm:$0xff] %v444_v54  ;;  %447 = vst [vmem:[%s1577_s8 + $0x1b8] sm:$0xff] %v446_v55  ;;  %v450_v57 = vld [vmem:[%s1572_s7 + $0x390] sm:$0xff] }
  0x35   : > { %449 = vst [vmem:[%s1577_s8 + $0x1c0] sm:$0xff] %v448_v56  ;;  %v452_v58 = vld [vmem:[%s1572_s7 + $0x3a0] sm:$0xff]  ;;  %v454_v59 = vld [vmem:[%s1572_s7 + $0x3b0] sm:$0xff]  ;;  %451 = vst [vmem:[%s1577_s8 + $0x1c8] sm:$0xff] %v450_v57 }
  0x36   : > { %453 = vst [vmem:[%s1577_s8 + $0x1d0] sm:$0xff] %v452_v58  ;;  %455 = vst [vmem:[%s1577_s8 + $0x1d8] sm:$0xff] %v454_v59  ;;  %v456_v60 = vld [vmem:[%s1572_s7 + $0x3c0] sm:$0xff]  ;;  %v458_v61 = vld [vmem:[%s1572_s7 + $0x3d0] sm:$0xff] }
  0x37   : > { %v460_v62 = vld [vmem:[%s1572_s7 + $0x3e0] sm:$0xff]  ;;  %457 = vst [vmem:[%s1577_s8 + $0x1e0] sm:$0xff] %v456_v60  ;;  %459 = vst [vmem:[%s1577_s8 + $0x1e8] sm:$0xff] %v458_v61  ;;  %v462_v63 = vld [vmem:[%s1572_s7 + $0x3f0] sm:$0xff] }
  0x38   : > { %461 = vst [vmem:[%s1577_s8 + $0x1f0] sm:$0xff] %v460_v62  ;;  %463 = vst [vmem:[%s1577_s8 + $0x1f8] sm:$0xff] %v462_v63 }
  0x39 PF: > { %p1198_p7 = scmp.ge.s32.totalorder %s1489_s18, 1  ;;  %p476_p8 = scmp.lt.s32.totalorder %s1489_s18, 17 }
  0x3b   : > { %p477_p9 = pnand %p1198_p7, %p476_p8 }
  0x3c   : > { %s483_s9 = sand.u32 (!%p477_p9), 1, %s1465_s12   ;;  %s1200_s10 = sshll.u32 (!%p477_p9), %s1473_s14, 2 }
  0x3d   : > { %480 = sbr.rel (%p477_p9) target bundleno = 372 (0x174), region = 66  ;;  %s1199_s11 = sshll.u32 (!%p477_p9), %s483_s9, 9 }
  0x3e   : > { %p526_p10 = scmp.lt.s32.totalorder (!%p477_p9), %s1200_s10, 31  ;;  %s1202_s21 = sshll.u32 (!%p477_p9), %s1477_s15, 1 }
  0x3f   : > { %p536_p11 = scmp.lt.s32.totalorder (!%p477_p9), %s1202_s21, 3  ;;  %s1726_s5 = scalar_lea.vmem (!%p477_p9), [#allocation3], %s1199_s11 }
  0x40   : > { %p1205_p12 = scmp.ne.s32.totalorder (!%p477_p9), %s1473_s14, 0 }
  0x44   : > { %s1841_s10 = smov (!%p526_p10, %s1200_s10), 31  ;;  %s1843_s21 = smov (!%p536_p11, %s1202_s21), 3 }
  0x45   : > { %s1201_s22 = sshll.u32 %s1841_s10, 2  ;;  %s538_s12 = scalar_lea.vmem %s1826_s2, %s1843_s21  ;;  %v1491_v0 = vmov (!%p1205_p12), 0.0  }
  0x46   : > { %s1712_s26 = scalar_lea.vmem %s1824_s0, %s1201_s22  ;;  %s1204_s29 = sshll.u32 %s1843_s21, 3  ;;  %554 = vst [vmem:[#allocation2] sm:$0xff] (!%p1205_p12), %v1491_v0  ;;  %555 = vst [vmem:[#allocation2 + $0x8] sm:$0xff] (!%p1205_p12), %v1491_v0 }
  0x47   : > { %s1724_s15 = scalar_lea.vmem %s1827_s3, %s1204_s29  ;;  %553 = sbr.rel (%p1205_p12) target bundleno = 78 (0x4e), region = 74 }
  0x4e PF: > { %v1335_v1 = vld [vmem:[%s1726_s5 + $0x4] ss:$8 sps:$4 sm:$0xff]   ;;  %v1339_v3 = vld [vmem:[%s1726_s5] ss:$8 sps:$4 sm:$0xff]   ;;  %v1341_v5 = vld [vmem:[%s1726_s5 + $0x14] ss:$8 sps:$4 sm:$0xff]  }
  0x4f   : > { %v1337_v2 = vld [vmem:[%s1726_s5 + $0x104] ss:$8 sps:$4 sm:$0xff]   ;;  %958 = vmatprep.subr.bf16.mxu0 %v1335_v1  ;;  %v1340_v4 = vld [vmem:[%s1726_s5 + $0x100] ss:$8 sps:$4 sm:$0xff]   ;;  %v1343_v6 = vld [vmem:[%s1726_s5 + $0x114] ss:$8 sps:$4 sm:$0xff]  }
  0x50   : > { %999 = vmatprep.subr.bf16.mxu1 %v1337_v2  ;;  %959 = vmatpush1.bf16.msra.mxu0 %v1339_v3  ;;  %v1345_v7 = vld [vmem:[%s1726_s5 + $0x10] ss:$8 sps:$4 sm:$0xff]   ;;  %v1347_v9 = vld [vmem:[%s1726_s5 + $0x24] ss:$8 sps:$4 sm:$0xff]   ;;  %v1351_v11 = vld [vmem:[%s1726_s5 + $0x20] ss:$8 sps:$4 sm:$0xff]  }
  0x51   : > { %1000 = vmatpush1.bf16.msra.mxu1 %v1340_v4  ;;  %960 = vmatprep.subr.bf16.mxu0 %v1341_v5  ;;  %v1346_v8 = vld [vmem:[%s1726_s5 + $0x110] ss:$8 sps:$4 sm:$0xff]   ;;  %v1349_v10 = vld [vmem:[%s1726_s5 + $0x124] ss:$8 sps:$4 sm:$0xff]   ;;  %v1352_v12 = vld [vmem:[%s1726_s5 + $0x120] ss:$8 sps:$4 sm:$0xff]  }
  0x52   : > { %1001 = vmatprep.subr.bf16.mxu1 %v1343_v6  ;;  %v1353_v13 = vld [vmem:[%s1726_s5 + $0x34] ss:$8 sps:$4 sm:$0xff]   ;;  %v1357_v15 = vld [vmem:[%s1726_s5 + $0x30] ss:$8 sps:$4 sm:$0xff]   ;;  %v1359_v17 = vld [vmem:[%s1726_s5 + $0x44] ss:$8 sps:$4 sm:$0xff]  }
  0x53   : > { %v1355_v14 = vld [vmem:[%s1726_s5 + $0x134] ss:$8 sps:$4 sm:$0xff]   ;;  %v1358_v16 = vld [vmem:[%s1726_s5 + $0x130] ss:$8 sps:$4 sm:$0xff]   ;;  %v1361_v18 = vld [vmem:[%s1726_s5 + $0x144] ss:$8 sps:$4 sm:$0xff]  }
  0x54   : > { %961 = vmatpush1.bf16.msra.mxu0 %v1345_v7  ;;  %v1363_v19 = vld [vmem:[%s1726_s5 + $0x40] ss:$8 sps:$4 sm:$0xff]   ;;  %v1365_v21 = vld [vmem:[%s1726_s5 + $0x54] ss:$8 sps:$4 sm:$0xff]   ;;  %v1369_v23 = vld [vmem:[%s1726_s5 + $0x50] ss:$8 sps:$4 sm:$0xff]  }
  0x55   : > { %1002 = vmatpush1.bf16.msra.mxu1 %v1346_v8  ;;  %962 = vmatprep.subr.bf16.mxu0 %v1347_v9  ;;  %v1364_v20 = vld [vmem:[%s1726_s5 + $0x140] ss:$8 sps:$4 sm:$0xff]   ;;  %v1367_v22 = vld [vmem:[%s1726_s5 + $0x154] ss:$8 sps:$4 sm:$0xff]   ;;  %v1370_v24 = vld [vmem:[%s1726_s5 + $0x150] ss:$8 sps:$4 sm:$0xff]  }
  0x56   : > { %1003 = vmatprep.subr.bf16.mxu1 %v1349_v10  ;;  %v1371_v25 = vld [vmem:[%s1726_s5 + $0x64] ss:$8 sps:$4 sm:$0xff]   ;;  %v1375_v27 = vld [vmem:[%s1726_s5 + $0x60] ss:$8 sps:$4 sm:$0xff]   ;;  %v1377_v29 = vld [vmem:[%s1726_s5 + $0x74] ss:$8 sps:$4 sm:$0xff]  }
  0x57   : > { %v1373_v26 = vld [vmem:[%s1726_s5 + $0x164] ss:$8 sps:$4 sm:$0xff]   ;;  %v1376_v28 = vld [vmem:[%s1726_s5 + $0x160] ss:$8 sps:$4 sm:$0xff]   ;;  %v1379_v30 = vld [vmem:[%s1726_s5 + $0x174] ss:$8 sps:$4 sm:$0xff]  }
  0x58   : > { %963 = vmatpush1.bf16.msra.mxu0 %v1351_v11  ;;  %v1381_v31 = vld [vmem:[%s1726_s5 + $0x70] ss:$8 sps:$4 sm:$0xff]   ;;  %v1383_v33 = vld [vmem:[%s1726_s5 + $0x84] ss:$8 sps:$4 sm:$0xff]   ;;  %v1387_v35 = vld [vmem:[%s1726_s5 + $0x80] ss:$8 sps:$4 sm:$0xff]  }
  0x59   : > { %1004 = vmatpush1.bf16.msra.mxu1 %v1352_v12  ;;  %964 = vmatprep.subr.bf16.mxu0 %v1353_v13  ;;  %v1382_v32 = vld [vmem:[%s1726_s5 + $0x170] ss:$8 sps:$4 sm:$0xff]   ;;  %v1385_v34 = vld [vmem:[%s1726_s5 + $0x184] ss:$8 sps:$4 sm:$0xff]   ;;  %v1388_v36 = vld [vmem:[%s1726_s5 + $0x180] ss:$8 sps:$4 sm:$0xff]  }
  0x5a   : > { %1005 = vmatprep.subr.bf16.mxu1 %v1355_v14  ;;  %v1389_v37 = vld [vmem:[%s1726_s5 + $0x94] ss:$8 sps:$4 sm:$0xff]   ;;  %v1393_v39 = vld [vmem:[%s1726_s5 + $0x90] ss:$8 sps:$4 sm:$0xff]   ;;  %v1395_v41 = vld [vmem:[%s1726_s5 + $0xa4] ss:$8 sps:$4 sm:$0xff]  }
  0x5b   : > { %v1391_v38 = vld [vmem:[%s1726_s5 + $0x194] ss:$8 sps:$4 sm:$0xff]   ;;  %v1394_v40 = vld [vmem:[%s1726_s5 + $0x190] ss:$8 sps:$4 sm:$0xff]   ;;  %v1397_v42 = vld [vmem:[%s1726_s5 + $0x1a4] ss:$8 sps:$4 sm:$0xff]  }
  0x5c   : > { %965 = vmatpush1.bf16.msra.mxu0 %v1357_v15  ;;  %v1399_v43 = vld [vmem:[%s1726_s5 + $0xa0] ss:$8 sps:$4 sm:$0xff]   ;;  %v1401_v45 = vld [vmem:[%s1726_s5 + $0xb4] ss:$8 sps:$4 sm:$0xff]   ;;  %v1405_v50 = vld [vmem:[%s1726_s5 + $0xb0] ss:$8 sps:$4 sm:$0xff]  }
  0x5d   : > { %1006 = vmatpush1.bf16.msra.mxu1 %v1358_v16  ;;  %966 = vmatprep.subr.bf16.mxu0 %v1359_v17  ;;  %v1400_v44 = vld [vmem:[%s1726_s5 + $0x1a0] ss:$8 sps:$4 sm:$0xff]   ;;  %v1403_v46 = vld [vmem:[%s1726_s5 + $0x1b4] ss:$8 sps:$4 sm:$0xff]   ;;  %v1406_v51 = vld [vmem:[%s1726_s5 + $0x1b0] ss:$8 sps:$4 sm:$0xff]  }
  0x5e   : > { %1007 = vmatprep.subr.bf16.mxu1 %v1361_v18  ;;  %v558_v47 = vld [vmem:[%s1712_s26] sm:$0xff]  ;;  %v559_v49 = vld [vmem:[%s1712_s26 + $0x8] sm:$0xff]  ;;  %v1407_v53 = vld [vmem:[%s1726_s5 + $0xc4] ss:$8 sps:$4 sm:$0xff]   ;;  %p1274_p13 = scmp.ne.s32.totalorder %s1473_s14, 7 }
  0x5f   : > { %v1207_v48 = vcombine.high %v558_v47, %v558_v47  ;;  %v1209_v52 = vcombine.high %v559_v49, %v559_v49  ;;  %v1409_v54 = vld [vmem:[%s1726_s5 + $0x1c4] ss:$8 sps:$4 sm:$0xff]   ;;  %v1411_v55 = vld [vmem:[%s1726_s5 + $0xc0] ss:$8 sps:$4 sm:$0xff]   ;;  %v1413_v57 = vld [vmem:[%s1726_s5 + $0xd4] ss:$8 sps:$4 sm:$0xff]   ;;  %v1206_v5 = vcombine.low %v558_v47, %v558_v47  ;;  %v1208_v6 = vcombine.low %v559_v49, %v559_v49 }
  0x60   : > { %967 = vmatpush1.bf16.msra.mxu0 %v1363_v19  ;;  %v1412_v56 = vld [vmem:[%s1726_s5 + $0x1c0] ss:$8 sps:$4 sm:$0xff]   ;;  %v1415_v58 = vld [vmem:[%s1726_s5 + $0x1d4] ss:$8 sps:$4 sm:$0xff]   ;;  %v1417_v59 = vld [vmem:[%s1726_s5 + $0xd0] ss:$8 sps:$4 sm:$0xff]  }
  0x61   : > { %1008 = vmatpush1.bf16.msra.mxu1 %v1364_v20  ;;  %968 = vmatprep.subr.bf16.mxu0 %v1365_v21  ;;  %v1418_v60 = vld [vmem:[%s1726_s5 + $0x1d0] ss:$8 sps:$4 sm:$0xff]   ;;  %v1419_v61 = vld [vmem:[%s1726_s5 + $0xe4] ss:$8 sps:$4 sm:$0xff]   ;;  %v1423_v63 = vld [vmem:[%s1726_s5 + $0xe0] ss:$8 sps:$4 sm:$0xff]   ;;  %v1052_v21 = vlaneseq (!%p1274_p13) }
  0x62   : > { %1009 = vmatprep.subr.bf16.mxu1 %v1367_v22  ;;  %990 = vmatprep.mubr.bf16.mxu0 %v1207_v48  ;;  %v1421_v62 = vld [vmem:[%s1726_s5 + $0x1e4] ss:$8 sps:$4 sm:$0xff]   ;;  %v1424_v0 = vld [vmem:[%s1726_s5 + $0x1e0] ss:$8 sps:$4 sm:$0xff]   ;;  %v1425_v1 = vld [vmem:[%s1726_s5 + $0xf4] ss:$8 sps:$4 sm:$0xff]  }
  0x63   : > { %1031 = vmatprep.mubr.bf16.mxu1 %v1209_v52  ;;  %v1427_v2 = vld [vmem:[%s1726_s5 + $0x1f4] ss:$8 sps:$4 sm:$0xff]   ;;  %v1429_v3 = vld [vmem:[%s1726_s5 + $0xf0] ss:$8 sps:$4 sm:$0xff]   ;;  %v1053_v22 = vshrl.u32 (!%p1274_p13), %v1052_v21, 7 }
  0x64   : > { %969 = vmatpush1.bf16.msra.mxu0 %v1369_v23  ;;  %v1430_v4 = vld [vmem:[%s1726_s5 + $0x1f0] ss:$8 sps:$4 sm:$0xff]  }
  0x65   : > { %1010 = vmatpush1.bf16.msra.mxu1 %v1370_v24  ;;  %970 = vmatprep.subr.bf16.mxu0 %v1371_v25  ;;  %v556_v8 = vld [vmem:[#allocation2] sm:$0xff]  ;;  %v557_v12 = vld [vmem:[#allocation2 + $0x8] sm:$0xff]  ;;  %v1054_v24 = vsub.s32 (!%p1274_p13), 0, %v1053_v22  ;;  %v1058_v25 = vsub.s32 (!%p1274_p13), 1, %v1053_v22 }
  0x66   : > { %1011 = vmatprep.subr.bf16.mxu1 %v1373_v26  ;;  %v1050_v23 = vld [vmem:[%s538_s12] sm:$0x3] (!%p1274_p13) }
  0x68   : > { %971 = vmatpush1.bf16.msra.mxu0 %v1375_v27 }
  0x69   : > { %1012 = vmatpush1.bf16.msra.mxu1 %v1376_v28  ;;  %972 = vmatprep.subr.bf16.mxu0 %v1377_v29  ;;  %v1055_v28 = vrot.slane (!%p1274_p13), %v1050_v23, %v1054_v24  ;;  %v1059_v29 = vrot.slane (!%p1274_p13), %v1050_v23, %v1058_v25 }
  0x6a   : > { %1013 = vmatprep.subr.bf16.mxu1 %v1379_v30 }
  0x6c   : > { %973 = vmatpush1.bf16.msra.mxu0 %v1381_v31 }
  0x6d   : > { %1014 = vmatpush1.bf16.msra.mxu1 %v1382_v32  ;;  %974 = vmatprep.subr.bf16.mxu0 %v1383_v33 }
  0x6e   : > { %1015 = vmatprep.subr.bf16.mxu1 %v1385_v34 }
  0x70   : > { %975 = vmatpush1.bf16.msra.mxu0 %v1387_v35 }
  0x71   : > { %1016 = vmatpush1.bf16.msra.mxu1 %v1388_v36  ;;  %976 = vmatprep.subr.bf16.mxu0 %v1389_v37 }
  0x72   : > { %1017 = vmatprep.subr.bf16.mxu1 %v1391_v38 }
  0x74   : > { %977 = vmatpush1.bf16.msra.mxu0 %v1393_v39 }
  0x75   : > { %1018 = vmatpush1.bf16.msra.mxu1 %v1394_v40  ;;  %978 = vmatprep.subr.bf16.mxu0 %v1395_v41 }
  0x76   : > { %1019 = vmatprep.subr.bf16.mxu1 %v1397_v42 }
  0x78   : > { %979 = vmatpush1.bf16.msra.mxu0 %v1399_v43 }
  0x79   : > { %1020 = vmatpush1.bf16.msra.mxu1 %v1400_v44  ;;  %980 = vmatprep.subr.bf16.mxu0 %v1401_v45 }
  0x7a   : > { %1021 = vmatprep.subr.bf16.mxu1 %v1403_v46 }
  0x7c   : > { %981 = vmatpush1.bf16.msra.mxu0 %v1405_v50 }
  0x7d   : > { %1022 = vmatpush1.bf16.msra.mxu1 %v1406_v51  ;;  %982 = vmatprep.subr.bf16.mxu0 %v1407_v53 }
  0x7e   : > { %1023 = vmatprep.subr.bf16.mxu1 %v1409_v54 }
  0x80   : > { %983 = vmatpush1.bf16.msra.mxu0 %v1411_v55 }
  0x81   : > { %1024 = vmatpush1.bf16.msra.mxu1 %v1412_v56  ;;  %984 = vmatprep.subr.bf16.mxu0 %v1413_v57 }
  0x82   : > { %1025 = vmatprep.subr.bf16.mxu1 %v1415_v58 }
  0x84   : > { %985 = vmatpush1.bf16.msra.mxu0 %v1417_v59 }
  0x85   : > { %1026 = vmatpush1.bf16.msra.mxu1 %v1418_v60  ;;  %986 = vmatprep.subr.bf16.mxu0 %v1419_v61 }
  0x86   : > { %1027 = vmatprep.subr.bf16.mxu1 %v1421_v62 }
  0x88   : > { %987 = vmatpush1.bf16.msra.mxu0 %v1423_v63 }
  0x89   : > { %1028 = vmatpush1.bf16.msra.mxu1 %v1424_v0  ;;  %988 = vmatprep.subr.bf16.mxu0 %v1425_v1 }
  0x8a   : > { %1029 = vmatprep.subr.bf16.mxu1 %v1427_v2 }
  0x8c   : > { %989 = vmatpush1.bf16.msra.mxu0 %v1429_v3 }
  0x8d   : > { %1030 = vmatpush1.bf16.msra.mxu1 %v1430_v4 }
  0x8f   : > { %991 = vmatmul.mubr.bf16.vlgmr.msra.gmra.mrb[0].mxu0 %v1206_v5 }
  0x90   : > { %1032 = vmatmul.mubr.bf16.vlgmr.msra.gmra.mrb[0].mxu1 %v1208_v6 }
 0x162   : > { %v992_v7 = vpop.f32.mrb[0].mxu0 }
 0x163   : > { %v1033_v9 = vpop.f32.mrb[0].mxu1  ;;  %v994_v11 = vpop.f32.mrb[1].mxu0  ;;  %1047 = sbr.rel (%p1274_p13) target bundleno = 372 (0x174), region = 78 }
 0x164   : > { %v1034_v10 = vadd.f32 %v1033_v9, %v992_v7  ;;  %v1035_v13 = vpop.f32.mrb[1].mxu1  ;;  %v996_v15 = vpop.f32.mrb[2].mxu0 }
 0x165   : > { %v1036_v14 = vadd.f32 %v1035_v13, %v994_v11  ;;  %v1037_v16 = vpop.f32.mrb[2].mxu1  ;;  %v997_v18 = vpop.f32.mrb[3].mxu0 }
 0x166   : > { %v1040_v17 = vadd.f32 %v1034_v10, %v556_v8  ;;  %v1038_v19 = vpop.f32.mrb[3].mxu1 }
 0x167   : > { %v1041_v20 = vadd.f32 %v1036_v14, %v557_v12 }
 0x168   : > { %1042 = vst [vmem:[#allocation2] sm:$0xff] %v1040_v17 }
 0x169   : > { %1043 = vst [vmem:[#allocation2 + $0x8] sm:$0xff] %v1041_v20 }
 0x16f   : > { %v1048_v26 = vld [vmem:[#allocation2] sm:$0xff] }
 0x170   : > { %v1049_v27 = vld [vmem:[#allocation2 + $0x8] sm:$0xff]  ;;  %v1062_v30 = vadd.f32 %v1055_v28, %v1048_v26 }
 0x171   : > { %v1063_v31 = vadd.f32 %v1059_v29, %v1049_v27 }
 0x172   : > { %1064 = vst [vmem:[%s1724_s15] sm:$0xff] %v1062_v30 }
 0x173   : > { %1065 = vst [vmem:[%s1724_s15 + $0x8] sm:$0xff] %v1063_v31 }
 0x174 PF: > { %s13_s18 = sadd.s32 1, %s1489_s18   ;;  %s1828_s12 = smov %s1469_s13 }
 0x175   : > { %p10_p0 = scmp.ge.s32.totalorder %s13_s18, 18   ;;  %s1829_s13 = smov %s1563_s25 }
 0x176   : > { %s1830_s14 = smov %s1481_s16  ;;  %s1831_s15 = smov %s1485_s17 }
 0x177   : > { %s1832_s16 = smov %s1835_s19  ;;  %s1833_s17 = smov %s1839_s20 }
 0x178   :  { %12 = sbr.rel (!%p10_p0) target bundleno = 4 (0x4), region = 119 }

// kernel: dtn_forward.23
= control target key start
LH: loop header
LB: loop body
LE: loop exit
PB: predicated region body
PF: predicated region fallthrough
CT: control target
= control target key end

     0   :  { %v14_v0 = vlaneseq  ;;  %v154_v4 = vmov 1966171168   ;;  %v155_v11 = vmov 0.0   ;;  %s213_s0 = inlined_call_operand.vmem [shape: f32[8,512], index: 0, kind: input, shape index: {}]   ;;  %s214_s1 = inlined_call_operand.vmem [shape: f32[1,512], index: 1, kind: output, shape index: {0}]   ;;  %s215_s2 = inlined_call_operand.vmem [shape: f32[1,512], index: 2, kind: output, shape index: {1}]  }
   0x1   :  { %v20_v1 = vld [vmem:[%s213_s0] sm:$0xff]  ;;  %v21_v2 = vld [vmem:[%s213_s0 + $0x8] sm:$0xff]  ;;  %v22_v3 = vld [vmem:[%s213_s0 + $0x10] sm:$0xff]  ;;  %v56_v5 = vunpack.c.l.s4 %v154_v4 }
   0x2   :  { %vm180_vm0 = vcmp.lt.s32.totalorder %v14_v0, 512  ;;  %v23_v7 = vld [vmem:[%s213_s0 + $0x18] sm:$0xff]  ;;  %v25_v8 = vrot.slane %v20_v1, 4  ;;  %v31_v9 = vrot.slane %v21_v2, 4  ;;  %v37_v10 = vrot.slane %v22_v3, 4 }
   0x3   :  { %18 = vst.msk [vmem:[%s214_s1] sm:$0xf] %vm180_vm0, %v155_v11  ;;  %v43_v12 = vrot.slane %v23_v7, 4  ;;  %v57_v13 = vunpack.c.0.s8 %v56_v5  ;;  %v59_v14 = vshrl.u32 %v14_v0, 7  ;;  %19 = vst.msk [vmem:[%s215_s2] sm:$0xf] %vm180_vm0, %v155_v11  ;;  %v85_v15 = vmul.f32 %v20_v1, %v20_v1 }
   0x4   :  { %v26_v16 = vadd.f32 %v25_v8, %v20_v1  ;;  %v32_v17 = vadd.f32 %v31_v9, %v21_v2  ;;  %v38_v18 = vadd.f32 %v37_v10, %v22_v3  ;;  %v86_v19 = vmul.f32 %v21_v2, %v21_v2 }
   0x5   :  { %v44_v20 = vadd.f32 %v43_v12, %v23_v7  ;;  %v60_v21 = vsub.s32 %v57_v13, %v59_v14  ;;  %v87_v22 = vmul.f32 %v22_v3, %v22_v3  ;;  %v88_v23 = vmul.f32 %v23_v7, %v23_v7 }
   0x6   :  { %v27_v24 = vrot.slane %v26_v16, 2  ;;  %v33_v25 = vrot.slane %v32_v17, 2  ;;  %v39_v26 = vrot.slane %v38_v18, 2  ;;  %v89_v27 = vrot.slane %v85_v15, 4 }
   0x7   :  { %v45_v28 = vrot.slane %v44_v20, 2  ;;  %v95_v29 = vrot.slane %v86_v19, 4  ;;  %v101_v30 = vrot.slane %v87_v22, 4  ;;  %v107_v31 = vrot.slane %v88_v23, 4 }
   0x8   :  { %v28_v32 = vadd.f32 %v27_v24, %v26_v16  ;;  %v34_v33 = vadd.f32 %v33_v25, %v32_v17  ;;  %v40_v34 = vadd.f32 %v39_v26, %v38_v18  ;;  %v90_v35 = vadd.f32 %v89_v27, %v85_v15 }
   0x9   :  { %v46_v36 = vadd.f32 %v45_v28, %v44_v20  ;;  %v96_v37 = vadd.f32 %v95_v29, %v86_v19  ;;  %v102_v38 = vadd.f32 %v101_v30, %v87_v22  ;;  %v108_v39 = vadd.f32 %v107_v31, %v88_v23 }
   0xa   :  { %v29_v40 = vrot.slane %v28_v32, 1  ;;  %v35_v41 = vrot.slane %v34_v33, 1  ;;  %v41_v42 = vrot.slane %v40_v34, 1  ;;  %v91_v43 = vrot.slane %v90_v35, 2  ;;  %v24_v8 = vld [vmem:[%s214_s1] sm:$0xf] }
   0xb   :  { %v47_v44 = vrot.slane %v46_v36, 1  ;;  %v97_v45 = vrot.slane %v96_v37, 2  ;;  %v103_v46 = vrot.slane %v102_v38, 2  ;;  %v109_v47 = vrot.slane %v108_v39, 2  ;;  %v84_v14 = vld [vmem:[%s215_s2] sm:$0xf] }
   0xc   :  { %v30_v48 = vadd.f32 %v29_v40, %v28_v32  ;;  %v36_v49 = vadd.f32 %v35_v41, %v34_v33  ;;  %v42_v50 = vadd.f32 %v41_v42, %v40_v34  ;;  %v92_v51 = vadd.f32 %v91_v43, %v90_v35 }
   0xd   :  { %v48_v52 = vadd.f32 %v47_v44, %v46_v36  ;;  %v98_v53 = vadd.f32 %v97_v45, %v96_v37  ;;  %v104_v54 = vadd.f32 %v103_v46, %v102_v38  ;;  %v110_v55 = vadd.f32 %v109_v47, %v108_v39 }
   0xe   :  { %v53_v56 = vcombine.low %v30_v48, %v36_v49  ;;  %v93_v57 = vrot.slane %v92_v51, 1 }
   0xf   :  { %v54_v58 = vcombine.low %v42_v50, %v48_v52  ;;  %v99_v59 = vrot.slane %v98_v53, 1  ;;  %v105_v60 = vrot.slane %v104_v54, 1  ;;  %v111_v61 = vrot.slane %v110_v55, 1 }
  0x10   :  { %v61_v62 = vrot.slane %v53_v56, %v60_v21  ;;  %v94_v63 = vadd.f32 %v93_v57, %v92_v51 }
  0x11   :  { %v68_v0 = vrot.slane %v54_v58, %v60_v21  ;;  %v100_v1 = vadd.f32 %v99_v59, %v98_v53  ;;  %v106_v2 = vadd.f32 %v105_v60, %v104_v54  ;;  %v112_v3 = vadd.f32 %v111_v61, %v110_v55 }
  0x13   :  { %v69_v4 = vcombine.low %v61_v62, %v68_v0  ;;  %v117_v5 = vcombine.low %v94_v63, %v100_v1  ;;  %v118_v7 = vcombine.low %v106_v2, %v112_v3 }
  0x15   :  { %v76_v9 = vrot.slane %v69_v4, %v60_v21  ;;  %v125_v10 = vrot.slane %v117_v5, %v60_v21  ;;  %v132_v11 = vrot.slane %v118_v7, %v60_v21 }
  0x17   :  { %v78_v12 = vadd.f32 %v76_v9, %v24_v8  ;;  %v133_v13 = vcombine.low %v125_v10, %v132_v11 }
  0x19   :  { %83 = vst.msk [vmem:[%s214_s1] sm:$0xf] %vm180_vm0, %v78_v12  ;;  %v140_v15 = vrot.slane %v133_v13, %v60_v21 }
  0x1b   :  { %v142_v16 = vadd.f32 %v140_v15, %v84_v14 }
  0x1d   :  { %143 = vst.msk [vmem:[%s215_s2] sm:$0xf] %vm180_vm0, %v142_v16 }

// kernel: dtn_forward.24
= control target key start
LH: loop header
LB: loop body
LE: loop exit
PB: predicated region body
PF: predicated region fallthrough
CT: control target
= control target key end

     0   :  { %v20_v0 = vlaneseq  ;;  %s132_s1 = inlined_call_operand.vmem [shape: f32[1,512], index: 1, kind: input, shape index: {}]   ;;  %s133_s2 = inlined_call_operand.vmem [shape: f32[1,512], index: 2, kind: input, shape index: {}]   ;;  %s134_s0 = inlined_call_operand.vmem [shape: f32[8,512], index: 0, kind: input, shape index: {}]   ;;  %s135_s3 = inlined_call_operand.vmem [shape: f32[8,512], index: 3, kind: output, shape index: {}]  }
   0x1   :  { %v18_v2 = vld [vmem:[%s132_s1] sm:$0xf]  ;;  %v15_v9 = vld [vmem:[%s134_s0 + $0x8] sm:$0xff]  ;;  %v16_v14 = vld [vmem:[%s134_s0 + $0x10] sm:$0xff] }
   0x2   :  { %v21_v1 = vshrl.u32 %v20_v0, 7  ;;  %v44_v3 = vld [vmem:[%s133_s2] sm:$0xf]  ;;  %v17_v15 = vld [vmem:[%s134_s0 + $0x18] sm:$0xff] }
   0x3   :  { %v14_v8 = vld [vmem:[%s134_s0] sm:$0xff] }
   0x4   :  { %v22_v4 = vsub.s32 0, %v21_v1  ;;  %v26_v5 = vsub.s32 1, %v21_v1  ;;  %v30_v6 = vsub.s32 2, %v21_v1  ;;  %v34_v7 = vsub.s32 3, %v21_v1 }
   0x6   :  { %v23_v10 = vrot.slane %v18_v2, %v22_v4  ;;  %v49_v11 = vrot.slane %v44_v3, %v22_v4  ;;  %v27_v12 = vrot.slane %v18_v2, %v26_v5  ;;  %v53_v13 = vrot.slane %v44_v3, %v26_v5 }
   0x7   :  { %v31_v16 = vrot.slane %v18_v2, %v30_v6  ;;  %v57_v17 = vrot.slane %v44_v3, %v30_v6  ;;  %v35_v18 = vrot.slane %v18_v2, %v34_v7  ;;  %v61_v19 = vrot.slane %v44_v3, %v34_v7 }
   0x8   :  { %v40_v20 = vmul.f32 %v23_v10, %v14_v8  ;;  %v41_v21 = vmul.f32 %v27_v12, %v15_v9 }
   0x9   :  { %v42_v22 = vmul.f32 %v31_v16, %v16_v14  ;;  %v43_v23 = vmul.f32 %v35_v18, %v17_v15 }
   0xa   :  { %v66_v24 = vadd.f32 %v49_v11, %v40_v20  ;;  %v67_v25 = vadd.f32 %v53_v13, %v41_v21 }
   0xb   :  { %v68_v26 = vadd.f32 %v57_v17, %v42_v22  ;;  %v69_v27 = vadd.f32 %v61_v19, %v43_v23 }
   0xc   :  { %v70_v28 = vmax.f32 %v66_v24, 0.0  ;;  %v71_v29 = vmax.f32 %v67_v25, 0.0 }
   0xd   :  { %v72_v30 = vmax.f32 %v68_v26, 0.0  ;;  %v73_v31 = vmax.f32 %v69_v27, 0.0 }
   0xe   :  { %74 = vst [vmem:[%s135_s3] sm:$0xff] %v70_v28  ;;  %75 = vst [vmem:[%s135_s3 + $0x8] sm:$0xff] %v71_v29 }
   0xf   :  { %76 = vst [vmem:[%s135_s3 + $0x10] sm:$0xff] %v72_v30  ;;  %77 = vst [vmem:[%s135_s3 + $0x18] sm:$0xff] %v73_v31 }

// kernel: dtn_forward.25
= control target key start
LH: loop header
LB: loop body
LE: loop exit
PB: predicated region body
PF: predicated region fallthrough
CT: control target
= control target key end

     0   :  { %s637_s1 = inlined_call_operand.vmem [shape: bf16[512,128], index: 1, kind: input, shape index: {}]   ;;  %s638_s0 = inlined_call_operand.vmem [shape: bf16[8,512], index: 0, kind: input, shape index: {}]   ;;  %s639_s2 = inlined_call_operand.vmem [shape: f32[1,128], index: 2, kind: input, shape index: {}]   ;;  %s640_s3 = inlined_call_operand.vmem [shape: f32[8,128], index: 3, kind: output, shape index: {}]  }
   0x1   :  { %v473_v0 = vld [vmem:[%s637_s1 + $0x40] sm:$0xff]   ;;  %v477_v4 = vld [vmem:[%s637_s1 + $0x48] sm:$0xff]   ;;  %v481_v8 = vld [vmem:[%s637_s1 + $0x50] sm:$0xff]  }
   0x2   :  { %v474_v1 = vld [vmem:[%s637_s1 + $0xc0] sm:$0xff]   ;;  %429 = vmatprep.subr.bf16.mxu0 %v473_v0  ;;  %v478_v5 = vld [vmem:[%s637_s1 + $0xc8] sm:$0xff]   ;;  %v482_v9 = vld [vmem:[%s637_s1 + $0xd0] sm:$0xff]  }
   0x3   :  { %v475_v2 = vld [vmem:[%s637_s1] sm:$0xff]   ;;  %451 = vmatprep.subr.bf16.mxu1 %v474_v1  ;;  %v479_v6 = vld [vmem:[%s637_s1 + $0x8] sm:$0xff]   ;;  %v483_v10 = vld [vmem:[%s637_s1 + $0x10] sm:$0xff]  }
   0x4   :  { %v476_v3 = vld [vmem:[%s637_s1 + $0x80] sm:$0xff]   ;;  %430 = vmatpush3.bf16.msra.mxu0 %v475_v2  ;;  %v480_v7 = vld [vmem:[%s637_s1 + $0x88] sm:$0xff]   ;;  %v484_v11 = vld [vmem:[%s637_s1 + $0x90] sm:$0xff]  }
   0x5   :  { %452 = vmatpush3.bf16.msra.mxu1 %v476_v3  ;;  %431 = vmatprep.subr.bf16.mxu0 %v477_v4  ;;  %v485_v12 = vld [vmem:[%s637_s1 + $0x58] sm:$0xff]   ;;  %v489_v16 = vld [vmem:[%s637_s1 + $0x60] sm:$0xff]   ;;  %v493_v20 = vld [vmem:[%s637_s1 + $0x68] sm:$0xff]  }
   0x6   :  { %453 = vmatprep.subr.bf16.mxu1 %v478_v5  ;;  %v486_v13 = vld [vmem:[%s637_s1 + $0xd8] sm:$0xff]   ;;  %v490_v17 = vld [vmem:[%s637_s1 + $0xe0] sm:$0xff]   ;;  %v494_v21 = vld [vmem:[%s637_s1 + $0xe8] sm:$0xff]  }
   0x7   :  { %v487_v14 = vld [vmem:[%s637_s1 + $0x18] sm:$0xff]   ;;  %v491_v18 = vld [vmem:[%s637_s1 + $0x20] sm:$0xff]   ;;  %v495_v22 = vld [vmem:[%s637_s1 + $0x28] sm:$0xff]  }
   0x8   :  { %432 = vmatpush3.bf16.msra.mxu0 %v479_v6  ;;  %v488_v15 = vld [vmem:[%s637_s1 + $0x98] sm:$0xff]   ;;  %v492_v19 = vld [vmem:[%s637_s1 + $0xa0] sm:$0xff]   ;;  %v496_v23 = vld [vmem:[%s637_s1 + $0xa8] sm:$0xff]  }
   0x9   :  { %454 = vmatpush3.bf16.msra.mxu1 %v480_v7  ;;  %433 = vmatprep.subr.bf16.mxu0 %v481_v8  ;;  %v497_v24 = vld [vmem:[%s637_s1 + $0x70] sm:$0xff]   ;;  %v501_v28 = vld [vmem:[%s637_s1 + $0x78] sm:$0xff]   ;;  %v21_v32 = vld [vmem:[%s638_s0] sm:$0xff] }
   0xa   :  { %455 = vmatprep.subr.bf16.mxu1 %v482_v9  ;;  %v498_v25 = vld [vmem:[%s637_s1 + $0xf0] sm:$0xff]   ;;  %v502_v29 = vld [vmem:[%s637_s1 + $0xf8] sm:$0xff]   ;;  %v22_v33 = vld [vmem:[%s638_s0 + $0x8] sm:$0xff]  ;;  %v392_v34 = vcombine.low %v21_v32, %v21_v32  ;;  %v393_v35 = vcombine.high %v21_v32, %v21_v32 }
   0xb   :  { %v499_v26 = vld [vmem:[%s637_s1 + $0x30] sm:$0xff]   ;;  %v503_v30 = vld [vmem:[%s637_s1 + $0x38] sm:$0xff]   ;;  %v394_v36 = vcombine.low %v22_v33, %v22_v33  ;;  %v395_v37 = vcombine.high %v22_v33, %v22_v33  ;;  %v428_v46 = vld [vmem:[%s639_s2] ss:$0 sm:$0xff] }
   0xc   :  { %434 = vmatpush3.bf16.msra.mxu0 %v483_v10  ;;  %v500_v27 = vld [vmem:[%s637_s1 + $0xb0] sm:$0xff]   ;;  %v504_v31 = vld [vmem:[%s637_s1 + $0xb8] sm:$0xff]   ;;  %325 = vmatprep.mubr.bf16.mxu0 %v393_v35 }
   0xd   :  { %456 = vmatpush3.bf16.msra.mxu1 %v484_v11  ;;  %435 = vmatprep.subr.bf16.mxu0 %v485_v12 }
   0xe   :  { %457 = vmatprep.subr.bf16.mxu1 %v486_v13  ;;  %365 = vmatprep.mubr.bf16.mxu1 %v395_v37 }
  0x10   :  { %436 = vmatpush3.bf16.msra.mxu0 %v487_v14 }
  0x11   :  { %458 = vmatpush3.bf16.msra.mxu1 %v488_v15  ;;  %437 = vmatprep.subr.bf16.mxu0 %v489_v16 }
  0x12   :  { %459 = vmatprep.subr.bf16.mxu1 %v490_v17 }
  0x14   :  { %438 = vmatpush3.bf16.msra.mxu0 %v491_v18 }
  0x15   :  { %460 = vmatpush3.bf16.msra.mxu1 %v492_v19  ;;  %439 = vmatprep.subr.bf16.mxu0 %v493_v20 }
  0x16   :  { %461 = vmatprep.subr.bf16.mxu1 %v494_v21 }
  0x18   :  { %440 = vmatpush3.bf16.msra.mxu0 %v495_v22 }
  0x19   :  { %462 = vmatpush3.bf16.msra.mxu1 %v496_v23  ;;  %441 = vmatprep.subr.bf16.mxu0 %v497_v24 }
  0x1a   :  { %463 = vmatprep.subr.bf16.mxu1 %v498_v25 }
  0x1c   :  { %442 = vmatpush3.bf16.msra.mxu0 %v499_v26 }
  0x1d   :  { %464 = vmatpush3.bf16.msra.mxu1 %v500_v27  ;;  %443 = vmatprep.subr.bf16.mxu0 %v501_v28 }
  0x1e   :  { %465 = vmatprep.subr.bf16.mxu1 %v502_v29 }
  0x20   :  { %444 = vmatpush3.bf16.msra.mxu0 %v503_v30 }
  0x21   :  { %466 = vmatpush3.bf16.msra.mxu1 %v504_v31 }
  0x23   :  { %326 = vmatmul.mubr.bf16.vlgmr.msra.gmra.mrb[0].mxu0 %v392_v34 }
  0x24   :  { %366 = vmatmul.mubr.bf16.vlgmr.msra.gmra.mrb[0].mxu1 %v394_v36 }
  0xf6   :  { %v445_v38 = vpop.f32.mrb[0].mxu0 }
  0xf7   :  { %v467_v39 = vpop.f32.mrb[0].mxu1  ;;  %v446_v40 = vpop.f32.mrb[1].mxu0 }
  0xf8   :  { %v468_v41 = vpop.f32.mrb[1].mxu1  ;;  %v447_v42 = vadd.f32 %v446_v40, %v445_v38  ;;  %v448_v44 = vpop.f32.mrb[2].mxu0 }
  0xf9   :  { %v469_v43 = vadd.f32 %v468_v41, %v467_v39  ;;  %v470_v45 = vpop.f32.mrb[2].mxu1  ;;  %v449_v47 = vpop.f32.mrb[3].mxu0 }
  0xfa   :  { %v471_v48 = vpop.f32.mrb[3].mxu1 }
  0xfb   :  { %v368_v49 = vadd.f32 %v469_v43, %v447_v42 }
  0xfd   :  { %v386_v50 = vadd.f32 %v428_v46, %v368_v49 }
  0xff   :  { %387 = vst [vmem:[%s640_s3] sm:$0xff] %v386_v50 }

</bundles_post_ra>
